<compile_context>
chip_gen: v7x
topology: tpu7x:2x2x1
jax: 0.10.0
libtpu: 0.0.40
codegen_flags: <defaults>
</compile_context>

<pallas_src>
import functools
import math

import jax
import jax.numpy as jnp
from jax.experimental import pallas as pl
from jax.experimental.pallas import tpu as pltpu


_LAYER_WEIGHT_NAMES = (
    "sa_w", "sa_b", "sa_ow", "sa_ob",
    "ca_qw", "ca_qb", "ca_kvw", "ca_kvb", "ca_ow", "ca_ob",
    "l1_w", "l1_b", "l2_w", "l2_b",
    "n1_g", "n1_b", "n2_g", "n2_b", "n3_g", "n3_b",
)
_BF16_WEIGHTS = frozenset({"sa_w", "sa_ow", "ca_qw", "ca_kvw", "ca_ow", "l1_w", "l2_w"})


# ----------------------------------------------------------------------------
# In-kernel helpers (traced inside pallas kernels; operate on 2-D values)
# ----------------------------------------------------------------------------

def _layernorm(y, g, b, eps):
    mu = jnp.mean(y, axis=-1, keepdims=True)
    var = jnp.mean(jnp.square(y - mu), axis=-1, keepdims=True)
    return (y - mu) * jax.lax.rsqrt(var + eps) * g + b


def _mha_into(out_ref, q, k, v, mask, n_heads):
    """q: (Tq,E) f32 (scale pre-folded), k/v: (Tk,E) f32, mask: (Tq,Tk) or None.

    Writes the (Tq, E) attention output into `out_ref` (f32 VMEM scratch) at static
    per-head column offsets (no concatenate).
    """
    E = q.shape[-1]
    dk = E // n_heads
    for h in range(n_heads):                       # static unrolled loop over heads
        lo = h * dk
        qh = q[:, lo:lo + dk].astype(jnp.bfloat16)
        kh = k[:, lo:lo + dk].astype(jnp.bfloat16)
        vh = v[:, lo:lo + dk].astype(jnp.bfloat16)
        # q @ k^T via dot_general (contract last dims) -> MXU handles transposed operand
        s = jax.lax.dot_general(qh, kh, (((1,), (1,)), ((), ())),
                                preferred_element_type=jnp.float32)
        if mask is not None:
            s = s + mask
        s = s - jnp.max(s, axis=-1, keepdims=True)
        p = jnp.exp(s)
        denom = jnp.sum(p, axis=-1, keepdims=True)
        p = p * pl.reciprocal(denom, approx=True)
        out_ref[:, lo:lo + dk] = jnp.dot(p.astype(jnp.bfloat16), vh,
                                         preferred_element_type=jnp.float32)


# ----------------------------------------------------------------------------
# Fused decoder stack kernel (all layers in one pallas_call, grid=(B, n_layers))
# ----------------------------------------------------------------------------

def _make_stack_kernel(with_mask, n_heads, eps, n_layers):

    def kernel(*refs):
        if with_mask:
            x_ref, mem_ref, mask_ref = refs[:3]
            w = refs[3:3 + len(_LAYER_WEIGHT_NAMES)]
        else:
            x_ref, mem_ref = refs[:2]
            mask_ref = None
            w = refs[2:2 + len(_LAYER_WEIGHT_NAMES)]
        o_ref, x_carry, attn_scratch = refs[-3:]

        (sa_w, sa_b, sa_ow, sa_ob,
         ca_qw, ca_qb, ca_kvw, ca_kvb, ca_ow, ca_ob,
         l1_w, l1_b, l2_w, l2_b,
         n1_g, n1_b, n2_g, n2_b, n3_g, n3_b) = w

        layer = pl.program_id(1)
        E = x_ref.shape[-1]
        T = x_ref.shape[0]

        @pl.when(layer == 0)
        def _():
            x_carry[...] = x_ref[...].astype(jnp.float32)

        x = x_carry[...]                                  # (T, E) f32, carried across layers
        mem_bf = mem_ref[...].astype(jnp.bfloat16)        # (S, E)

        if with_mask:
            mask = mask_ref[...].astype(jnp.float32)      # (T, T) additive
        else:
            # causal (square subsequent) mask generated in-kernel: VPU filler, no DMA
            rows = jax.lax.broadcasted_iota(jnp.int32, (T, T), 0)
            cols = jax.lax.broadcasted_iota(jnp.int32, (T, T), 1)
            mask = jnp.where(cols > rows, jnp.float32(-1e30), jnp.float32(0.0))

        def matmul(a, w_ref, b_ref=None):
            r = jnp.dot(a.astype(jnp.bfloat16), w_ref[...],
                        preferred_element_type=jnp.float32)
            if b_ref is not None:
                r = r + b_ref[...]
            return r

        # --- self attention: fused QKV projection (softmax scale folded into Q cols) ---
        qkv = matmul(x, sa_w, sa_b)                       # (T, 3E)
        _mha_into(attn_scratch, qkv[:, :E], qkv[:, E:2 * E], qkv[:, 2 * E:], mask, n_heads)
        sa = matmul(attn_scratch[...], sa_ow, sa_ob)
        x = _layernorm(x + sa, n1_g[...], n1_b[...], eps)

        # --- cross attention: fused K/V projection of memory, no mask ---
        qc = matmul(x, ca_qw, ca_qb)
        kv = matmul(mem_bf, ca_kvw, ca_kvb)               # (S, 2E)
        _mha_into(attn_scratch, qc, kv[:, :E], kv[:, E:], None, n_heads)
        ca = matmul(attn_scratch[...], ca_ow, ca_ob)
        x = _layernorm(x + ca, n2_g[...], n2_b[...], eps)

        # --- feed forward (ReLU) ---
        h = jnp.maximum(matmul(x, l1_w, l1_b), 0.0)
        ff = matmul(h, l2_w, l2_b)
        x = _layernorm(x + ff, n3_g[...], n3_b[...], eps)

        x_carry[...] = x

        @pl.when(layer == n_layers - 1)
        def _():
            o_ref[...] = x.astype(o_ref.dtype)

    return kernel


def decoder_stack_forward(x, memory, tgt_mask, stacked, n_heads, eps=1e-5):
    B, T, E = x.shape
    S = memory.shape[1]
    n_layers = stacked["sa_w"].shape[0]

    def batched_spec(arr):           # per-batch block, constant across the layer axis
        return pl.BlockSpec((None,) + arr.shape[1:], lambda b, l: (b, 0, 0))

    def layer_spec(arr):             # per-layer weight block (prefetches next layer)
        return pl.BlockSpec((None,) + arr.shape[1:], lambda b, l: (l, 0, 0))

    weight_args = tuple(stacked[name] for name in _LAYER_WEIGHT_NAMES)

    inputs = [x, memory]
    in_specs = [batched_spec(x), batched_spec(memory)]
    with_mask = tgt_mask is not None
    if with_mask:
        inputs.append(tgt_mask)
        in_specs.append(pl.BlockSpec(tgt_mask.shape, lambda b, l: (0, 0)))
    inputs += list(weight_args)
    in_specs += [layer_spec(w) for w in weight_args]

    kernel = _make_stack_kernel(with_mask=with_mask, n_heads=n_heads,
                                eps=eps, n_layers=n_layers)

    return pl.pallas_call(
        kernel,
        out_shape=jax.ShapeDtypeStruct((B, T, E), x.dtype),
        grid=(B, n_layers),
        in_specs=in_specs,
        out_specs=pl.BlockSpec((None, T, E), lambda b, l: (b, 0, 0)),
        scratch_shapes=[pltpu.VMEM((T, E), jnp.float32),    # x carry across layers
                        pltpu.VMEM((T, E), jnp.float32)],   # per-attention head scatter
        compiler_params=pltpu.CompilerParams(
            dimension_semantics=("parallel", "arbitrary"),
            vmem_limit_bytes=64 * 1024 * 1024),
    )(*inputs)


# ----------------------------------------------------------------------------
# Fused auxiliary MLP kernel (fc1 -> LeakyReLU -> fc2 -> LeakyReLU -> [parents|children])
# Output last dim padded to a multiple of 128 -> lane-dense unmasked stores.
# ----------------------------------------------------------------------------

def _aux_mlp_kernel(x_ref, w1_ref, b1_ref, w2_ref, b2_ref, wpc_ref, bpc_ref, o_ref):
    def leaky(y):                                    # nn.LeakyReLU default slope (f32 VPU math)
        return jnp.where(y >= 0.0, y, 0.01 * y)

    h = leaky(jnp.dot(x_ref[...].astype(jnp.bfloat16), w1_ref[...],
                      preferred_element_type=jnp.float32) + b1_ref[...])
    h = leaky(jnp.dot(h.astype(jnp.bfloat16), w2_ref[...],
                      preferred_element_type=jnp.float32) + b2_ref[...])
    o_ref[...] = (jnp.dot(h.astype(jnp.bfloat16), wpc_ref[...],
                          preferred_element_type=jnp.float32) + bpc_ref[...]).astype(o_ref.dtype)


def auxiliary_mlp_forward(x, ap, n_nodes):
    B, S, E = x.shape
    rows = B * S
    x2 = x.reshape(rows, E)
    n2p = ap["wpc"].shape[-1]                        # 2*n_nodes padded to multiple of 128

    rt = 256                                         # row tile (feeds 256x256 MXU on v6e/v7x)
    if rows <= rt:
        rt = rows
        pad_rows = rows
    else:
        pad_rows = pl.cdiv(rows, rt) * rt
        if pad_rows != rows:
            x2 = jnp.pad(x2, ((0, pad_rows - rows), (0, 0)))

    def wspec(arr):
        return pl.BlockSpec(arr.shape, lambda i: (0, 0))

    weights = (ap["w1"], ap["b1"], ap["w2"], ap["b2"], ap["wpc"], ap["bpc"])
    out = pl.pallas_call(
        _aux_mlp_kernel,
        out_shape=jax.ShapeDtypeStruct((pad_rows, n2p), x.dtype),
        grid=(pad_rows // rt,),
        in_specs=[pl.BlockSpec((rt, E), lambda i: (i, 0))] + [wspec(w) for w in weights],
        out_specs=pl.BlockSpec((rt, n2p), lambda i: (i, 0)),
        compiler_params=pltpu.CompilerParams(
            dimension_semantics=("parallel",),
            vmem_limit_bytes=64 * 1024 * 1024),
    )(x2, *weights)

    out = out[:rows]
    parents = out[:, :n_nodes].reshape(B, S, n_nodes)
    children = out[:, n_nodes:2 * n_nodes].reshape(B, S, n_nodes)
    parents_flat = parents.reshape(1, -1)                               # .view(1, -1)
    children_flat = jnp.transpose(children, (0, 2, 1)).reshape(1, -1)   # .transpose(1,2).reshape(1,-1)
    return parents_flat, children_flat


# ----------------------------------------------------------------------------
# Full Decoder forward
# ----------------------------------------------------------------------------

def decoder_forward(params, tgt_embed, encoder_summary, tgt_mask, *, n_heads, n_nodes):
    """tgt_mask: (T,T) additive mask, or None to generate the causal mask in-kernel."""
    output = decoder_stack_forward(tgt_embed, encoder_summary, tgt_mask,
                                   params["layers"], n_heads)
    parent, children = auxiliary_mlp_forward(encoder_summary, params["aux"], n_nodes)
    return output, parent, children


# ----------------------------------------------------------------------------
# Parameter construction: PyTorch layout -> pre-transposed / fused / bf16 kernel layout (once)
# ----------------------------------------------------------------------------

def _lin_init(key, out_f, in_f, scale=0.02):
    w = jax.random.normal(key, (out_f, in_f), jnp.float32) * scale
    b = jnp.zeros((out_f,), jnp.float32)
    return w, b


def _mha_init(key, d_model, scale=0.02):
    k1, k2 = jax.random.split(key)
    return {
        "in_proj_w": jax.random.normal(k1, (3 * d_model, d_model), jnp.float32) * scale,
        "in_proj_b": jnp.zeros((3 * d_model,), jnp.float32),
        "out_w": jax.random.normal(k2, (d_model, d_model), jnp.float32) * scale,
        "out_b": jnp.zeros((d_model,), jnp.float32),
    }


def init_raw_params(key, d_model, n_nodes, hidden_size, n_layers):
    keys = jax.random.split(key, n_layers + 1)
    layers = []
    for li in range(n_layers):
        ks = jax.random.split(keys[li], 4)
        l1w, l1b = _lin_init(ks[2], 4 * d_model, d_model)
        l2w, l2b = _lin_init(ks[3], d_model, 4 * d_model)
        layers.append({
            "self_attn": _mha_init(ks[0], d_model),
            "cross_attn": _mha_init(ks[1], d_model),
            "lin1_w": l1w, "lin1_b": l1b, "lin2_w": l2w, "lin2_b": l2b,
            "norm1_g": jnp.ones((d_model,), jnp.float32), "norm1_b": jnp.zeros((d_model,), jnp.float32),
            "norm2_g": jnp.ones((d_model,), jnp.float32), "norm2_b": jnp.zeros((d_model,), jnp.float32),
            "norm3_g": jnp.ones((d_model,), jnp.float32), "norm3_b": jnp.zeros((d_model,), jnp.float32),
        })
    ka = jax.random.split(keys[-1], 4)
    f1w, f1b = _lin_init(ka[0], hidden_size, d_model)
    f2w, f2b = _lin_init(ka[1], hidden_size, hidden_size)
    fpw, fpb = _lin_init(ka[2], n_nodes, hidden_size)
    fcw, fcb = _lin_init(ka[3], n_nodes, hidden_size)
    aux = {"fc1_w": f1w, "fc1_b": f1b, "fc2_w": f2w, "fc2_b": f2b,
           "fcp_w": fpw, "fcp_b": fpb, "fcc_w": fcw, "fcc_b": fcb}
    return {"layers": layers, "aux": aux}


def prepare_params(raw, d_model, n_heads):
    """One-time conversion: transpose to (K,N), fuse QKV / KV / parent-child weights,
    fold the softmax 1/sqrt(dk) into the Q projections, stack layers, cast MXU weights to bf16."""
    E = d_model
    scale = 1.0 / math.sqrt(E // n_heads)
    per_layer = []
    for p in raw["layers"]:
        sa, ca = p["self_attn"], p["cross_attn"]
        sa_w = sa["in_proj_w"].T                              # (E, 3E) fused QKV
        sa_b = sa["in_proj_b"]
        sa_w = sa_w.at[:, :E].multiply(scale)                 # fold 1/sqrt(dk) into Q columns
        sa_b = sa_b.at[:E].multiply(scale)
        ca_wq, ca_wk, ca_wv = jnp.split(ca["in_proj_w"], 3, axis=0)
        ca_bq, ca_bk, ca_bv = jnp.split(ca["in_proj_b"], 3, axis=0)
        per_layer.append({
            "sa_w": sa_w, "sa_b": sa_b.reshape(1, 3 * E),
            "sa_ow": sa["out_w"].T, "sa_ob": sa["out_b"].reshape(1, E),
            "ca_qw": ca_wq.T * scale, "ca_qb": (ca_bq * scale).reshape(1, E),
            "ca_kvw": jnp.concatenate([ca_wk.T, ca_wv.T], axis=1),       # (E, 2E) fused KV
            "ca_kvb": jnp.concatenate([ca_bk, ca_bv]).reshape(1, 2 * E),
            "ca_ow": ca["out_w"].T, "ca_ob": ca["out_b"].reshape(1, E),
            "l1_w": p["lin1_w"].T, "l1_b": p["lin1_b"].reshape(1, -1),
            "l2_w": p["lin2_w"].T, "l2_b": p["lin2_b"].reshape(1, -1),
            "n1_g": p["norm1_g"].reshape(1, E), "n1_b": p["norm1_b"].reshape(1, E),
            "n2_g": p["norm2_g"].reshape(1, E), "n2_b": p["norm2_b"].reshape(1, E),
            "n3_g": p["norm3_g"].reshape(1, E), "n3_b": p["norm3_b"].reshape(1, E),
        })
    stacked = {}
    for name in _LAYER_WEIGHT_NAMES:
        arr = jnp.stack([lp[name] for lp in per_layer], axis=0)
        if name in _BF16_WEIGHTS:
            arr = arr.astype(jnp.bfloat16)
        stacked[name] = arr

    a = raw["aux"]
    n_nodes = a["fcp_b"].shape[0]
    n2 = 2 * n_nodes
    n2p = -(-n2 // 128) * 128                                 # pad parent|child heads lane-dense
    wpc = jnp.pad(jnp.concatenate([a["fcp_w"].T, a["fcc_w"].T], axis=1), ((0, 0), (0, n2p - n2)))
    bpc = jnp.pad(jnp.concatenate([a["fcp_b"], a["fcc_b"]]), (0, n2p - n2))
    aux = {
        "w1": a["fc1_w"].T.astype(jnp.bfloat16), "b1": a["fc1_b"].reshape(1, -1),
        "w2": a["fc2_w"].T.astype(jnp.bfloat16), "b2": a["fc2_b"].reshape(1, -1),
        "wpc": wpc.astype(jnp.bfloat16), "bpc": bpc.reshape(1, -1),
    }
    return {"layers": stacked, "aux": aux}


# ----------------------------------------------------------------------------
# Main
# ----------------------------------------------------------------------------

if __name__ == "__main__":
    B, T, S = 2, 8, 4                      # batch, tgt seq len, memory seq len
    d_model, n_heads = 32, 4
    n_nodes, hidden_size, n_layers = 6, 16, 2

    key = jax.random.PRNGKey(0)
    k_tgt, k_mem, k_par = jax.random.split(key, 3)
    tgt_embed = jax.random.normal(k_tgt, (B, T, d_model), jnp.float32)
    encoder_summary = jax.random.normal(k_mem, (B, S, d_model), jnp.float32)

    raw_params = init_raw_params(k_par, d_model, n_nodes, hidden_size, n_layers)
    params = prepare_params(raw_params, d_model, n_heads)

    fwd = jax.jit(functools.partial(decoder_forward, n_heads=n_heads, n_nodes=n_nodes))

    # Main path: causal mask generated inside the kernel (no (T,T) DMA per layer).
    output, parent, children = fwd(params, tgt_embed, encoder_summary, None)
    jax.block_until_ready((output, parent, children))

    # Explicit-mask path (matches the PyTorch API: tgt_mask passed in); should agree.
    tgt_mask = jnp.where(
        jnp.triu(jnp.ones((T, T), dtype=bool), k=1), -1e30, 0.0
    ).astype(jnp.float32)
    output2, _, _ = fwd(params, tgt_embed, encoder_summary, tgt_mask)
    jax.block_until_ready(output2)

    assert output.shape == (B, T, d_model)
    assert parent.shape == (1, B * S * n_nodes)
    assert children.shape == (1, B * S * n_nodes)
    assert jnp.allclose(output, output2, atol=1e-5), "causal vs explicit mask mismatch"
    print("KERNEL_OK")
</pallas_src>

<mosaic_0001>
module attributes {stable_mosaic.version = 11 : i64} {
  func.func @_aux_mlp_kernel(%arg0: i32, %arg1: memref<8x32xf32, #tpu.memory_space<vmem>>, %arg2: memref<32x16xbf16, #tpu.memory_space<vmem>>, %arg3: memref<1x16xf32, #tpu.memory_space<vmem>>, %arg4: memref<16x16xbf16, #tpu.memory_space<vmem>>, %arg5: memref<1x16xf32, #tpu.memory_space<vmem>>, %arg6: memref<16x128xbf16, #tpu.memory_space<vmem>>, %arg7: memref<1x128xf32, #tpu.memory_space<vmem>>, %arg8: memref<8x128xf32, #tpu.memory_space<vmem>>) attributes {dimension_semantics = [#tpu.dimension_semantics<parallel>], iteration_bounds = array<i64: 1>, scalar_prefetch = 0 : i64, scratch_operands = 0 : i64, tpu.core_type = #tpu.core_type<tc>, window_params = [{transform_indices = @transform_0, window_bounds = array<i64: 8, 32>}, {pipeline_mode = #tpu.pipeline_mode<synchronous>, transform_indices = @transform_1, window_bounds = array<i64: 32, 16>}, {pipeline_mode = #tpu.pipeline_mode<synchronous>, transform_indices = @transform_2, window_bounds = array<i64: 1, 16>}, {pipeline_mode = #tpu.pipeline_mode<synchronous>, transform_indices = @transform_3, window_bounds = array<i64: 16, 16>}, {pipeline_mode = #tpu.pipeline_mode<synchronous>, transform_indices = @transform_4, window_bounds = array<i64: 1, 16>}, {pipeline_mode = #tpu.pipeline_mode<synchronous>, transform_indices = @transform_5, window_bounds = array<i64: 16, 128>}, {pipeline_mode = #tpu.pipeline_mode<synchronous>, transform_indices = @transform_6, window_bounds = array<i64: 1, 128>}, {transform_indices = @transform_7, window_bounds = array<i64: 8, 128>}]} {
    %c0 = arith.constant 0 : index
    %c0_0 = arith.constant 0 : index
    %0 = vector.load %arg1[%c0, %c0_0] : memref<8x32xf32, #tpu.memory_space<vmem>>, vector<8x32xf32>
    %1 = arith.truncf %0 : vector<8x32xf32> to vector<8x32xbf16>
    %c0_1 = arith.constant 0 : index
    %c0_2 = arith.constant 0 : index
    %2 = vector.load %arg2[%c0_1, %c0_2] : memref<32x16xbf16, #tpu.memory_space<vmem>>, vector<32x16xbf16>
    %cst = arith.constant dense<0.000000e+00> : vector<8x16xf32>
    %3 = tpu.matmul %1, %2, %cst {dimension_numbers = #tpu.dot_dimension_numbers<[1], [0], [0], [1], [0, 0, 1, 1], [], []>} : vector<8x32xbf16>, vector<32x16xbf16>, vector<8x16xf32> -> vector<8x16xf32>
    %c0_3 = arith.constant 0 : index
    %c0_4 = arith.constant 0 : index
    %4 = vector.load %arg3[%c0_3, %c0_4] : memref<1x16xf32, #tpu.memory_space<vmem>>, vector<1x16xf32>
    %5 = vector.broadcast %4 : vector<1x16xf32> to vector<8x16xf32>
    %6 = arith.addf %3, %5 : vector<8x16xf32>
    %cst_5 = arith.constant 0.000000e+00 : f32
    %7 = vector.broadcast %cst_5 : f32 to vector<8x16xf32>
    %8 = arith.cmpf oge, %6, %7 : vector<8x16xf32>
    %cst_6 = arith.constant 0.00999999977 : f32
    %9 = vector.broadcast %cst_6 : f32 to vector<8x16xf32>
    %10 = arith.mulf %9, %6 : vector<8x16xf32>
    %11 = arith.select %8, %6, %10 : vector<8x16xi1>, vector<8x16xf32>
    %12 = arith.truncf %11 : vector<8x16xf32> to vector<8x16xbf16>
    %c0_7 = arith.constant 0 : index
    %c0_8 = arith.constant 0 : index
    %13 = vector.load %arg4[%c0_7, %c0_8] : memref<16x16xbf16, #tpu.memory_space<vmem>>, vector<16x16xbf16>
    %cst_9 = arith.constant dense<0.000000e+00> : vector<8x16xf32>
    %14 = tpu.matmul %12, %13, %cst_9 {dimension_numbers = #tpu.dot_dimension_numbers<[1], [0], [0], [1], [0, 0, 1, 1], [], []>} : vector<8x16xbf16>, vector<16x16xbf16>, vector<8x16xf32> -> vector<8x16xf32>
    %c0_10 = arith.constant 0 : index
    %c0_11 = arith.constant 0 : index
    %15 = vector.load %arg5[%c0_10, %c0_11] : memref<1x16xf32, #tpu.memory_space<vmem>>, vector<1x16xf32>
    %16 = vector.broadcast %15 : vector<1x16xf32> to vector<8x16xf32>
    %17 = arith.addf %14, %16 : vector<8x16xf32>
    %cst_12 = arith.constant 0.000000e+00 : f32
    %18 = vector.broadcast %cst_12 : f32 to vector<8x16xf32>
    %19 = arith.cmpf oge, %17, %18 : vector<8x16xf32>
    %cst_13 = arith.constant 0.00999999977 : f32
    %20 = vector.broadcast %cst_13 : f32 to vector<8x16xf32>
    %21 = arith.mulf %20, %17 : vector<8x16xf32>
    %22 = arith.select %19, %17, %21 : vector<8x16xi1>, vector<8x16xf32>
    %23 = arith.truncf %22 : vector<8x16xf32> to vector<8x16xbf16>
    %c0_14 = arith.constant 0 : index
    %c0_15 = arith.constant 0 : index
    %24 = vector.load %arg6[%c0_14, %c0_15] : memref<16x128xbf16, #tpu.memory_space<vmem>>, vector<16x128xbf16>
    %cst_16 = arith.constant dense<0.000000e+00> : vector<8x128xf32>
    %25 = tpu.matmul %23, %24, %cst_16 {dimension_numbers = #tpu.dot_dimension_numbers<[1], [0], [0], [1], [0, 0, 1, 1], [], []>} : vector<8x16xbf16>, vector<16x128xbf16>, vector<8x128xf32> -> vector<8x128xf32>
    %c0_17 = arith.constant 0 : index
    %c0_18 = arith.constant 0 : index
    %26 = vector.load %arg7[%c0_17, %c0_18] : memref<1x128xf32, #tpu.memory_space<vmem>>, vector<1x128xf32>
    %27 = vector.broadcast %26 : vector<1x128xf32> to vector<8x128xf32>
    %28 = arith.addf %25, %27 : vector<8x128xf32>
    %c0_19 = arith.constant 0 : index
    %c0_20 = arith.constant 0 : index
    %29 = vector.load %arg8[%c0_19, %c0_20] : memref<8x128xf32, #tpu.memory_space<vmem>>, vector<8x128xf32>
    tpu.vector_store %arg8[%c0_19, %c0_20], %28 {strides = array<i32>} : memref<8x128xf32, #tpu.memory_space<vmem>>, vector<8x128xf32>,
    return
  }
  func.func @transform_0(%arg0: i32) -> (i32, i32) {
    %c0_i32 = arith.constant 0 : i32
    %c0_i32_0 = arith.constant 0 : i32
    return %arg0, %c0_i32 : i32, i32
  }
  func.func @transform_1(%arg0: i32) -> (i32, i32) {
    %c0_i32 = arith.constant 0 : i32
    %c0_i32_0 = arith.constant 0 : i32
    %c0_i32_1 = arith.constant 0 : i32
    return %c0_i32, %c0_i32_0 : i32, i32
  }
  func.func @transform_2(%arg0: i32) -> (i32, i32) {
    %c0_i32 = arith.constant 0 : i32
    %c0_i32_0 = arith.constant 0 : i32
    %c0_i32_1 = arith.constant 0 : i32
    return %c0_i32, %c0_i32_0 : i32, i32
  }
  func.func @transform_3(%arg0: i32) -> (i32, i32) {
    %c0_i32 = arith.constant 0 : i32
    %c0_i32_0 = arith.constant 0 : i32
    %c0_i32_1 = arith.constant 0 : i32
    return %c0_i32, %c0_i32_0 : i32, i32
  }
  func.func @transform_4(%arg0: i32) -> (i32, i32) {
    %c0_i32 = arith.constant 0 : i32
    %c0_i32_0 = arith.constant 0 : i32
    %c0_i32_1 = arith.constant 0 : i32
    return %c0_i32, %c0_i32_0 : i32, i32
  }
  func.func @transform_5(%arg0: i32) -> (i32, i32) {
    %c0_i32 = arith.constant 0 : i32
    %c0_i32_0 = arith.constant 0 : i32
    %c0_i32_1 = arith.constant 0 : i32
    return %c0_i32, %c0_i32_0 : i32, i32
  }
  func.func @transform_6(%arg0: i32) -> (i32, i32) {
    %c0_i32 = arith.constant 0 : i32
    %c0_i32_0 = arith.constant 0 : i32
    %c0_i32_1 = arith.constant 0 : i32
    return %c0_i32, %c0_i32_0 : i32, i32
  }
  func.func @transform_7(%arg0: i32) -> (i32, i32) {
    %c0_i32 = arith.constant 0 : i32
    %c0_i32_0 = arith.constant 0 : i32
    return %arg0, %c0_i32 : i32, i32
  }
}

module attributes {stable_mosaic.version = 11 : i64} {
  func.func @kernel(%arg0: i32, %arg1: i32, %arg2: memref<1x8x32xf32, #tpu.memory_space<vmem>>, %arg3: memref<1x4x32xf32, #tpu.memory_space<vmem>>, %arg4: memref<1x32x96xbf16, #tpu.memory_space<vmem>>, %arg5: memref<1x1x96xf32, #tpu.memory_space<vmem>>, %arg6: memref<1x32x32xbf16, #tpu.memory_space<vmem>>, %arg7: memref<1x1x32xf32, #tpu.memory_space<vmem>>, %arg8: memref<1x32x32xbf16, #tpu.memory_space<vmem>>, %arg9: memref<1x1x32xf32, #tpu.memory_space<vmem>>, %arg10: memref<1x32x64xbf16, #tpu.memory_space<vmem>>, %arg11: memref<1x1x64xf32, #tpu.memory_space<vmem>>, %arg12: memref<1x32x32xbf16, #tpu.memory_space<vmem>>, %arg13: memref<1x1x32xf32, #tpu.memory_space<vmem>>, %arg14: memref<1x32x128xbf16, #tpu.memory_space<vmem>>, %arg15: memref<1x1x128xf32, #tpu.memory_space<vmem>>, %arg16: memref<1x128x32xbf16, #tpu.memory_space<vmem>>, %arg17: memref<1x1x32xf32, #tpu.memory_space<vmem>>, %arg18: memref<1x1x32xf32, #tpu.memory_space<vmem>>, %arg19: memref<1x1x32xf32, #tpu.memory_space<vmem>>, %arg20: memref<1x1x32xf32, #tpu.memory_space<vmem>>, %arg21: memref<1x1x32xf32, #tpu.memory_space<vmem>>, %arg22: memref<1x1x32xf32, #tpu.memory_space<vmem>>, %arg23: memref<1x1x32xf32, #tpu.memory_space<vmem>>, %arg24: memref<1x8x32xf32, #tpu.memory_space<vmem>>, %arg25: memref<8x32xf32, #tpu.memory_space<vmem>>, %arg26: memref<8x32xf32, #tpu.memory_space<vmem>>) attributes {dimension_semantics = [#tpu.dimension_semantics<parallel>, #tpu.dimension_semantics<arbitrary>], iteration_bounds = array<i64: 2, 2>, scalar_prefetch = 0 : i64, scratch_operands = 2 : i64, tpu.core_type = #tpu.core_type<tc>, window_params = [{transform_indices = @transform_0, window_bounds = array<i64: 1, 8, 32>}, {transform_indices = @transform_1, window_bounds = array<i64: 1, 4, 32>}, {transform_indices = @transform_2, window_bounds = array<i64: 1, 32, 96>}, {transform_indices = @transform_3, window_bounds = array<i64: 1, 1, 96>}, {transform_indices = @transform_4, window_bounds = array<i64: 1, 32, 32>}, {transform_indices = @transform_5, window_bounds = array<i64: 1, 1, 32>}, {transform_indices = @transform_6, window_bounds = array<i64: 1, 32, 32>}, {transform_indices = @transform_7, window_bounds = array<i64: 1, 1, 32>}, {transform_indices = @transform_8, window_bounds = array<i64: 1, 32, 64>}, {transform_indices = @transform_9, window_bounds = array<i64: 1, 1, 64>}, {transform_indices = @transform_10, window_bounds = array<i64: 1, 32, 32>}, {transform_indices = @transform_11, window_bounds = array<i64: 1, 1, 32>}, {transform_indices = @transform_12, window_bounds = array<i64: 1, 32, 128>}, {transform_indices = @transform_13, window_bounds = array<i64: 1, 1, 128>}, {transform_indices = @transform_14, window_bounds = array<i64: 1, 128, 32>}, {transform_indices = @transform_15, window_bounds = array<i64: 1, 1, 32>}, {transform_indices = @transform_16, window_bounds = array<i64: 1, 1, 32>}, {transform_indices = @transform_17, window_bounds = array<i64: 1, 1, 32>}, {transform_indices = @transform_18, window_bounds = array<i64: 1, 1, 32>}, {transform_indices = @transform_19, window_bounds = array<i64: 1, 1, 32>}, {transform_indices = @transform_20, window_bounds = array<i64: 1, 1, 32>}, {transform_indices = @transform_21, window_bounds = array<i64: 1, 1, 32>}, {transform_indices = @transform_22, window_bounds = array<i64: 1, 8, 32>}]} {
    %c0_i32 = arith.constant 0 : i32
    %0 = arith.cmpi eq, %arg1, %c0_i32 : i32
    %1 = arith.extui %0 : i1 to i32
    %c0_i32_0 = arith.constant 0 : i32
    %2 = arith.cmpi ne, %1, %c0_i32_0 : i32
    scf.if %2 {
      %c0_141 = arith.constant 0 : index
      %c0_142 = arith.constant 0 : index
      %c0_143 = arith.constant 0 : index
      %326 = vector.load %arg2[%c0_141, %c0_142, %c0_143] : memref<1x8x32xf32, #tpu.memory_space<vmem>>, vector<1x8x32xf32>
      %327 = vector.shape_cast %326 : vector<1x8x32xf32> to vector<8x32xf32>
      %c0_144 = arith.constant 0 : index
      %c0_145 = arith.constant 0 : index
      %328 = vector.load %arg25[%c0_144, %c0_145] : memref<8x32xf32, #tpu.memory_space<vmem>>, vector<8x32xf32>
      tpu.vector_store %arg25[%c0_144, %c0_145], %327 {strides = array<i32>} : memref<8x32xf32, #tpu.memory_space<vmem>>, vector<8x32xf32>,
    } else {
    }
    %c0 = arith.constant 0 : index
    %c0_1 = arith.constant 0 : index
    %3 = vector.load %arg25[%c0, %c0_1] : memref<8x32xf32, #tpu.memory_space<vmem>>, vector<8x32xf32>
    %c0_2 = arith.constant 0 : index
    %c0_3 = arith.constant 0 : index
    %c0_4 = arith.constant 0 : index
    %4 = vector.load %arg3[%c0_2, %c0_3, %c0_4] : memref<1x4x32xf32, #tpu.memory_space<vmem>>, vector<1x4x32xf32>
    %5 = vector.shape_cast %4 : vector<1x4x32xf32> to vector<4x32xf32>
    %6 = arith.truncf %5 : vector<4x32xf32> to vector<4x32xbf16>
    %7 = tpu.iota {dimensions = array<i32: 0>} : vector<8x8xi32>
    %8 = tpu.iota {dimensions = array<i32: 1>} : vector<8x8xi32>
    %9 = arith.cmpi sgt, %8, %7 : vector<8x8xi32>
    %cst = arith.constant -1.000000e+30 : f32
    %cst_5 = arith.constant 0.000000e+00 : f32
    %10 = vector.broadcast %cst : f32 to vector<8x8xf32>
    %11 = vector.broadcast %cst_5 : f32 to vector<8x8xf32>
    %12 = arith.select %9, %10, %11 : vector<8x8xi1>, vector<8x8xf32>
    %13 = arith.truncf %3 : vector<8x32xf32> to vector<8x32xbf16>
    %c0_6 = arith.constant 0 : index
    %c0_7 = arith.constant 0 : index
    %c0_8 = arith.constant 0 : index
    %14 = vector.load %arg4[%c0_6, %c0_7, %c0_8] : memref<1x32x96xbf16, #tpu.memory_space<vmem>>, vector<1x32x96xbf16>
    %15 = vector.shape_cast %14 : vector<1x32x96xbf16> to vector<32x96xbf16>
    %cst_9 = arith.constant dense<0.000000e+00> : vector<8x96xf32>
    %16 = tpu.matmul %13, %15, %cst_9 {dimension_numbers = #tpu.dot_dimension_numbers<[1], [0], [0], [1], [0, 0, 1, 1], [], []>} : vector<8x32xbf16>, vector<32x96xbf16>, vector<8x96xf32> -> vector<8x96xf32>
    %c0_10 = arith.constant 0 : index
    %c0_11 = arith.constant 0 : index
    %c0_12 = arith.constant 0 : index
    %17 = vector.load %arg5[%c0_10, %c0_11, %c0_12] : memref<1x1x96xf32, #tpu.memory_space<vmem>>, vector<1x1x96xf32>
    %18 = vector.shape_cast %17 : vector<1x1x96xf32> to vector<1x96xf32>
    %19 = vector.broadcast %18 : vector<1x96xf32> to vector<8x96xf32>
    %20 = arith.addf %16, %19 : vector<8x96xf32>
    %21 = vector.extract_strided_slice %20 {offsets = [0, 0], sizes = [8, 32], strides = [1, 1]} : vector<8x96xf32> to vector<8x32xf32>
    %22 = vector.extract_strided_slice %20 {offsets = [0, 32], sizes = [8, 32], strides = [1, 1]} : vector<8x96xf32> to vector<8x32xf32>
    %23 = vector.extract_strided_slice %20 {offsets = [0, 64], sizes = [8, 32], strides = [1, 1]} : vector<8x96xf32> to vector<8x32xf32>
    %24 = vector.extract_strided_slice %21 {offsets = [0, 0], sizes = [8, 8], strides = [1, 1]} : vector<8x32xf32> to vector<8x8xf32>
    %25 = arith.truncf %24 : vector<8x8xf32> to vector<8x8xbf16>
    %26 = vector.extract_strided_slice %22 {offsets = [0, 0], sizes = [8, 8], strides = [1, 1]} : vector<8x32xf32> to vector<8x8xf32>
    %27 = arith.truncf %26 : vector<8x8xf32> to vector<8x8xbf16>
    %28 = vector.extract_strided_slice %23 {offsets = [0, 0], sizes = [8, 8], strides = [1, 1]} : vector<8x32xf32> to vector<8x8xf32>
    %29 = arith.truncf %28 : vector<8x8xf32> to vector<8x8xbf16>
    %cst_13 = arith.constant dense<0.000000e+00> : vector<8x8xf32>
    %30 = tpu.matmul %25, %27, %cst_13 {dimension_numbers = #tpu.dot_dimension_numbers<[1], [1], [0], [0], [0, 0, 1, 0], [], []>} : vector<8x8xbf16>, vector<8x8xbf16>, vector<8x8xf32> -> vector<8x8xf32>
    %31 = arith.addf %30, %12 : vector<8x8xf32>
    %cst_14 = arith.constant dense<0xFF800000> : vector<8xf32>
    %32 = vector.multi_reduction <maximumf>, %31, %cst_14 [1] : vector<8x8xf32> to vector<8xf32>
    %33 = vector.shape_cast %32 : vector<8xf32> to vector<8x1xf32>
    %34 = vector.broadcast %33 : vector<8x1xf32> to vector<8x8xf32>
    %35 = arith.subf %31, %34 : vector<8x8xf32>
    %36 = math.exp %35 : vector<8x8xf32>
    %cst_15 = arith.constant dense<0.000000e+00> : vector<8xf32>
    %37 = vector.multi_reduction <add>, %36, %cst_15 [1] : vector<8x8xf32> to vector<8xf32>
    %38 = vector.shape_cast %37 : vector<8xf32> to vector<8x1xf32>
    %39 = tpu.reciprocal %38 {approx = true} : vector<8x1xf32> -> vector<8x1xf32>
    %40 = vector.broadcast %39 : vector<8x1xf32> to vector<8x8xf32>
    %41 = arith.mulf %36, %40 : vector<8x8xf32>
    %42 = arith.truncf %41 : vector<8x8xf32> to vector<8x8xbf16>
    %cst_16 = arith.constant dense<0.000000e+00> : vector<8x8xf32>
    %43 = tpu.matmul %42, %29, %cst_16 {dimension_numbers = #tpu.dot_dimension_numbers<[1], [0], [0], [1], [0, 0, 1, 1], [], []>} : vector<8x8xbf16>, vector<8x8xbf16>, vector<8x8xf32> -> vector<8x8xf32>
    %c0_17 = arith.constant 0 : index
    %c0_18 = arith.constant 0 : index
    %44 = vector.load %arg26[%c0_17, %c0_18] : memref<8x32xf32, #tpu.memory_space<vmem>>, vector<8x8xf32>
    tpu.vector_store %arg26[%c0_17, %c0_18], %43 {strides = array<i32>} : memref<8x32xf32, #tpu.memory_space<vmem>>, vector<8x8xf32>,
    %45 = vector.extract_strided_slice %21 {offsets = [0, 8], sizes = [8, 8], strides = [1, 1]} : vector<8x32xf32> to vector<8x8xf32>
    %46 = arith.truncf %45 : vector<8x8xf32> to vector<8x8xbf16>
    %47 = vector.extract_strided_slice %22 {offsets = [0, 8], sizes = [8, 8], strides = [1, 1]} : vector<8x32xf32> to vector<8x8xf32>
    %48 = arith.truncf %47 : vector<8x8xf32> to vector<8x8xbf16>
    %49 = vector.extract_strided_slice %23 {offsets = [0, 8], sizes = [8, 8], strides = [1, 1]} : vector<8x32xf32> to vector<8x8xf32>
    %50 = arith.truncf %49 : vector<8x8xf32> to vector<8x8xbf16>
    %cst_19 = arith.constant dense<0.000000e+00> : vector<8x8xf32>
    %51 = tpu.matmul %46, %48, %cst_19 {dimension_numbers = #tpu.dot_dimension_numbers<[1], [1], [0], [0], [0, 0, 1, 0], [], []>} : vector<8x8xbf16>, vector<8x8xbf16>, vector<8x8xf32> -> vector<8x8xf32>
    %52 = arith.addf %51, %12 : vector<8x8xf32>
    %cst_20 = arith.constant dense<0xFF800000> : vector<8xf32>
    %53 = vector.multi_reduction <maximumf>, %52, %cst_20 [1] : vector<8x8xf32> to vector<8xf32>
    %54 = vector.shape_cast %53 : vector<8xf32> to vector<8x1xf32>
    %55 = vector.broadcast %54 : vector<8x1xf32> to vector<8x8xf32>
    %56 = arith.subf %52, %55 : vector<8x8xf32>
    %57 = math.exp %56 : vector<8x8xf32>
    %cst_21 = arith.constant dense<0.000000e+00> : vector<8xf32>
    %58 = vector.multi_reduction <add>, %57, %cst_21 [1] : vector<8x8xf32> to vector<8xf32>
    %59 = vector.shape_cast %58 : vector<8xf32> to vector<8x1xf32>
    %60 = tpu.reciprocal %59 {approx = true} : vector<8x1xf32> -> vector<8x1xf32>
    %61 = vector.broadcast %60 : vector<8x1xf32> to vector<8x8xf32>
    %62 = arith.mulf %57, %61 : vector<8x8xf32>
    %63 = arith.truncf %62 : vector<8x8xf32> to vector<8x8xbf16>
    %cst_22 = arith.constant dense<0.000000e+00> : vector<8x8xf32>
    %64 = tpu.matmul %63, %50, %cst_22 {dimension_numbers = #tpu.dot_dimension_numbers<[1], [0], [0], [1], [0, 0, 1, 1], [], []>} : vector<8x8xbf16>, vector<8x8xbf16>, vector<8x8xf32> -> vector<8x8xf32>
    %c0_23 = arith.constant 0 : index
    %c8 = arith.constant 8 : index
    %65 = vector.load %arg26[%c0_23, %c8] : memref<8x32xf32, #tpu.memory_space<vmem>>, vector<8x8xf32>
    tpu.vector_store %arg26[%c0_23, %c8], %64 {strides = array<i32>} : memref<8x32xf32, #tpu.memory_space<vmem>>, vector<8x8xf32>,
    %66 = vector.extract_strided_slice %21 {offsets = [0, 16], sizes = [8, 8], strides = [1, 1]} : vector<8x32xf32> to vector<8x8xf32>
    %67 = arith.truncf %66 : vector<8x8xf32> to vector<8x8xbf16>
    %68 = vector.extract_strided_slice %22 {offsets = [0, 16], sizes = [8, 8], strides = [1, 1]} : vector<8x32xf32> to vector<8x8xf32>
    %69 = arith.truncf %68 : vector<8x8xf32> to vector<8x8xbf16>
    %70 = vector.extract_strided_slice %23 {offsets = [0, 16], sizes = [8, 8], strides = [1, 1]} : vector<8x32xf32> to vector<8x8xf32>
    %71 = arith.truncf %70 : vector<8x8xf32> to vector<8x8xbf16>
    %cst_24 = arith.constant dense<0.000000e+00> : vector<8x8xf32>
    %72 = tpu.matmul %67, %69, %cst_24 {dimension_numbers = #tpu.dot_dimension_numbers<[1], [1], [0], [0], [0, 0, 1, 0], [], []>} : vector<8x8xbf16>, vector<8x8xbf16>, vector<8x8xf32> -> vector<8x8xf32>
    %73 = arith.addf %72, %12 : vector<8x8xf32>
    %cst_25 = arith.constant dense<0xFF800000> : vector<8xf32>
    %74 = vector.multi_reduction <maximumf>, %73, %cst_25 [1] : vector<8x8xf32> to vector<8xf32>
    %75 = vector.shape_cast %74 : vector<8xf32> to vector<8x1xf32>
    %76 = vector.broadcast %75 : vector<8x1xf32> to vector<8x8xf32>
    %77 = arith.subf %73, %76 : vector<8x8xf32>
    %78 = math.exp %77 : vector<8x8xf32>
    %cst_26 = arith.constant dense<0.000000e+00> : vector<8xf32>
    %79 = vector.multi_reduction <add>, %78, %cst_26 [1] : vector<8x8xf32> to vector<8xf32>
    %80 = vector.shape_cast %79 : vector<8xf32> to vector<8x1xf32>
    %81 = tpu.reciprocal %80 {approx = true} : vector<8x1xf32> -> vector<8x1xf32>
    %82 = vector.broadcast %81 : vector<8x1xf32> to vector<8x8xf32>
    %83 = arith.mulf %78, %82 : vector<8x8xf32>
    %84 = arith.truncf %83 : vector<8x8xf32> to vector<8x8xbf16>
    %cst_27 = arith.constant dense<0.000000e+00> : vector<8x8xf32>
    %85 = tpu.matmul %84, %71, %cst_27 {dimension_numbers = #tpu.dot_dimension_numbers<[1], [0], [0], [1], [0, 0, 1, 1], [], []>} : vector<8x8xbf16>, vector<8x8xbf16>, vector<8x8xf32> -> vector<8x8xf32>
    %c0_28 = arith.constant 0 : index
    %c16 = arith.constant 16 : index
    %86 = vector.load %arg26[%c0_28, %c16] : memref<8x32xf32, #tpu.memory_space<vmem>>, vector<8x8xf32>
    tpu.vector_store %arg26[%c0_28, %c16], %85 {strides = array<i32>} : memref<8x32xf32, #tpu.memory_space<vmem>>, vector<8x8xf32>,
    %87 = vector.extract_strided_slice %21 {offsets = [0, 24], sizes = [8, 8], strides = [1, 1]} : vector<8x32xf32> to vector<8x8xf32>
    %88 = arith.truncf %87 : vector<8x8xf32> to vector<8x8xbf16>
    %89 = vector.extract_strided_slice %22 {offsets = [0, 24], sizes = [8, 8], strides = [1, 1]} : vector<8x32xf32> to vector<8x8xf32>
    %90 = arith.truncf %89 : vector<8x8xf32> to vector<8x8xbf16>
    %91 = vector.extract_strided_slice %23 {offsets = [0, 24], sizes = [8, 8], strides = [1, 1]} : vector<8x32xf32> to vector<8x8xf32>
    %92 = arith.truncf %91 : vector<8x8xf32> to vector<8x8xbf16>
    %cst_29 = arith.constant dense<0.000000e+00> : vector<8x8xf32>
    %93 = tpu.matmul %88, %90, %cst_29 {dimension_numbers = #tpu.dot_dimension_numbers<[1], [1], [0], [0], [0, 0, 1, 0], [], []>} : vector<8x8xbf16>, vector<8x8xbf16>, vector<8x8xf32> -> vector<8x8xf32>
    %94 = arith.addf %93, %12 : vector<8x8xf32>
    %cst_30 = arith.constant dense<0xFF800000> : vector<8xf32>
    %95 = vector.multi_reduction <maximumf>, %94, %cst_30 [1] : vector<8x8xf32> to vector<8xf32>
    %96 = vector.shape_cast %95 : vector<8xf32> to vector<8x1xf32>
    %97 = vector.broadcast %96 : vector<8x1xf32> to vector<8x8xf32>
    %98 = arith.subf %94, %97 : vector<8x8xf32>
    %99 = math.exp %98 : vector<8x8xf32>
    %cst_31 = arith.constant dense<0.000000e+00> : vector<8xf32>
    %100 = vector.multi_reduction <add>, %99, %cst_31 [1] : vector<8x8xf32> to vector<8xf32>
    %101 = vector.shape_cast %100 : vector<8xf32> to vector<8x1xf32>
    %102 = tpu.reciprocal %101 {approx = true} : vector<8x1xf32> -> vector<8x1xf32>
    %103 = vector.broadcast %102 : vector<8x1xf32> to vector<8x8xf32>
    %104 = arith.mulf %99, %103 : vector<8x8xf32>
    %105 = arith.truncf %104 : vector<8x8xf32> to vector<8x8xbf16>
    %cst_32 = arith.constant dense<0.000000e+00> : vector<8x8xf32>
    %106 = tpu.matmul %105, %92, %cst_32 {dimension_numbers = #tpu.dot_dimension_numbers<[1], [0], [0], [1], [0, 0, 1, 1], [], []>} : vector<8x8xbf16>, vector<8x8xbf16>, vector<8x8xf32> -> vector<8x8xf32>
    %c0_33 = arith.constant 0 : index
    %c24 = arith.constant 24 : index
    %107 = vector.load %arg26[%c0_33, %c24] : memref<8x32xf32, #tpu.memory_space<vmem>>, vector<8x8xf32>
    tpu.vector_store %arg26[%c0_33, %c24], %106 {strides = array<i32>} : memref<8x32xf32, #tpu.memory_space<vmem>>, vector<8x8xf32>,
    %c0_34 = arith.constant 0 : index
    %c0_35 = arith.constant 0 : index
    %108 = vector.load %arg26[%c0_34, %c0_35] : memref<8x32xf32, #tpu.memory_space<vmem>>, vector<8x32xf32>
    %109 = arith.truncf %108 : vector<8x32xf32> to vector<8x32xbf16>
    %c0_36 = arith.constant 0 : index
    %c0_37 = arith.constant 0 : index
    %c0_38 = arith.constant 0 : index
    %110 = vector.load %arg6[%c0_36, %c0_37, %c0_38] : memref<1x32x32xbf16, #tpu.memory_space<vmem>>, vector<1x32x32xbf16>
    %111 = vector.shape_cast %110 : vector<1x32x32xbf16> to vector<32x32xbf16>
    %cst_39 = arith.constant dense<0.000000e+00> : vector<8x32xf32>
    %112 = tpu.matmul %109, %111, %cst_39 {dimension_numbers = #tpu.dot_dimension_numbers<[1], [0], [0], [1], [0, 0, 1, 1], [], []>} : vector<8x32xbf16>, vector<32x32xbf16>, vector<8x32xf32> -> vector<8x32xf32>
    %c0_40 = arith.constant 0 : index
    %c0_41 = arith.constant 0 : index
    %c0_42 = arith.constant 0 : index
    %113 = vector.load %arg7[%c0_40, %c0_41, %c0_42] : memref<1x1x32xf32, #tpu.memory_space<vmem>>, vector<1x1x32xf32>
    %114 = vector.shape_cast %113 : vector<1x1x32xf32> to vector<1x32xf32>
    %115 = vector.broadcast %114 : vector<1x32xf32> to vector<8x32xf32>
    %116 = arith.addf %112, %115 : vector<8x32xf32>
    %117 = arith.addf %3, %116 : vector<8x32xf32>
    %c0_43 = arith.constant 0 : index
    %c0_44 = arith.constant 0 : index
    %c0_45 = arith.constant 0 : index
    %118 = vector.load %arg18[%c0_43, %c0_44, %c0_45] : memref<1x1x32xf32, #tpu.memory_space<vmem>>, vector<1x1x32xf32>
    %119 = vector.shape_cast %118 : vector<1x1x32xf32> to vector<1x32xf32>
    %c0_46 = arith.constant 0 : index
    %c0_47 = arith.constant 0 : index
    %c0_48 = arith.constant 0 : index
    %120 = vector.load %arg19[%c0_46, %c0_47, %c0_48] : memref<1x1x32xf32, #tpu.memory_space<vmem>>, vector<1x1x32xf32>
    %121 = vector.shape_cast %120 : vector<1x1x32xf32> to vector<1x32xf32>
    %cst_49 = arith.constant dense<0.000000e+00> : vector<8xf32>
    %122 = vector.multi_reduction <add>, %117, %cst_49 [1] : vector<8x32xf32> to vector<8xf32>
    %123 = vector.shape_cast %122 : vector<8xf32> to vector<8x1xf32>
    %cst_50 = arith.constant 3.200000e+01 : f32
    %124 = vector.broadcast %cst_50 : f32 to vector<8x1xf32>
    %125 = arith.divf %123, %124 : vector<8x1xf32>
    %126 = vector.broadcast %125 : vector<8x1xf32> to vector<8x32xf32>
    %127 = arith.subf %117, %126 : vector<8x32xf32>
    %128 = arith.mulf %127, %127 : vector<8x32xf32>
    %cst_51 = arith.constant dense<0.000000e+00> : vector<8xf32>
    %129 = vector.multi_reduction <add>, %128, %cst_51 [1] : vector<8x32xf32> to vector<8xf32>
    %130 = vector.shape_cast %129 : vector<8xf32> to vector<8x1xf32>
    %cst_52 = arith.constant 3.200000e+01 : f32
    %131 = vector.broadcast %cst_52 : f32 to vector<8x1xf32>
    %132 = arith.divf %130, %131 : vector<8x1xf32>
    %133 = vector.broadcast %125 : vector<8x1xf32> to vector<8x32xf32>
    %134 = arith.subf %117, %133 : vector<8x32xf32>
    %cst_53 = arith.constant 9.99999974E-6 : f32
    %135 = vector.broadcast %cst_53 : f32 to vector<8x1xf32>
    %136 = arith.addf %132, %135 : vector<8x1xf32>
    %137 = math.rsqrt %136 : vector<8x1xf32>
    %138 = vector.broadcast %137 : vector<8x1xf32> to vector<8x32xf32>
    %139 = arith.mulf %134, %138 : vector<8x32xf32>
    %140 = vector.broadcast %119 : vector<1x32xf32> to vector<8x32xf32>
    %141 = arith.mulf %139, %140 : vector<8x32xf32>
    %142 = vector.broadcast %121 : vector<1x32xf32> to vector<8x32xf32>
    %143 = arith.addf %141, %142 : vector<8x32xf32>
    %144 = arith.truncf %143 : vector<8x32xf32> to vector<8x32xbf16>
    %c0_54 = arith.constant 0 : index
    %c0_55 = arith.constant 0 : index
    %c0_56 = arith.constant 0 : index
    %145 = vector.load %arg8[%c0_54, %c0_55, %c0_56] : memref<1x32x32xbf16, #tpu.memory_space<vmem>>, vector<1x32x32xbf16>
    %146 = vector.shape_cast %145 : vector<1x32x32xbf16> to vector<32x32xbf16>
    %cst_57 = arith.constant dense<0.000000e+00> : vector<8x32xf32>
    %147 = tpu.matmul %144, %146, %cst_57 {dimension_numbers = #tpu.dot_dimension_numbers<[1], [0], [0], [1], [0, 0, 1, 1], [], []>} : vector<8x32xbf16>, vector<32x32xbf16>, vector<8x32xf32> -> vector<8x32xf32>
    %c0_58 = arith.constant 0 : index
    %c0_59 = arith.constant 0 : index
    %c0_60 = arith.constant 0 : index
    %148 = vector.load %arg9[%c0_58, %c0_59, %c0_60] : memref<1x1x32xf32, #tpu.memory_space<vmem>>, vector<1x1x32xf32>
    %149 = vector.shape_cast %148 : vector<1x1x32xf32> to vector<1x32xf32>
    %150 = vector.broadcast %149 : vector<1x32xf32> to vector<8x32xf32>
    %151 = arith.addf %147, %150 : vector<8x32xf32>
    %c0_61 = arith.constant 0 : index
    %c0_62 = arith.constant 0 : index
    %c0_63 = arith.constant 0 : index
    %152 = vector.load %arg10[%c0_61, %c0_62, %c0_63] : memref<1x32x64xbf16, #tpu.memory_space<vmem>>, vector<1x32x64xbf16>
    %153 = vector.shape_cast %152 : vector<1x32x64xbf16> to vector<32x64xbf16>
    %cst_64 = arith.constant dense<0.000000e+00> : vector<4x64xf32>
    %154 = tpu.matmul %6, %153, %cst_64 {dimension_numbers = #tpu.dot_dimension_numbers<[1], [0], [0], [1], [0, 0, 1, 1], [], []>} : vector<4x32xbf16>, vector<32x64xbf16>, vector<4x64xf32> -> vector<4x64xf32>
    %c0_65 = arith.constant 0 : index
    %c0_66 = arith.constant 0 : index
    %c0_67 = arith.constant 0 : index
    %155 = vector.load %arg11[%c0_65, %c0_66, %c0_67] : memref<1x1x64xf32, #tpu.memory_space<vmem>>, vector<1x1x64xf32>
    %156 = vector.shape_cast %155 : vector<1x1x64xf32> to vector<1x64xf32>
    %157 = vector.broadcast %156 : vector<1x64xf32> to vector<4x64xf32>
    %158 = arith.addf %154, %157 : vector<4x64xf32>
    %159 = vector.extract_strided_slice %158 {offsets = [0, 0], sizes = [4, 32], strides = [1, 1]} : vector<4x64xf32> to vector<4x32xf32>
    %160 = vector.extract_strided_slice %158 {offsets = [0, 32], sizes = [4, 32], strides = [1, 1]} : vector<4x64xf32> to vector<4x32xf32>
    %161 = vector.extract_strided_slice %151 {offsets = [0, 0], sizes = [8, 8], strides = [1, 1]} : vector<8x32xf32> to vector<8x8xf32>
    %162 = arith.truncf %161 : vector<8x8xf32> to vector<8x8xbf16>
    %163 = vector.extract_strided_slice %159 {offsets = [0, 0], sizes = [4, 8], strides = [1, 1]} : vector<4x32xf32> to vector<4x8xf32>
    %164 = arith.truncf %163 : vector<4x8xf32> to vector<4x8xbf16>
    %165 = vector.extract_strided_slice %160 {offsets = [0, 0], sizes = [4, 8], strides = [1, 1]} : vector<4x32xf32> to vector<4x8xf32>
    %166 = arith.truncf %165 : vector<4x8xf32> to vector<4x8xbf16>
    %cst_68 = arith.constant dense<0.000000e+00> : vector<8x4xf32>
    %167 = tpu.matmul %162, %164, %cst_68 {dimension_numbers = #tpu.dot_dimension_numbers<[1], [1], [0], [0], [0, 0, 1, 0], [], []>} : vector<8x8xbf16>, vector<4x8xbf16>, vector<8x4xf32> -> vector<8x4xf32>
    %cst_69 = arith.constant dense<0xFF800000> : vector<8xf32>
    %168 = vector.multi_reduction <maximumf>, %167, %cst_69 [1] : vector<8x4xf32> to vector<8xf32>
    %169 = vector.shape_cast %168 : vector<8xf32> to vector<8x1xf32>
    %170 = vector.broadcast %169 : vector<8x1xf32> to vector<8x4xf32>
    %171 = arith.subf %167, %170 : vector<8x4xf32>
    %172 = math.exp %171 : vector<8x4xf32>
    %cst_70 = arith.constant dense<0.000000e+00> : vector<8xf32>
    %173 = vector.multi_reduction <add>, %172, %cst_70 [1] : vector<8x4xf32> to vector<8xf32>
    %174 = vector.shape_cast %173 : vector<8xf32> to vector<8x1xf32>
    %175 = tpu.reciprocal %174 {approx = true} : vector<8x1xf32> -> vector<8x1xf32>
    %176 = vector.broadcast %175 : vector<8x1xf32> to vector<8x4xf32>
    %177 = arith.mulf %172, %176 : vector<8x4xf32>
    %178 = arith.truncf %177 : vector<8x4xf32> to vector<8x4xbf16>
    %cst_71 = arith.constant dense<0.000000e+00> : vector<8x8xf32>
    %179 = tpu.matmul %178, %166, %cst_71 {dimension_numbers = #tpu.dot_dimension_numbers<[1], [0], [0], [1], [0, 0, 1, 1], [], []>} : vector<8x4xbf16>, vector<4x8xbf16>, vector<8x8xf32> -> vector<8x8xf32>
    %c0_72 = arith.constant 0 : index
    %c0_73 = arith.constant 0 : index
    %180 = vector.load %arg26[%c0_72, %c0_73] : memref<8x32xf32, #tpu.memory_space<vmem>>, vector<8x8xf32>
    tpu.vector_store %arg26[%c0_72, %c0_73], %179 {strides = array<i32>} : memref<8x32xf32, #tpu.memory_space<vmem>>, vector<8x8xf32>,
    %181 = vector.extract_strided_slice %151 {offsets = [0, 8], sizes = [8, 8], strides = [1, 1]} : vector<8x32xf32> to vector<8x8xf32>
    %182 = arith.truncf %181 : vector<8x8xf32> to vector<8x8xbf16>
    %183 = vector.extract_strided_slice %159 {offsets = [0, 8], sizes = [4, 8], strides = [1, 1]} : vector<4x32xf32> to vector<4x8xf32>
    %184 = arith.truncf %183 : vector<4x8xf32> to vector<4x8xbf16>
    %185 = vector.extract_strided_slice %160 {offsets = [0, 8], sizes = [4, 8], strides = [1, 1]} : vector<4x32xf32> to vector<4x8xf32>
    %186 = arith.truncf %185 : vector<4x8xf32> to vector<4x8xbf16>
    %cst_74 = arith.constant dense<0.000000e+00> : vector<8x4xf32>
    %187 = tpu.matmul %182, %184, %cst_74 {dimension_numbers = #tpu.dot_dimension_numbers<[1], [1], [0], [0], [0, 0, 1, 0], [], []>} : vector<8x8xbf16>, vector<4x8xbf16>, vector<8x4xf32> -> vector<8x4xf32>
    %cst_75 = arith.constant dense<0xFF800000> : vector<8xf32>
    %188 = vector.multi_reduction <maximumf>, %187, %cst_75 [1] : vector<8x4xf32> to vector<8xf32>
    %189 = vector.shape_cast %188 : vector<8xf32> to vector<8x1xf32>
    %190 = vector.broadcast %189 : vector<8x1xf32> to vector<8x4xf32>
    %191 = arith.subf %187, %190 : vector<8x4xf32>
    %192 = math.exp %191 : vector<8x4xf32>
    %cst_76 = arith.constant dense<0.000000e+00> : vector<8xf32>
    %193 = vector.multi_reduction <add>, %192, %cst_76 [1] : vector<8x4xf32> to vector<8xf32>
    %194 = vector.shape_cast %193 : vector<8xf32> to vector<8x1xf32>
    %195 = tpu.reciprocal %194 {approx = true} : vector<8x1xf32> -> vector<8x1xf32>
    %196 = vector.broadcast %195 : vector<8x1xf32> to vector<8x4xf32>
    %197 = arith.mulf %192, %196 : vector<8x4xf32>
    %198 = arith.truncf %197 : vector<8x4xf32> to vector<8x4xbf16>
    %cst_77 = arith.constant dense<0.000000e+00> : vector<8x8xf32>
    %199 = tpu.matmul %198, %186, %cst_77 {dimension_numbers = #tpu.dot_dimension_numbers<[1], [0], [0], [1], [0, 0, 1, 1], [], []>} : vector<8x4xbf16>, vector<4x8xbf16>, vector<8x8xf32> -> vector<8x8xf32>
    %c0_78 = arith.constant 0 : index
    %c8_79 = arith.constant 8 : index
    %200 = vector.load %arg26[%c0_78, %c8_79] : memref<8x32xf32, #tpu.memory_space<vmem>>, vector<8x8xf32>
    tpu.vector_store %arg26[%c0_78, %c8_79], %199 {strides = array<i32>} : memref<8x32xf32, #tpu.memory_space<vmem>>, vector<8x8xf32>,
    %201 = vector.extract_strided_slice %151 {offsets = [0, 16], sizes = [8, 8], strides = [1, 1]} : vector<8x32xf32> to vector<8x8xf32>
    %202 = arith.truncf %201 : vector<8x8xf32> to vector<8x8xbf16>
    %203 = vector.extract_strided_slice %159 {offsets = [0, 16], sizes = [4, 8], strides = [1, 1]} : vector<4x32xf32> to vector<4x8xf32>
    %204 = arith.truncf %203 : vector<4x8xf32> to vector<4x8xbf16>
    %205 = vector.extract_strided_slice %160 {offsets = [0, 16], sizes = [4, 8], strides = [1, 1]} : vector<4x32xf32> to vector<4x8xf32>
    %206 = arith.truncf %205 : vector<4x8xf32> to vector<4x8xbf16>
    %cst_80 = arith.constant dense<0.000000e+00> : vector<8x4xf32>
    %207 = tpu.matmul %202, %204, %cst_80 {dimension_numbers = #tpu.dot_dimension_numbers<[1], [1], [0], [0], [0, 0, 1, 0], [], []>} : vector<8x8xbf16>, vector<4x8xbf16>, vector<8x4xf32> -> vector<8x4xf32>
    %cst_81 = arith.constant dense<0xFF800000> : vector<8xf32>
    %208 = vector.multi_reduction <maximumf>, %207, %cst_81 [1] : vector<8x4xf32> to vector<8xf32>
    %209 = vector.shape_cast %208 : vector<8xf32> to vector<8x1xf32>
    %210 = vector.broadcast %209 : vector<8x1xf32> to vector<8x4xf32>
    %211 = arith.subf %207, %210 : vector<8x4xf32>
    %212 = math.exp %211 : vector<8x4xf32>
    %cst_82 = arith.constant dense<0.000000e+00> : vector<8xf32>
    %213 = vector.multi_reduction <add>, %212, %cst_82 [1] : vector<8x4xf32> to vector<8xf32>
    %214 = vector.shape_cast %213 : vector<8xf32> to vector<8x1xf32>
    %215 = tpu.reciprocal %214 {approx = true} : vector<8x1xf32> -> vector<8x1xf32>
    %216 = vector.broadcast %215 : vector<8x1xf32> to vector<8x4xf32>
    %217 = arith.mulf %212, %216 : vector<8x4xf32>
    %218 = arith.truncf %217 : vector<8x4xf32> to vector<8x4xbf16>
    %cst_83 = arith.constant dense<0.000000e+00> : vector<8x8xf32>
    %219 = tpu.matmul %218, %206, %cst_83 {dimension_numbers = #tpu.dot_dimension_numbers<[1], [0], [0], [1], [0, 0, 1, 1], [], []>} : vector<8x4xbf16>, vector<4x8xbf16>, vector<8x8xf32> -> vector<8x8xf32>
    %c0_84 = arith.constant 0 : index
    %c16_85 = arith.constant 16 : index
    %220 = vector.load %arg26[%c0_84, %c16_85] : memref<8x32xf32, #tpu.memory_space<vmem>>, vector<8x8xf32>
    tpu.vector_store %arg26[%c0_84, %c16_85], %219 {strides = array<i32>} : memref<8x32xf32, #tpu.memory_space<vmem>>, vector<8x8xf32>,
    %221 = vector.extract_strided_slice %151 {offsets = [0, 24], sizes = [8, 8], strides = [1, 1]} : vector<8x32xf32> to vector<8x8xf32>
    %222 = arith.truncf %221 : vector<8x8xf32> to vector<8x8xbf16>
    %223 = vector.extract_strided_slice %159 {offsets = [0, 24], sizes = [4, 8], strides = [1, 1]} : vector<4x32xf32> to vector<4x8xf32>
    %224 = arith.truncf %223 : vector<4x8xf32> to vector<4x8xbf16>
    %225 = vector.extract_strided_slice %160 {offsets = [0, 24], sizes = [4, 8], strides = [1, 1]} : vector<4x32xf32> to vector<4x8xf32>
    %226 = arith.truncf %225 : vector<4x8xf32> to vector<4x8xbf16>
    %cst_86 = arith.constant dense<0.000000e+00> : vector<8x4xf32>
    %227 = tpu.matmul %222, %224, %cst_86 {dimension_numbers = #tpu.dot_dimension_numbers<[1], [1], [0], [0], [0, 0, 1, 0], [], []>} : vector<8x8xbf16>, vector<4x8xbf16>, vector<8x4xf32> -> vector<8x4xf32>
    %cst_87 = arith.constant dense<0xFF800000> : vector<8xf32>
    %228 = vector.multi_reduction <maximumf>, %227, %cst_87 [1] : vector<8x4xf32> to vector<8xf32>
    %229 = vector.shape_cast %228 : vector<8xf32> to vector<8x1xf32>
    %230 = vector.broadcast %229 : vector<8x1xf32> to vector<8x4xf32>
    %231 = arith.subf %227, %230 : vector<8x4xf32>
    %232 = math.exp %231 : vector<8x4xf32>
    %cst_88 = arith.constant dense<0.000000e+00> : vector<8xf32>
    %233 = vector.multi_reduction <add>, %232, %cst_88 [1] : vector<8x4xf32> to vector<8xf32>
    %234 = vector.shape_cast %233 : vector<8xf32> to vector<8x1xf32>
    %235 = tpu.reciprocal %234 {approx = true} : vector<8x1xf32> -> vector<8x1xf32>
    %236 = vector.broadcast %235 : vector<8x1xf32> to vector<8x4xf32>
    %237 = arith.mulf %232, %236 : vector<8x4xf32>
    %238 = arith.truncf %237 : vector<8x4xf32> to vector<8x4xbf16>
    %cst_89 = arith.constant dense<0.000000e+00> : vector<8x8xf32>
    %239 = tpu.matmul %238, %226, %cst_89 {dimension_numbers = #tpu.dot_dimension_numbers<[1], [0], [0], [1], [0, 0, 1, 1], [], []>} : vector<8x4xbf16>, vector<4x8xbf16>, vector<8x8xf32> -> vector<8x8xf32>
    %c0_90 = arith.constant 0 : index
    %c24_91 = arith.constant 24 : index
    %240 = vector.load %arg26[%c0_90, %c24_91] : memref<8x32xf32, #tpu.memory_space<vmem>>, vector<8x8xf32>
    tpu.vector_store %arg26[%c0_90, %c24_91], %239 {strides = array<i32>} : memref<8x32xf32, #tpu.memory_space<vmem>>, vector<8x8xf32>,
    %c0_92 = arith.constant 0 : index
    %c0_93 = arith.constant 0 : index
    %241 = vector.load %arg26[%c0_92, %c0_93] : memref<8x32xf32, #tpu.memory_space<vmem>>, vector<8x32xf32>
    %242 = arith.truncf %241 : vector<8x32xf32> to vector<8x32xbf16>
    %c0_94 = arith.constant 0 : index
    %c0_95 = arith.constant 0 : index
    %c0_96 = arith.constant 0 : index
    %243 = vector.load %arg12[%c0_94, %c0_95, %c0_96] : memref<1x32x32xbf16, #tpu.memory_space<vmem>>, vector<1x32x32xbf16>
    %244 = vector.shape_cast %243 : vector<1x32x32xbf16> to vector<32x32xbf16>
    %cst_97 = arith.constant dense<0.000000e+00> : vector<8x32xf32>
    %245 = tpu.matmul %242, %244, %cst_97 {dimension_numbers = #tpu.dot_dimension_numbers<[1], [0], [0], [1], [0, 0, 1, 1], [], []>} : vector<8x32xbf16>, vector<32x32xbf16>, vector<8x32xf32> -> vector<8x32xf32>
    %c0_98 = arith.constant 0 : index
    %c0_99 = arith.constant 0 : index
    %c0_100 = arith.constant 0 : index
    %246 = vector.load %arg13[%c0_98, %c0_99, %c0_100] : memref<1x1x32xf32, #tpu.memory_space<vmem>>, vector<1x1x32xf32>
    %247 = vector.shape_cast %246 : vector<1x1x32xf32> to vector<1x32xf32>
    %248 = vector.broadcast %247 : vector<1x32xf32> to vector<8x32xf32>
    %249 = arith.addf %245, %248 : vector<8x32xf32>
    %250 = arith.addf %143, %249 : vector<8x32xf32>
    %c0_101 = arith.constant 0 : index
    %c0_102 = arith.constant 0 : index
    %c0_103 = arith.constant 0 : index
    %251 = vector.load %arg20[%c0_101, %c0_102, %c0_103] : memref<1x1x32xf32, #tpu.memory_space<vmem>>, vector<1x1x32xf32>
    %252 = vector.shape_cast %251 : vector<1x1x32xf32> to vector<1x32xf32>
    %c0_104 = arith.constant 0 : index
    %c0_105 = arith.constant 0 : index
    %c0_106 = arith.constant 0 : index
    %253 = vector.load %arg21[%c0_104, %c0_105, %c0_106] : memref<1x1x32xf32, #tpu.memory_space<vmem>>, vector<1x1x32xf32>
    %254 = vector.shape_cast %253 : vector<1x1x32xf32> to vector<1x32xf32>
    %cst_107 = arith.constant dense<0.000000e+00> : vector<8xf32>
    %255 = vector.multi_reduction <add>, %250, %cst_107 [1] : vector<8x32xf32> to vector<8xf32>
    %256 = vector.shape_cast %255 : vector<8xf32> to vector<8x1xf32>
    %cst_108 = arith.constant 3.200000e+01 : f32
    %257 = vector.broadcast %cst_108 : f32 to vector<8x1xf32>
    %258 = arith.divf %256, %257 : vector<8x1xf32>
    %259 = vector.broadcast %258 : vector<8x1xf32> to vector<8x32xf32>
    %260 = arith.subf %250, %259 : vector<8x32xf32>
    %261 = arith.mulf %260, %260 : vector<8x32xf32>
    %cst_109 = arith.constant dense<0.000000e+00> : vector<8xf32>
    %262 = vector.multi_reduction <add>, %261, %cst_109 [1] : vector<8x32xf32> to vector<8xf32>
    %263 = vector.shape_cast %262 : vector<8xf32> to vector<8x1xf32>
    %cst_110 = arith.constant 3.200000e+01 : f32
    %264 = vector.broadcast %cst_110 : f32 to vector<8x1xf32>
    %265 = arith.divf %263, %264 : vector<8x1xf32>
    %266 = vector.broadcast %258 : vector<8x1xf32> to vector<8x32xf32>
    %267 = arith.subf %250, %266 : vector<8x32xf32>
    %cst_111 = arith.constant 9.99999974E-6 : f32
    %268 = vector.broadcast %cst_111 : f32 to vector<8x1xf32>
    %269 = arith.addf %265, %268 : vector<8x1xf32>
    %270 = math.rsqrt %269 : vector<8x1xf32>
    %271 = vector.broadcast %270 : vector<8x1xf32> to vector<8x32xf32>
    %272 = arith.mulf %267, %271 : vector<8x32xf32>
    %273 = vector.broadcast %252 : vector<1x32xf32> to vector<8x32xf32>
    %274 = arith.mulf %272, %273 : vector<8x32xf32>
    %275 = vector.broadcast %254 : vector<1x32xf32> to vector<8x32xf32>
    %276 = arith.addf %274, %275 : vector<8x32xf32>
    %277 = arith.truncf %276 : vector<8x32xf32> to vector<8x32xbf16>
    %c0_112 = arith.constant 0 : index
    %c0_113 = arith.constant 0 : index
    %c0_114 = arith.constant 0 : index
    %278 = vector.load %arg14[%c0_112, %c0_113, %c0_114] : memref<1x32x128xbf16, #tpu.memory_space<vmem>>, vector<1x32x128xbf16>
    %279 = vector.shape_cast %278 : vector<1x32x128xbf16> to vector<32x128xbf16>
    %cst_115 = arith.constant dense<0.000000e+00> : vector<8x128xf32>
    %280 = tpu.matmul %277, %279, %cst_115 {dimension_numbers = #tpu.dot_dimension_numbers<[1], [0], [0], [1], [0, 0, 1, 1], [], []>} : vector<8x32xbf16>, vector<32x128xbf16>, vector<8x128xf32> -> vector<8x128xf32>
    %c0_116 = arith.constant 0 : index
    %c0_117 = arith.constant 0 : index
    %c0_118 = arith.constant 0 : index
    %281 = vector.load %arg15[%c0_116, %c0_117, %c0_118] : memref<1x1x128xf32, #tpu.memory_space<vmem>>, vector<1x1x128xf32>
    %282 = vector.shape_cast %281 : vector<1x1x128xf32> to vector<1x128xf32>
    %283 = vector.broadcast %282 : vector<1x128xf32> to vector<8x128xf32>
    %284 = arith.addf %280, %283 : vector<8x128xf32>
    %cst_119 = arith.constant 0.000000e+00 : f32
    %285 = vector.broadcast %cst_119 : f32 to vector<8x128xf32>
    %286 = arith.maximumf %284, %285 : vector<8x128xf32>
    %287 = arith.truncf %286 : vector<8x128xf32> to vector<8x128xbf16>
    %c0_120 = arith.constant 0 : index
    %c0_121 = arith.constant 0 : index
    %c0_122 = arith.constant 0 : index
    %288 = vector.load %arg16[%c0_120, %c0_121, %c0_122] : memref<1x128x32xbf16, #tpu.memory_space<vmem>>, vector<1x128x32xbf16>
    %289 = vector.shape_cast %288 : vector<1x128x32xbf16> to vector<128x32xbf16>
    %cst_123 = arith.constant dense<0.000000e+00> : vector<8x32xf32>
    %290 = tpu.matmul %287, %289, %cst_123 {dimension_numbers = #tpu.dot_dimension_numbers<[1], [0], [0], [1], [0, 0, 1, 1], [], []>} : vector<8x128xbf16>, vector<128x32xbf16>, vector<8x32xf32> -> vector<8x32xf32>
    %c0_124 = arith.constant 0 : index
    %c0_125 = arith.constant 0 : index
    %c0_126 = arith.constant 0 : index
    %291 = vector.load %arg17[%c0_124, %c0_125, %c0_126] : memref<1x1x32xf32, #tpu.memory_space<vmem>>, vector<1x1x32xf32>
    %292 = vector.shape_cast %291 : vector<1x1x32xf32> to vector<1x32xf32>
    %293 = vector.broadcast %292 : vector<1x32xf32> to vector<8x32xf32>
    %294 = arith.addf %290, %293 : vector<8x32xf32>
    %295 = arith.addf %276, %294 : vector<8x32xf32>
    %c0_127 = arith.constant 0 : index
    %c0_128 = arith.constant 0 : index
    %c0_129 = arith.constant 0 : index
    %296 = vector.load %arg22[%c0_127, %c0_128, %c0_129] : memref<1x1x32xf32, #tpu.memory_space<vmem>>, vector<1x1x32xf32>
    %297 = vector.shape_cast %296 : vector<1x1x32xf32> to vector<1x32xf32>
    %c0_130 = arith.constant 0 : index
    %c0_131 = arith.constant 0 : index
    %c0_132 = arith.constant 0 : index
    %298 = vector.load %arg23[%c0_130, %c0_131, %c0_132] : memref<1x1x32xf32, #tpu.memory_space<vmem>>, vector<1x1x32xf32>
    %299 = vector.shape_cast %298 : vector<1x1x32xf32> to vector<1x32xf32>
    %cst_133 = arith.constant dense<0.000000e+00> : vector<8xf32>
    %300 = vector.multi_reduction <add>, %295, %cst_133 [1] : vector<8x32xf32> to vector<8xf32>
    %301 = vector.shape_cast %300 : vector<8xf32> to vector<8x1xf32>
    %cst_134 = arith.constant 3.200000e+01 : f32
    %302 = vector.broadcast %cst_134 : f32 to vector<8x1xf32>
    %303 = arith.divf %301, %302 : vector<8x1xf32>
    %304 = vector.broadcast %303 : vector<8x1xf32> to vector<8x32xf32>
    %305 = arith.subf %295, %304 : vector<8x32xf32>
    %306 = arith.mulf %305, %305 : vector<8x32xf32>
    %cst_135 = arith.constant dense<0.000000e+00> : vector<8xf32>
    %307 = vector.multi_reduction <add>, %306, %cst_135 [1] : vector<8x32xf32> to vector<8xf32>
    %308 = vector.shape_cast %307 : vector<8xf32> to vector<8x1xf32>
    %cst_136 = arith.constant 3.200000e+01 : f32
    %309 = vector.broadcast %cst_136 : f32 to vector<8x1xf32>
    %310 = arith.divf %308, %309 : vector<8x1xf32>
    %311 = vector.broadcast %303 : vector<8x1xf32> to vector<8x32xf32>
    %312 = arith.subf %295, %311 : vector<8x32xf32>
    %cst_137 = arith.constant 9.99999974E-6 : f32
    %313 = vector.broadcast %cst_137 : f32 to vector<8x1xf32>
    %314 = arith.addf %310, %313 : vector<8x1xf32>
    %315 = math.rsqrt %314 : vector<8x1xf32>
    %316 = vector.broadcast %315 : vector<8x1xf32> to vector<8x32xf32>
    %317 = arith.mulf %312, %316 : vector<8x32xf32>
    %318 = vector.broadcast %297 : vector<1x32xf32> to vector<8x32xf32>
    %319 = arith.mulf %317, %318 : vector<8x32xf32>
    %320 = vector.broadcast %299 : vector<1x32xf32> to vector<8x32xf32>
    %321 = arith.addf %319, %320 : vector<8x32xf32>
    %c0_138 = arith.constant 0 : index
    %c0_139 = arith.constant 0 : index
    %322 = vector.load %arg25[%c0_138, %c0_139] : memref<8x32xf32, #tpu.memory_space<vmem>>, vector<8x32xf32>
    tpu.vector_store %arg25[%c0_138, %c0_139], %321 {strides = array<i32>} : memref<8x32xf32, #tpu.memory_space<vmem>>, vector<8x32xf32>,
    %c1_i32 = arith.constant 1 : i32
    %323 = arith.cmpi eq, %arg1, %c1_i32 : i32
    %324 = arith.extui %323 : i1 to i32
    %c0_i32_140 = arith.constant 0 : i32
    %325 = arith.cmpi ne, %324, %c0_i32_140 : i32
    scf.if %325 {
      %c0_141 = arith.constant 0 : index
      %c0_142 = arith.constant 0 : index
      %c0_143 = arith.constant 0 : index
      %326 = vector.load %arg24[%c0_141, %c0_142, %c0_143] : memref<1x8x32xf32, #tpu.memory_space<vmem>>, vector<1x8x32xf32>
      %327 = vector.shape_cast %326 : vector<1x8x32xf32> to vector<8x32xf32>
      %328 = vector.shape_cast %321 : vector<8x32xf32> to vector<1x8x32xf32>
      tpu.vector_store %arg24[%c0_141, %c0_142, %c0_143], %328 {strides = array<i32>} : memref<1x8x32xf32, #tpu.memory_space<vmem>>, vector<1x8x32xf32>,
    } else {
    }
    return
  }
  func.func @transform_0(%arg0: i32, %arg1: i32) -> (i32, i32, i32) {
    %c0_i32 = arith.constant 0 : i32
    %c0_i32_0 = arith.constant 0 : i32
    %c0_i32_1 = arith.constant 0 : i32
    return %arg0, %c0_i32, %c0_i32_0 : i32, i32, i32
  }
  func.func @transform_1(%arg0: i32, %arg1: i32) -> (i32, i32, i32) {
    %c0_i32 = arith.constant 0 : i32
    %c0_i32_0 = arith.constant 0 : i32
    %c0_i32_1 = arith.constant 0 : i32
    return %arg0, %c0_i32, %c0_i32_0 : i32, i32, i32
  }
  func.func @transform_2(%arg0: i32, %arg1: i32) -> (i32, i32, i32) {
    %c0_i32 = arith.constant 0 : i32
    %c0_i32_0 = arith.constant 0 : i32
    %c0_i32_1 = arith.constant 0 : i32
    return %arg1, %c0_i32, %c0_i32_0 : i32, i32, i32
  }
  func.func @transform_3(%arg0: i32, %arg1: i32) -> (i32, i32, i32) {
    %c0_i32 = arith.constant 0 : i32
    %c0_i32_0 = arith.constant 0 : i32
    %c0_i32_1 = arith.constant 0 : i32
    return %arg1, %c0_i32, %c0_i32_0 : i32, i32, i32
  }
  func.func @transform_4(%arg0: i32, %arg1: i32) -> (i32, i32, i32) {
    %c0_i32 = arith.constant 0 : i32
    %c0_i32_0 = arith.constant 0 : i32
    %c0_i32_1 = arith.constant 0 : i32
    return %arg1, %c0_i32, %c0_i32_0 : i32, i32, i32
  }
  func.func @transform_5(%arg0: i32, %arg1: i32) -> (i32, i32, i32) {
    %c0_i32 = arith.constant 0 : i32
    %c0_i32_0 = arith.constant 0 : i32
    %c0_i32_1 = arith.constant 0 : i32
    return %arg1, %c0_i32, %c0_i32_0 : i32, i32, i32
  }
  func.func @transform_6(%arg0: i32, %arg1: i32) -> (i32, i32, i32) {
    %c0_i32 = arith.constant 0 : i32
    %c0_i32_0 = arith.constant 0 : i32
    %c0_i32_1 = arith.constant 0 : i32
    return %arg1, %c0_i32, %c0_i32_0 : i32, i32, i32
  }
  func.func @transform_7(%arg0: i32, %arg1: i32) -> (i32, i32, i32) {
    %c0_i32 = arith.constant 0 : i32
    %c0_i32_0 = arith.constant 0 : i32
    %c0_i32_1 = arith.constant 0 : i32
    return %arg1, %c0_i32, %c0_i32_0 : i32, i32, i32
  }
  func.func @transform_8(%arg0: i32, %arg1: i32) -> (i32, i32, i32) {
    %c0_i32 = arith.constant 0 : i32
    %c0_i32_0 = arith.constant 0 : i32
    %c0_i32_1 = arith.constant 0 : i32
    return %arg1, %c0_i32, %c0_i32_0 : i32, i32, i32
  }
  func.func @transform_9(%arg0: i32, %arg1: i32) -> (i32, i32, i32) {
    %c0_i32 = arith.constant 0 : i32
    %c0_i32_0 = arith.constant 0 : i32
    %c0_i32_1 = arith.constant 0 : i32
    return %arg1, %c0_i32, %c0_i32_0 : i32, i32, i32
  }
  func.func @transform_10(%arg0: i32, %arg1: i32) -> (i32, i32, i32) {
    %c0_i32 = arith.constant 0 : i32
    %c0_i32_0 = arith.constant 0 : i32
    %c0_i32_1 = arith.constant 0 : i32
    return %arg1, %c0_i32, %c0_i32_0 : i32, i32, i32
  }
  func.func @transform_11(%arg0: i32, %arg1: i32) -> (i32, i32, i32) {
    %c0_i32 = arith.constant 0 : i32
    %c0_i32_0 = arith.constant 0 : i32
    %c0_i32_1 = arith.constant 0 : i32
    return %arg1, %c0_i32, %c0_i32_0 : i32, i32, i32
  }
  func.func @transform_12(%arg0: i32, %arg1: i32) -> (i32, i32, i32) {
    %c0_i32 = arith.constant 0 : i32
    %c0_i32_0 = arith.constant 0 : i32
    %c0_i32_1 = arith.constant 0 : i32
    return %arg1, %c0_i32, %c0_i32_0 : i32, i32, i32
  }
  func.func @transform_13(%arg0: i32, %arg1: i32) -> (i32, i32, i32) {
    %c0_i32 = arith.constant 0 : i32
    %c0_i32_0 = arith.constant 0 : i32
    %c0_i32_1 = arith.constant 0 : i32
    return %arg1, %c0_i32, %c0_i32_0 : i32, i32, i32
  }
  func.func @transform_14(%arg0: i32, %arg1: i32) -> (i32, i32, i32) {
    %c0_i32 = arith.constant 0 : i32
    %c0_i32_0 = arith.constant 0 : i32
    %c0_i32_1 = arith.constant 0 : i32
    return %arg1, %c0_i32, %c0_i32_0 : i32, i32, i32
  }
  func.func @transform_15(%arg0: i32, %arg1: i32) -> (i32, i32, i32) {
    %c0_i32 = arith.constant 0 : i32
    %c0_i32_0 = arith.constant 0 : i32
    %c0_i32_1 = arith.constant 0 : i32
    return %arg1, %c0_i32, %c0_i32_0 : i32, i32, i32
  }
  func.func @transform_16(%arg0: i32, %arg1: i32) -> (i32, i32, i32) {
    %c0_i32 = arith.constant 0 : i32
    %c0_i32_0 = arith.constant 0 : i32
    %c0_i32_1 = arith.constant 0 : i32
    return %arg1, %c0_i32, %c0_i32_0 : i32, i32, i32
  }
  func.func @transform_17(%arg0: i32, %arg1: i32) -> (i32, i32, i32) {
    %c0_i32 = arith.constant 0 : i32
    %c0_i32_0 = arith.constant 0 : i32
    %c0_i32_1 = arith.constant 0 : i32
    return %arg1, %c0_i32, %c0_i32_0 : i32, i32, i32
  }
  func.func @transform_18(%arg0: i32, %arg1: i32) -> (i32, i32, i32) {
    %c0_i32 = arith.constant 0 : i32
    %c0_i32_0 = arith.constant 0 : i32
    %c0_i32_1 = arith.constant 0 : i32
    return %arg1, %c0_i32, %c0_i32_0 : i32, i32, i32
  }
  func.func @transform_19(%arg0: i32, %arg1: i32) -> (i32, i32, i32) {
    %c0_i32 = arith.constant 0 : i32
    %c0_i32_0 = arith.constant 0 : i32
    %c0_i32_1 = arith.constant 0 : i32
    return %arg1, %c0_i32, %c0_i32_0 : i32, i32, i32
  }
  func.func @transform_20(%arg0: i32, %arg1: i32) -> (i32, i32, i32) {
    %c0_i32 = arith.constant 0 : i32
    %c0_i32_0 = arith.constant 0 : i32
    %c0_i32_1 = arith.constant 0 : i32
    return %arg1, %c0_i32, %c0_i32_0 : i32, i32, i32
  }
  func.func @transform_21(%arg0: i32, %arg1: i32) -> (i32, i32, i32) {
    %c0_i32 = arith.constant 0 : i32
    %c0_i32_0 = arith.constant 0 : i32
    %c0_i32_1 = arith.constant 0 : i32
    return %arg1, %c0_i32, %c0_i32_0 : i32, i32, i32
  }
  func.func @transform_22(%arg0: i32, %arg1: i32) -> (i32, i32, i32) {
    %c0_i32 = arith.constant 0 : i32
    %c0_i32_0 = arith.constant 0 : i32
    %c0_i32_1 = arith.constant 0 : i32
    return %arg0, %c0_i32, %c0_i32_0 : i32, i32, i32
  }
}

</mosaic_0001>

<bundles_post_ra>
// kernel: decoder_forward.3
= control target key start
LH: loop header
LB: loop body
LE: loop exit
PB: predicated region body
PF: predicated region fallthrough
CT: control target
= control target key end

     0   :  { %12 = vsyncpa [#allocation3], 0  ;;  %s729_s0 = inlined_call_operand.hbm [shape: f32[8,32], index: 0, kind: input, shape index: {}]   ;;  %s730_s1 = inlined_call_operand.hbm [shape: bf16[32,16], index: 1, kind: input, shape index: {}]   ;;  %s731_s2 = inlined_call_operand.hbm [shape: f32[1,16], index: 2, kind: input, shape index: {}]   ;;  %s732_s3 = inlined_call_operand.hbm [shape: bf16[16,16], index: 3, kind: input, shape index: {}]   ;;  %s733_s4 = inlined_call_operand.hbm [shape: f32[1,16], index: 4, kind: input, shape index: {}]   ;;  %s734_s5 = inlined_call_operand.hbm [shape: bf16[16,128], index: 5, kind: input, shape index: {}]   ;;  %s735_s6 = inlined_call_operand.hbm [shape: f32[1,128], index: 6, kind: input, shape index: {}]   ;;  %s736_s7 = inlined_call_operand.hbm [shape: f32[8,128], index: 7, kind: output, shape index: {}]  }
   0x1   :  { %13 = vsyncpa [#allocation6], 0 }
   0x2   :  { %14 = vsyncpa [#allocation9], 0 }
   0x3   :  { %15 = vsyncpa [#allocation12], 0 }
   0x4   :  { %16 = vsyncpa [#allocation4], 0  ;;  %s567_s24 = smov [#allocation5]   ;;  %s381_s28 = scalar_lea.hbm %s730_s1, 256 }
   0x5   :  { %s32_s25 = sshll.u32 %s567_s24, 4  ;;  %p382_p0 = scmp.ne.s32.totalorder %s730_s1, %s381_s28  ;;  %s33_s25 = int_to_ptr.vmem [resolvable:$true] %s32_s25 }
   0x6   :  { %p385_p1 = scmp.lt.u32.totalorder %s381_s28, %s730_s1 }
   0x8   :  { %p387_p2 = pnand %p385_p1, %p382_p0 }
   0xa   :  { %390 = shalt.err (!%p387_p2)
}
   0xb   :  { %s391_s10 = scalar_lea.vmem %s33_s25, 256  ;;  %p396_p4 = scmp.lt.s32.totalorder %s33_s25, %s33_s25 }
   0xc   :  { %p392_p3 = scmp.ne.s32.totalorder %s33_s25, %s391_s10  ;;  %p397_p5 = scmp.lt.s32.totalorder %s391_s10, %s391_s10 }
   0xe   :  { %p398_p6 = por %p397_p5, %p396_p4 }
  0x10   :  { %p399_p7 = pnand %p398_p6, %p392_p3 }
  0x12   :  { %402 = shalt.err (!%p399_p7)
}
  0x13   :  { %s568_s11 = smov 64   ;;  %s569_s12 = smov 4  }
  0x14   :  { %38 = dma.hbm_to_vmem [thread:$0]  %s730_s1, 256, %s33_s25, [#allocation6], %s568_s11, %s568_s11, %s569_s12  }
  0x15   :  { %s570_s15 = smov [#allocation8]   ;;  %s571_s17 = smov [#allocation11]  }
  0x16   :  { %s54_s16 = sshll.u32 %s570_s15, 4  ;;  %s76_s18 = sshll.u32 %s571_s17, 4  ;;  %s55_s16 = int_to_ptr.vmem [resolvable:$true] %s54_s16  ;;  %s77_s18 = int_to_ptr.vmem [resolvable:$true] %s76_s18 }
  0x17   :  { %s403_s21 = scalar_lea.hbm %s732_s3, 128 }
  0x18   :  { %p404_p8 = scmp.ne.s32.totalorder %s732_s3, %s403_s21  ;;  %p407_p9 = scmp.lt.u32.totalorder %s403_s21, %s732_s3 }
  0x1a   :  { %p409_p10 = pnand %p407_p9, %p404_p8 }
  0x1c   :  { %412 = shalt.err (!%p409_p10)
}
  0x1d   :  { %s413_s1 = scalar_lea.vmem %s55_s16, 128  ;;  %p418_p12 = scmp.lt.s32.totalorder %s55_s16, %s55_s16 }
  0x1e   :  { %p414_p11 = scmp.ne.s32.totalorder %s55_s16, %s413_s1  ;;  %p419_p13 = scmp.lt.s32.totalorder %s413_s1, %s413_s1 }
  0x20   :  { %p420_p0 = por %p419_p13, %p418_p12 }
  0x22   :  { %p421_p1 = pnand %p420_p0, %p414_p11 }
  0x24   :  { %424 = shalt.err (!%p421_p1)
}
  0x25   :  { %60 = dma.hbm_to_vmem [thread:$0]  %s732_s3, 128, %s55_s16, [#allocation9], %s568_s11, %s568_s11, %s569_s12  }
  0x26   :  { %s425_s30 = scalar_lea.hbm %s734_s5, 128 }
  0x27   :  { %p426_p2 = scmp.ne.s32.totalorder %s734_s5, %s425_s30  ;;  %p429_p3 = scmp.lt.u32.totalorder %s425_s30, %s734_s5 }
  0x29   :  { %p431_p4 = pnand %p429_p3, %p426_p2 }
  0x2b   :  { %434 = shalt.err (!%p431_p4)
}
  0x2c   :  { %s435_s14 = scalar_lea.vmem %s77_s18, 128  ;;  %p440_p6 = scmp.lt.s32.totalorder %s77_s18, %s77_s18 }
  0x2d   :  { %p436_p5 = scmp.ne.s32.totalorder %s77_s18, %s435_s14  ;;  %p441_p7 = scmp.lt.s32.totalorder %s435_s14, %s435_s14 }
  0x2f   :  { %p442_p8 = por %p441_p7, %p440_p6 }
  0x31   :  { %p443_p9 = pnand %p442_p8, %p436_p5 }
  0x33   :  { %446 = shalt.err (!%p443_p9)
}
  0x34   :  { %82 = dma.hbm_to_vmem [thread:$0]  %s734_s5, 128, %s77_s18, [#allocation12], %s568_s11, %s568_s11, %s569_s12  }
  0x35   :  { %s572_s16 = smov [#allocation2]   ;;  %s573_s19 = smov [#allocation7]  }
  0x36   :  { %s23_s17 = sshll.u32 %s572_s16, 4  ;;  %s45_s20 = sshll.u32 %s573_s19, 4  ;;  %s24_s17 = int_to_ptr.vmem [resolvable:$true] %s23_s17  ;;  %s46_s20 = int_to_ptr.vmem [resolvable:$true] %s45_s20 }
  0x37   :  { %s447_s23 = scalar_lea.hbm %s729_s0, 128 }
  0x38   :  { %p448_p10 = scmp.ne.s32.totalorder %s729_s0, %s447_s23  ;;  %p451_p11 = scmp.lt.u32.totalorder %s447_s23, %s729_s0 }
  0x3a   :  { %p453_p12 = pnand %p451_p11, %p448_p10 }
  0x3c   :  { %456 = shalt.err (!%p453_p12)
}
  0x3d   :  { %s457_s5 = scalar_lea.vmem %s24_s17, 128  ;;  %p462_p0 = scmp.lt.s32.totalorder %s24_s17, %s24_s17 }
  0x3e   :  { %p458_p13 = scmp.ne.s32.totalorder %s24_s17, %s457_s5  ;;  %p463_p1 = scmp.lt.s32.totalorder %s457_s5, %s457_s5 }
  0x40   :  { %p464_p2 = por %p463_p1, %p462_p0 }
  0x42   :  { %p465_p3 = pnand %p464_p2, %p458_p13 }
  0x44   :  { %468 = shalt.err (!%p465_p3)
}
  0x45   :  { %26 = dma.hbm_to_vmem [thread:$0]  %s729_s0, 128, %s24_s17, [#allocation3]  }
  0x46   :  { %s469_s28 = scalar_lea.hbm %s731_s2, 16 }
  0x47   :  { %p470_p4 = scmp.ne.s32.totalorder %s731_s2, %s469_s28  ;;  %p473_p5 = scmp.lt.u32.totalorder %s469_s28, %s731_s2 }
  0x49   :  { %p475_p6 = pnand %p473_p5, %p470_p4 }
  0x4b   :  { %478 = shalt.err (!%p475_p6)
}
  0x4c   :  { %s479_s10 = scalar_lea.vmem %s46_s20, 16  ;;  %s483_s13 = scalar_lea.vmem %s46_s20, 32 }
  0x4d   :  { %p480_p7 = scmp.ne.s32.totalorder %s46_s20, %s479_s10  ;;  %p484_p8 = scmp.lt.s32.totalorder %s46_s20, %s46_s20 }
  0x4e   :  { %p485_p9 = scmp.lt.s32.totalorder %s483_s13, %s479_s10 }
  0x50   :  { %p486_p10 = por %p485_p9, %p484_p8 }
  0x52   :  { %p487_p11 = pnand %p486_p10, %p480_p7 }
  0x54   :  { %490 = shalt.err (!%p487_p11)
}
  0x55   :  { %48 = dma.hbm_to_vmem [thread:$0]  %s731_s2, 16, %s46_s20, [#allocation6]  }
  0x56   :  { %s574_s3 = smov [#allocation10]   ;;  %s575_s16 = smov [#allocation13]  }
  0x57   :  { %s67_s15 = sshll.u32 %s574_s3, 4  ;;  %s89_s17 = sshll.u32 %s575_s16, 4  ;;  %s68_s15 = int_to_ptr.vmem [resolvable:$true] %s67_s15  ;;  %s90_s17 = int_to_ptr.vmem [resolvable:$true] %s89_s17 }
  0x58   :  { %s491_s22 = scalar_lea.hbm %s733_s4, 16 }
  0x59   :  { %p492_p12 = scmp.ne.s32.totalorder %s733_s4, %s491_s22  ;;  %p495_p13 = scmp.lt.u32.totalorder %s491_s22, %s733_s4 }
  0x5b   :  { %p497_p0 = pnand %p495_p13, %p492_p12 }
  0x5d   :  { %500 = shalt.err (!%p497_p0)
}
  0x5e   :  { %s501_s2 = scalar_lea.vmem %s68_s15, 16  ;;  %s505_s20 = scalar_lea.vmem %s68_s15, 32 }
  0x5f   :  { %p502_p1 = scmp.ne.s32.totalorder %s68_s15, %s501_s2  ;;  %p506_p2 = scmp.lt.s32.totalorder %s68_s15, %s68_s15 }
  0x60   :  { %p507_p3 = scmp.lt.s32.totalorder %s505_s20, %s501_s2 }
  0x62   :  { %p508_p4 = por %p507_p3, %p506_p2 }
  0x64   :  { %p509_p5 = pnand %p508_p4, %p502_p1 }
  0x66   :  { %512 = shalt.err (!%p509_p5)
}
  0x67   :  { %70 = dma.hbm_to_vmem [thread:$0]  %s733_s4, 16, %s68_s15, [#allocation9]  }
  0x68   :  { %s513_s18 = scalar_lea.hbm %s735_s6, 16 }
  0x69   :  { %p514_p6 = scmp.ne.s32.totalorder %s735_s6, %s513_s18  ;;  %p517_p7 = scmp.lt.u32.totalorder %s513_s18, %s735_s6 }
  0x6b   :  { %p519_p8 = pnand %p517_p7, %p514_p6 }
  0x6d   :  { %522 = shalt.err (!%p519_p8)
}
  0x6e   :  { %s523_s8 = scalar_lea.vmem %s90_s17, 16  ;;  %s527_s9 = scalar_lea.vmem %s90_s17, 32 }
  0x6f   :  { %p524_p9 = scmp.ne.s32.totalorder %s90_s17, %s523_s8  ;;  %p528_p10 = scmp.lt.s32.totalorder %s90_s17, %s90_s17 }
  0x70   :  { %p529_p11 = scmp.lt.s32.totalorder %s527_s9, %s523_s8 }
  0x72   :  { %p530_p12 = por %p529_p11, %p528_p10 }
  0x74   :  { %p531_p13 = pnand %p530_p12, %p524_p9 }
  0x76   :  { %534 = shalt.err (!%p531_p13)
}
  0x77   :  { %92 = dma.hbm_to_vmem [thread:$0]  %s735_s6, 16, %s90_s17, [#allocation12]  }
  0x78   :  { %557 = dma.done.wait [#allocation3], 128  }
  0x79   :  { %558 = vsyncadd [#allocation3], 4294967168 }
  0x7a   :  { %559 = dma.done.wait [#allocation6], 272  }
  0x7b   :  { %560 = vsyncadd [#allocation6], 4294967024 }
  0x7c   :  { %561 = dma.done.wait [#allocation9], 144  }
  0x7d   :  { %562 = vsyncadd [#allocation9], 4294967152 }
  0x7e   :  { %563 = dma.done.wait [#allocation12], 144  }
  0x7f   :  { %564 = vsyncadd [#allocation12], 4294967152  ;;  %v576_v0 = vmov 0.0   ;;  %vm577_vm0 = vmmov 0   ;;  %v377_v1 = vld [vmem:[#allocation5] sm:$0xff]   ;;  %v378_v2 = vld [vmem:[#allocation5 + $0x8] sm:$0xff]  }
  0x80   :  { %345 = vmatprep.subr.bf16.mxu0 %v576_v0  ;;  %349 = vmatprep.mubr.msk.bf16.mxu0 %vm577_vm0, %v576_v0  ;;  %v115_v3 = vld [vmem:[#allocation2] sm:$0xff]  ;;  %vm140_vm1 = vcmask 261120   ;;  %v328_v6 = vld [vmem:[#allocation7] ss:$0 sm:$0xff]  ;;  %vm203_vm3 = vcmask 130048   ;;  %s578_s6 = smov [#allocation14]  }
  0x81   :  { %353 = vmatprep.subr.bf16.mxu1 %v576_v0  ;;  %355 = vmatprep.mubr.msk.bf16.mxu1 %vm577_vm0, %v576_v0  ;;  %v116_v4 = vpack.c.bf16 %v115_v3, %v115_v3  ;;  %v379_v5 = vld [vmem:[#allocation8] sm:$0xff]   ;;  %v380_v15 = vld [vmem:[#allocation11] sm:$0xff]   ;;  %v332_v16 = vld [vmem:[#allocation10] ss:$0 sm:$0xff]  ;;  %s316_s13 = sshll.u32 %s578_s6, 4  ;;  %s317_s13 = int_to_ptr.vmem [resolvable:$true] %s316_s13 }
  0x82   :  { %346 = vmatpush3.bf16.msra.mxu0 %v377_v1  ;;  %354 = vmatpush3.bf16.msra.mxu1 %v379_v5  ;;  %v335_v25 = vld [vmem:[#allocation13] ss:$0 sm:$0xff]  ;;  %s535_s0 = scalar_lea.vmem %s317_s13, 128  ;;  %p540_p1 = scmp.lt.s32.totalorder %s317_s13, %s317_s13 }
  0x83   :  { %347 = vmatprep.subr.bf16.mxu0 %v576_v0  ;;  %359 = vmatprep.subr.bf16.mxu1 %v576_v0  ;;  %p536_p0 = scmp.ne.s32.totalorder %s317_s13, %s535_s0  ;;  %p541_p2 = scmp.lt.s32.totalorder %s535_s0, %s535_s0 }
  0x85   :  { %p542_p3 = por %p541_p2, %p540_p1 }
  0x86   :  { %348 = vmatpush3.bf16.msra.mxu0 %v378_v2 }
  0x87   :  { %p543_p4 = pnand %p542_p3, %p536_p0 }
  0x89   :  { %350 = vmatmul.mubr.msk.bf16.vlgmr.msra.gmra.mrb[0].mxu0 %vm140_vm1, %v116_v4 }
 0x15c   :  { %v178_v7 = vpop.f32.mrb[0].mxu0 }
 0x15d   :  { %v179_v8 = vadd.f32 %v328_v6, %v178_v7  ;;  %v351_v9 = vpop.f32.mrb[1].mxu0 }
 0x15e   :  { %v181_v10 = vpop.f32.mrb[2].mxu0 }
 0x15f   :  { %vm184_vm2 = vcmp.ge.f32.partialorder %v179_v8, 0.0  ;;  %v185_v11 = vmul.f32 0.01, %v179_v8  ;;  %v352_v12 = vpop.f32.mrb[3].mxu0 }
 0x161   :  { %v186_v13 = vsel %vm184_vm2, %v179_v8, %v185_v11 }
 0x162   :  { %v187_v14 = vpack.c.bf16 %v186_v13, %v186_v13 }
 0x164   :  { %356 = vmatmul.mubr.msk.bf16.vlgmr.msra.gmra.mrb[0].mxu1 %vm203_vm3, %v187_v14 }
 0x165   :  { %361 = vmatprep.mubr.msk.bf16.mxu1 %vm577_vm0, %v576_v0  ;;  %360 = vmatpush3.bf16.msra.mxu1 %v380_v15 }
 0x237   :  { %v241_v17 = vpop.f32.mrb[0].mxu1 }
 0x238   :  { %v242_v18 = vadd.f32 %v332_v16, %v241_v17  ;;  %v357_v19 = vpop.f32.mrb[1].mxu1 }
 0x239   :  { %v244_v20 = vpop.f32.mrb[2].mxu1 }
 0x23a   :  { %vm247_vm4 = vcmp.ge.f32.partialorder %v242_v18, 0.0  ;;  %v248_v21 = vmul.f32 0.01, %v242_v18  ;;  %v358_v22 = vpop.f32.mrb[3].mxu1 }
 0x23c   :  { %v249_v23 = vsel %vm247_vm4, %v242_v18, %v248_v21 }
 0x23d   :  { %v250_v24 = vpack.c.bf16 %v249_v23, %v249_v23 }
 0x23f   :  { %362 = vmatmul.mubr.msk.bf16.vlgmr.msra.gmra.mrb[4].mxu1 %vm203_vm3, %v250_v24 }
 0x312   :  { %v303_v26 = vpop.f32.mrb[4].mxu1 }
 0x313   :  { %v304_v27 = vadd.f32 %v335_v25, %v303_v26  ;;  %v363_v28 = vpop.f32.mrb[5].mxu1 }
 0x314   :  { %v306_v29 = vpop.f32.mrb[6].mxu1 }
 0x315   :  { %309 = vst [vmem:[#allocation14] sm:$0xff] %v304_v27  ;;  %v364_v30 = vpop.f32.mrb[7].mxu1 }
 0x316   :  { %546 = shalt.err (!%p543_p4)
}
 0x317   :  { %s547_s15 = scalar_lea.hbm %s736_s7, 128 }
 0x318   :  { %p548_p5 = scmp.ne.s32.totalorder %s736_s7, %s547_s15  ;;  %p551_p6 = scmp.lt.u32.totalorder %s547_s15, %s736_s7 }
 0x31a   :  { %p553_p7 = pnand %p551_p6, %p548_p5 }
 0x31c   :  { %556 = shalt.err (!%p553_p7)
}
 0x31d   :  { %319 = dma.vmem_to_hbm [thread:$0]  %s317_s13, 128, %s736_s7, [#allocation4]  }
 0x31e   :  { %565 = dma.done.wait [#allocation4], 128  }
 0x31f   :  { %566 = vsyncadd [#allocation4], 4294967168 }
 0x320   :  { %323 = vsyncpa [#allocation3], 1 }
 0x321   :  { %324 = vsyncpa [#allocation6], 1 }
 0x322   :  { %325 = vsyncpa [#allocation9], 1 }
 0x323   :  { %326 = vsyncpa [#allocation12], 1 }
 0x324   :  { %327 = vsyncpa [#allocation4], 1 }

// kernel: decoder_forward.2
= control target key start
LH: loop header
LB: loop body
LE: loop exit
PB: predicated region body
PF: predicated region fallthrough
CT: control target
= control target key end

     0   :  { %s6272_s0 = inlined_call_operand.hbm [shape: f32[2,8,32], index: 0, kind: input, shape index: {}]   ;;  %s6273_s1 = inlined_call_operand.hbm [shape: f32[2,4,32], index: 1, kind: input, shape index: {}]   ;;  %s6274_s2 = inlined_call_operand.hbm [shape: bf16[2,32,96], index: 2, kind: input, shape index: {}]   ;;  %s6275_s3 = inlined_call_operand.hbm [shape: f32[2,1,96], index: 3, kind: input, shape index: {}]   ;;  %s6276_s4 = inlined_call_operand.hbm [shape: bf16[2,32,32], index: 4, kind: input, shape index: {}]   ;;  %s6277_s5 = inlined_call_operand.hbm [shape: f32[2,1,32], index: 5, kind: input, shape index: {}]   ;;  %s6278_s6 = inlined_call_operand.hbm [shape: bf16[2,32,32], index: 6, kind: input, shape index: {}]   ;;  %s6279_s7 = inlined_call_operand.hbm [shape: f32[2,1,32], index: 7, kind: input, shape index: {}]   ;;  %s6280_s8 = inlined_call_operand.hbm [shape: bf16[2,32,64], index: 8, kind: input, shape index: {}]   ;;  %s6281_s9 = inlined_call_operand.hbm [shape: f32[2,1,64], index: 9, kind: input, shape index: {}]   ;;  %s6282_s10 = inlined_call_operand.hbm [shape: bf16[2,32,32], index: 10, kind: input, shape index: {}]   ;;  %s6283_s11 = inlined_call_operand.hbm [shape: f32[2,1,32], index: 11, kind: input, shape index: {}]   ;;  %s6284_s12 = inlined_call_operand.hbm [shape: bf16[2,32,128], index: 12, kind: input, shape index: {}]   ;;  %s6285_s13 = inlined_call_operand.hbm [shape: f32[2,1,128], index: 13, kind: input, shape index: {}]   ;;  %s6286_s14 = inlined_call_operand.hbm [shape: bf16[2,128,32], index: 14, kind: input, shape index: {}]   ;;  %s6287_s15 = inlined_call_operand.hbm [shape: f32[2,1,32], index: 15, kind: input, shape index: {}]   ;;  %s6288_s16 = inlined_call_operand.hbm [shape: f32[2,1,32], index: 16, kind: input, shape index: {}]   ;;  %s6289_s17 = inlined_call_operand.hbm [shape: f32[2,1,32], index: 17, kind: input, shape index: {}]   ;;  %s6290_s18 = inlined_call_operand.hbm [shape: f32[2,1,32], index: 18, kind: input, shape index: {}]   ;;  %s6291_s19 = inlined_call_operand.hbm [shape: f32[2,1,32], index: 19, kind: input, shape index: {}]   ;;  %s6292_s20 = inlined_call_operand.hbm [shape: f32[2,1,32], index: 20, kind: input, shape index: {}]   ;;  %s6293_s21 = inlined_call_operand.hbm [shape: f32[2,1,32], index: 21, kind: input, shape index: {}]   ;;  %s6294_s22 = inlined_call_operand.hbm [shape: f32[2,8,32], index: 22, kind: output, shape index: {}]  }
   0x1   :  { %6339 = sst [smem:[#allocation69_spill]] %s6272_s0 }
   0x2   :  { %6340 = sst [smem:[#allocation70_spill]] %s6273_s1 }
   0x3   :  { %6341 = sst [smem:[#allocation71_spill]] %s6274_s2 }
   0x4   :  { %6342 = sst [smem:[#allocation72_spill]] %s6275_s3 }
   0x5   :  { %6343 = sst [smem:[#allocation73_spill]] %s6276_s4 }
   0x6   :  { %6344 = sst [smem:[#allocation74_spill]] %s6277_s5 }
   0x7   :  { %6345 = sst [smem:[#allocation75_spill]] %s6278_s6 }
   0x8   :  { %6346 = sst [smem:[#allocation76_spill]] %s6279_s7 }
   0x9   :  { %6347 = sst [smem:[#allocation77_spill]] %s6280_s8 }
   0xa   :  { %6348 = sst [smem:[#allocation78_spill]] %s6281_s9 }
   0xb   :  { %6349 = sst [smem:[#allocation79_spill]] %s6282_s10 }
   0xc   :  { %6350 = sst [smem:[#allocation80_spill]] %s6283_s11 }
   0xd   :  { %6351 = sst [smem:[#allocation81_spill]] %s6284_s12 }
   0xe   :  { %6352 = sst [smem:[#allocation82_spill]] %s6285_s13 }
   0xf   :  { %6353 = sst [smem:[#allocation83_spill]] %s6286_s14 }
  0x10   :  { %6354 = sst [smem:[#allocation84_spill]] %s6287_s15 }
  0x11   :  { %6355 = sst [smem:[#allocation85_spill]] %s6288_s16 }
  0x12   :  { %6356 = sst [smem:[#allocation86_spill]] %s6290_s18 }
  0x13   :  { %6357 = sst [smem:[#allocation87_spill]] %s6292_s20 }
  0x14   :  { %6358 = sst [smem:[#allocation88_spill]] %s6293_s21 }
  0x15   :  { %6359 = sst [smem:[#allocation89_spill]] %s6294_s22 }
  0x16   :  { %27 = vsyncpa [#allocation5], 0 }
  0x17   :  { %29 = vsyncpa [#allocation5 + $0x1], 0 }
  0x18   :  { %30 = vsyncpa [#allocation8], 0 }
  0x19   :  { %32 = vsyncpa [#allocation8 + $0x1], 0 }
  0x1a   :  { %33 = vsyncpa [#allocation11], 0 }
  0x1b   :  { %35 = vsyncpa [#allocation11 + $0x1], 0 }
  0x1c   :  { %36 = vsyncpa [#allocation14], 0 }
  0x1d   :  { %38 = vsyncpa [#allocation14 + $0x1], 0 }
  0x1e   :  { %39 = vsyncpa [#allocation17], 0 }
  0x1f   :  { %41 = vsyncpa [#allocation17 + $0x1], 0 }
  0x20   :  { %42 = vsyncpa [#allocation20], 0 }
  0x21   :  { %44 = vsyncpa [#allocation20 + $0x1], 0 }
  0x22   :  { %45 = vsyncpa [#allocation23], 0 }
  0x23   :  { %47 = vsyncpa [#allocation23 + $0x1], 0 }
  0x24   :  { %48 = vsyncpa [#allocation26], 0 }
  0x25   :  { %50 = vsyncpa [#allocation26 + $0x1], 0 }
  0x26   :  { %51 = vsyncpa [#allocation29], 0 }
  0x27   :  { %53 = vsyncpa [#allocation29 + $0x1], 0 }
  0x28   :  { %54 = vsyncpa [#allocation32], 0 }
  0x29   :  { %56 = vsyncpa [#allocation32 + $0x1], 0 }
  0x2a   :  { %57 = vsyncpa [#allocation35], 0 }
  0x2b   :  { %59 = vsyncpa [#allocation35 + $0x1], 0 }
  0x2c   :  { %60 = vsyncpa [#allocation38], 0 }
  0x2d   :  { %62 = vsyncpa [#allocation38 + $0x1], 0 }
  0x2e   :  { %63 = vsyncpa [#allocation6], 0 }
  0x2f   :  { %65 = vsyncpa [#allocation6 + $0x1], 0  ;;  %s5002_s3 = smov 0   ;;  %s5004_s28 = smov 0  }
  0x30   :  { %s5006_s29 = smov 0   ;;  %s5008_s30 = smov 0  }
  0x31   :  { %s5010_s4 = smov 0   ;;  %s5012_s0 = smov 0  }
  0x32   :  { %s5014_s23 = smov 0   ;;  %s5016_s1 = smov 0  }
  0x33   :  { %s5018_s5 = smov 0   ;;  %s5020_s24 = smov 0  }
  0x34   :  { %s5022_s6 = smov 0  }
  0x35 LB: > { %6360 = sst [smem:[#allocation54_spill]] %s4808_s28  ;;  %s5058_s25 = sadd.s32 4294967295, %s4844_s6   ;;  %s4844_s6 = sphi %s5022_s6, %s71_s6   ;;  %s4840_s24 = sphi %s5020_s24, %s6482_s24   ;;  %s4836_s5 = sphi %s5018_s5, %s6481_s5   ;;  %s4832_s1 = sphi %s5016_s1, %s6480_s1   ;;  %s4828_s23 = sphi %s5014_s23, %s6479_s23   ;;  %s4824_s0 = sphi %s5012_s0, %s6474_s0   ;;  %s4820_s4 = sphi %s5010_s4, %s6478_s4   ;;  %s4816_s30 = sphi %s5008_s30, %s6477_s30   ;;  %s4812_s29 = sphi %s5006_s29, %s6472_s29   ;;  %s4808_s28 = sphi %s5004_s28, %s6471_s28   ;;  %s4804_s3 = sphi %s5002_s3, %s6470_s3  }
  0x36   : > { %6361 = sst [smem:[#allocation55_spill]] %s4812_s29  ;;  %s3500_s26 = sadd.s32 4294967294, %s4844_s6  }
  0x37   : > { %6362 = sst [smem:[#allocation56_spill]] %s4816_s30  ;;  %s80_s2 = sadd.s32 1, %s4836_s5 }
  0x38   : > { %6363 = sst [smem:[#allocation57_spill]] %s4824_s0  ;;  %s83_s27 = sadd.s32 1, %s4840_s24 }
  0x39   : > { %6364 = sst [smem:[#allocation58_spill]] %s4828_s23  ;;  %p81_p0 = scmp.ge.s32.totalorder %s80_s2, 2 }
  0x3a   : > { %6365 = sst [smem:[#allocation59_spill]] %s4832_s1  ;;  %s90_s22 = sadd.s32 1, %s4824_s0 }
  0x3b   : > { %6366 = sst [smem:[#allocation60_spill]] %s5058_s25  ;;  %p97_p1 = scmp.ne.s32.totalorder %s4824_s0, %s4820_s4 }
  0x3c   : > { %p98_p2 = scmp.eq.s32.totalorder %s4844_s6, 0  ;;  %s6484_s2 = smov (%p81_p0, %s80_s2), 0 }
  0x3d   : > { %6367 = sst [smem:[#allocation61_spill]] %s6484_s2  ;;  %s6486_s27 = smov (!%p81_p0, %s83_s27), %s4840_s24 }
  0x3e   : > { %p5075_p3 = por %p98_p2, %p97_p1  ;;  %p6310_p4 = scmp.ne.s32.totalorder %s4820_s4, %s4816_s30 }
  0x3f   : > { %p85_p5 = scmp.ge.s32.totalorder %s6486_s27, 2  ;;  %p104_p6 = scmp.eq.s32.totalorder %s5058_s25, 0 }
  0x40   : > { %s6368_s1 = scalar_select %p5075_p3, 1, 0 }
  0x41   : > { %s139_s23 = ssub.s32 %s4836_s5, %s6484_s2  ;;  %s142_s21 = sadd.s32 1, %s4812_s29 }
  0x42   : > { %s6488_s27 = smov (%p85_p5, %s6486_s27), 0  ;;  %p5092_p7 = por %p104_p6, %p6310_p4 }
  0x43   : > { %6369 = sst [smem:[#allocation62_spill]] %s6488_s27  ;;  %p140_p8 = scmp.eq.s32.totalorder %s139_s23, 0 }
  0x44   : > { %s6370_s20 = scalar_select %p5092_p7, 1, 0 }
  0x45   : > { %s87_s18 = ssub.s32 %s4840_s24, %s6488_s27  ;;  %p149_p9 = scmp.ne.s32.totalorder %s4812_s29, %s4808_s28 }
  0x46   : > { %6371 = sst [smem:[#allocation63_spill]] %s6370_s20  ;;  %p88_p10 = scmp.eq.s32.totalorder %s87_s18, 0 }
  0x47   : > { %p155_p11 = scmp.ne.s32.totalorder %s4808_s28, %s4804_s3  ;;  %p5110_p12 = por %p149_p9, %p98_p2 }
  0x48   : > { %s5103_s16 = scalar_select %p140_p8, %s4812_s29, %s142_s21  }
  0x49   : > { %s5106_s2 = scalar_select %p88_p10, %s4824_s0, %s90_s22  }
  0x4a   : > { %6372 = sst [smem:[#allocation64_spill]] %s5103_s16  ;;  %p5116_p13 = por %p155_p11, %p104_p6 }
  0x4b   : > { %6373 = sst [smem:[#allocation65_spill]] %s5106_s2  ;;  %p673_p0 = scmp.eq.s32.totalorder %s5058_s25, 3 }
  0x4c   : > { %s6375_s12 = scalar_select %p5116_p13, 1, 0 }
  0x4d   : > { %p679_p5 = scmp.eq.s32.totalorder %s3500_s26, 3  ;;  %p5124_p4 = por %p673_p0, %p97_p1 }
  0x4e   : > { %6376 = sst [smem:[#allocation66_spill]] %s6375_s12  ;;  %p6379_p8 = scmp.ne.s32.totalorder %s4820_s4, %s4816_s30 }
  0x4f   : > { %s6377_s18 = scalar_select %p5124_p4, 1, 0 }
  0x50   : > { %p5131_p10 = por %p679_p5, %p6379_p8  ;;  %p3502_p2 = scmp.ge.s32.totalorder %s4844_s6, 4 }
  0x51   : > { %6378 = sst [smem:[#allocation67_spill]] %s6377_s18  ;;  %s5137_s22 = sand.u32 (!%p3502_p2), 1, %s4824_s0  }
  0x52   : > { %s6380_s21 = scalar_select %p5131_p10, 1, 0 }
  0x53   : > { %695 = sbr.rel (%p3502_p2) target bundleno = 686 (0x2ae), region = 16  ;;  %s5140_s3 = sand.u32 (!%p3502_p2), 1, %s4844_s6  }
  0x54   : > { %6381 = sst [smem:[#allocation68_spill]] %s6380_s21  ;;  %s3505_s23 = sshll.u32 (!%p3502_p2), %s5137_s22, 2 }
  0x55   : > { %s3506_s26 = sshll.u32 (!%p3502_p2), %s4840_s24, 6  ;;  %s6382_s16 = sld [smem:[#allocation70_spill]] (!%p3502_p2) }
  0x56   : > { %s721_s30 = scalar_lea.vmem (!%p3502_p2), [#allocation7], %s3505_s23  ;;  %s5152_s0 = sand.u32 (!%p3502_p2), 1, %s4812_s29  }
  0x57   : > { %s728_s18 = sshll.u32 (!%p3502_p2), %s721_s30, 4  ;;  %s6327_s12 = scalar_lea.sflag (!%p3502_p2), [#allocation8], %s5140_s3  ;;  %s5149_s18 = int_to_ptr.vmem [resolvable:$true] %s728_s18 }
  0x5b   : > { %s5147_s21 = scalar_lea.hbm %s6382_s16, %s3506_s26  ;;  %s4062_s27 = scalar_lea.hbm %s6382_s16, 128 }
  0x5c   : > { %s4058_s28 = scalar_lea.hbm %s5147_s21, 64  ;;  %p4063_p11 = scmp.lt.u32.totalorder %s5147_s21, %s6382_s16 }
  0x5d   : > { %p4059_p1 = scmp.ne.s32.totalorder %s5147_s21, %s4058_s28  ;;  %p4064_p0 = scmp.lt.u32.totalorder %s4062_s27, %s4058_s28 }
  0x5e   : > { %p4066_p8 = scmp.lt.u32.totalorder %s4058_s28, %s5147_s21 }
  0x5f   : > { %p4060_p6 = pnand %p4059_p1, %p5075_p3  ;;  %p4065_p5 = por %p4064_p0, %p4063_p11 }
  0x61   : > { %p4061_p9 = pneg %p4060_p6  ;;  %p4067_p2 = por %p4066_p8, %p4065_p5 }
  0x63   : > { %p4068_p10 = pnand %p4067_p2, %p4061_p9 }
  0x65   : > { %4071 = shalt.err (!%p4068_p10)
}
  0x66   : > { %s4072_s30 = scalar_lea.vmem %s5149_s18, 64  ;;  %s4846_s25 = smov [#allocation7]  }
  0x67   : > { %p4073_p1 = scmp.ne.s32.totalorder %s5149_s18, %s4072_s30  ;;  %s4076_s23 = sshll.u32 %s4846_s25, 4  ;;  %s4077_s23 = int_to_ptr.vmem [resolvable:$false] %s4076_s23 }
  0x68   : > { %s4078_s20 = scalar_lea.vmem %s4077_s23, 128  ;;  %p4079_p13 = scmp.lt.s32.totalorder %s5149_s18, %s4077_s23 }
  0x69   : > { %p4074_p6 = pnand %p4073_p1, %p5075_p3  ;;  %p4080_p7 = scmp.lt.s32.totalorder %s4078_s20, %s4072_s30 }
  0x6b   : > { %p4075_p4 = pneg %p4074_p6  ;;  %p4081_p11 = por %p4080_p7, %p4079_p13 }
  0x6d   : > { %p4082_p0 = pnand %p4081_p11, %p4075_p4 }
  0x6f   : > { %4085 = shalt.err (!%p4082_p0)
}
  0x70   : > { %3844 = dma.hbm_to_vmem [thread:$0]  (%p5075_p3), %s5147_s21, 64, %s5149_s18, %s6327_s12  }
  0x71   : > { %s5179_s28 = sshll.u32 %s4836_s5, 4  ;;  %s759_s2 = scalar_lea.vmem [#allocation10], %s5152_s0 }
  0x72   : > { %s766_s27 = sshll.u32 %s759_s2, 4  ;;  %s6383_s25 = sld [smem:[#allocation72_spill]]  ;;  %s767_s27 = int_to_ptr.vmem [resolvable:$true] %s766_s27 }
  0x78   : > { %s5186_s23 = scalar_lea.hbm %s6383_s25, %s5179_s28  ;;  %s4090_s2 = scalar_lea.hbm %s6383_s25, 32 }
  0x79   : > { %s4086_s16 = scalar_lea.hbm %s5186_s23, 16  ;;  %p4091_p10 = scmp.lt.u32.totalorder %s5186_s23, %s6383_s25 }
  0x7a   : > { %p4087_p4 = scmp.ne.s32.totalorder %s5186_s23, %s4086_s16  ;;  %p4092_p9 = scmp.lt.u32.totalorder %s4090_s2, %s4086_s16 }
  0x7b   : > { %p4094_p8 = scmp.lt.u32.totalorder %s4086_s16, %s5186_s23 }
  0x7c   : > { %p4088_p7 = pnand %p4087_p4, %p5110_p12  ;;  %p4093_p5 = por %p4092_p9, %p4091_p10 }
  0x7e   : > { %p4089_p13 = pneg %p4088_p7  ;;  %p4095_p2 = por %p4094_p8, %p4093_p5 }
  0x80   : > { %p4096_p1 = pnand %p4095_p2, %p4089_p13 }
  0x82   : > { %4099 = shalt.err (!%p4096_p1)
}
  0x83   : > { %s4100_s26 = scalar_lea.vmem %s767_s27, 16  ;;  %s4847_s30 = smov [#allocation10]  }
  0x84   : > { %p4101_p6 = scmp.ne.s32.totalorder %s767_s27, %s4100_s26  ;;  %s4104_s20 = sshll.u32 %s4847_s30, 4  ;;  %s4105_s20 = int_to_ptr.vmem [resolvable:$false] %s4104_s20 }
  0x85   : > { %s4106_s18 = scalar_lea.vmem %s4105_s20, 32  ;;  %p4107_p4 = scmp.lt.s32.totalorder %s767_s27, %s4105_s20 }
  0x86   : > { %p4102_p11 = pnand %p4101_p6, %p5110_p12  ;;  %p4108_p7 = scmp.lt.s32.totalorder %s4106_s18, %s4100_s26 }
  0x88   : > { %p4103_p0 = pneg %p4102_p11  ;;  %p4109_p3 = por %p4108_p7, %p4107_p4 }
  0x8a   : > { %p4110_p9 = pnand %p4109_p3, %p4103_p0 }
  0x8c   : > { %4113 = shalt.err (!%p4110_p9)
}
  0x8d   : > { %s6384_s12 = scalar_lea.sflag [#allocation11], %s5140_s3  ;;  %s6385_s21 = sld [smem:[#allocation74_spill]] }
  0x8e   : > { %3846 = dma.hbm_to_vmem [thread:$0]  (%p5110_p12), %s5186_s23, 16, %s767_s27, %s6384_s12  }
  0x8f   : > { %s797_s20 = scalar_lea.vmem [#allocation13], %s5152_s0 }
  0x90   : > { %s804_s26 = sshll.u32 %s797_s20, 4  ;;  %s805_s26 = int_to_ptr.vmem [resolvable:$true] %s804_s26 }
  0x93   : > { %s5212_s2 = scalar_lea.hbm %s6385_s21, %s5179_s28  ;;  %s4118_s23 = scalar_lea.hbm %s6385_s21, 32 }
  0x94   : > { %s4114_s18 = scalar_lea.hbm %s5212_s2, 16  ;;  %p4119_p5 = scmp.lt.u32.totalorder %s5212_s2, %s6385_s21 }
  0x95   : > { %p4115_p3 = scmp.ne.s32.totalorder %s5212_s2, %s4114_s18  ;;  %p4120_p8 = scmp.lt.u32.totalorder %s4118_s23, %s4114_s18 }
  0x96   : > { %p4122_p1 = scmp.lt.u32.totalorder %s4114_s18, %s5212_s2 }
  0x97   : > { %p4116_p13 = pnand %p4115_p3, %p5110_p12  ;;  %p4121_p2 = por %p4120_p8, %p4119_p5 }
  0x99   : > { %p4117_p10 = pneg %p4116_p13  ;;  %p4123_p6 = por %p4122_p1, %p4121_p2 }
  0x9b   : > { %p4124_p11 = pnand %p4123_p6, %p4117_p10 }
  0x9d   : > { %4127 = shalt.err (!%p4124_p11)
}
  0x9e   : > { %s4128_s29 = scalar_lea.vmem %s805_s26, 16  ;;  %s4848_s20 = smov [#allocation13]  }
  0x9f   : > { %p4129_p0 = scmp.ne.s32.totalorder %s805_s26, %s4128_s29  ;;  %s4132_s30 = sshll.u32 %s4848_s20, 4  ;;  %s4133_s30 = int_to_ptr.vmem [resolvable:$false] %s4132_s30 }
  0xa0   : > { %s4134_s25 = scalar_lea.vmem %s4133_s30, 32  ;;  %p4135_p9 = scmp.lt.s32.totalorder %s805_s26, %s4133_s30 }
  0xa1   : > { %p4130_p4 = pnand %p4129_p0, %p5110_p12  ;;  %p4136_p3 = scmp.lt.s32.totalorder %s4134_s25, %s4128_s29 }
  0xa3   : > { %p4131_p7 = pneg %p4130_p4  ;;  %p4137_p13 = por %p4136_p3, %p4135_p9 }
  0xa5   : > { %p4138_p5 = pnand %p4137_p13, %p4131_p7 }
  0xa7   : > { %4141 = shalt.err (!%p4138_p5)
}
  0xa8   : > { %s6386_s18 = scalar_lea.sflag [#allocation14], %s5140_s3  ;;  %s6387_s7 = sld [smem:[#allocation76_spill]] }
  0xa9   : > { %3848 = dma.hbm_to_vmem [thread:$0]  (%p5110_p12), %s5212_s2, 16, %s805_s26, %s6386_s18  }
  0xaa   : > { %s835_s30 = scalar_lea.vmem [#allocation16], %s5152_s0 }
  0xab   : > { %s842_s16 = sshll.u32 %s835_s30, 4  ;;  %s843_s16 = int_to_ptr.vmem [resolvable:$true] %s842_s16 }
  0xae   : > { %s5239_s12 = scalar_lea.hbm %s6387_s7, %s5179_s28  ;;  %s4146_s26 = scalar_lea.hbm %s6387_s7, 32 }
  0xaf   : > { %s4142_s20 = scalar_lea.hbm %s5239_s12, 16  ;;  %p4147_p1 = scmp.lt.u32.totalorder %s5239_s12, %s6387_s7 }
  0xb0   : > { %p4143_p10 = scmp.ne.s32.totalorder %s5239_s12, %s4142_s20  ;;  %p4148_p6 = scmp.lt.u32.totalorder %s4146_s26, %s4142_s20 }
  0xb1   : > { %p4150_p0 = scmp.lt.u32.totalorder %s4142_s20, %s5239_s12 }
  0xb2   : > { %p4144_p8 = pnand %p4143_p10, %p5110_p12  ;;  %p4149_p11 = por %p4148_p6, %p4147_p1 }
  0xb4   : > { %p4145_p2 = pneg %p4144_p8  ;;  %p4151_p4 = por %p4150_p0, %p4149_p11 }
  0xb6   : > { %p4152_p7 = pnand %p4151_p4, %p4145_p2 }
  0xb8   : > { %4155 = shalt.err (!%p4152_p7)
}
  0xb9   : > { %s4156_s23 = scalar_lea.vmem %s843_s16, 16  ;;  %s4849_s30 = smov [#allocation16]  }
  0xba   : > { %p4157_p9 = scmp.ne.s32.totalorder %s843_s16, %s4156_s23  ;;  %s4160_s29 = sshll.u32 %s4849_s30, 4  ;;  %s4161_s29 = int_to_ptr.vmem [resolvable:$false] %s4160_s29 }
  0xbb   : > { %s4162_s25 = scalar_lea.vmem %s4161_s29, 32  ;;  %p4163_p5 = scmp.lt.s32.totalorder %s843_s16, %s4161_s29 }
  0xbc   : > { %p4158_p3 = pnand %p4157_p9, %p5110_p12  ;;  %p4164_p10 = scmp.lt.s32.totalorder %s4162_s25, %s4156_s23 }
  0xbe   : > { %p4159_p13 = pneg %p4158_p3  ;;  %p4165_p8 = por %p4164_p10, %p4163_p5 }
  0xc0   : > { %p4166_p1 = pnand %p4165_p8, %p4159_p13 }
  0xc2   : > { %4169 = shalt.err (!%p4166_p1)
}
  0xc3   : > { %s6388_s20 = scalar_lea.sflag [#allocation17], %s5140_s3  ;;  %s6389_s9 = sld [smem:[#allocation78_spill]] }
  0xc4   : > { %3850 = dma.hbm_to_vmem [thread:$0]  (%p5110_p12), %s5239_s12, 16, %s843_s16, %s6388_s20  }
  0xc5   : > { %s873_s29 = scalar_lea.vmem [#allocation19], %s5152_s0 }
  0xc6   : > { %s880_s27 = sshll.u32 %s873_s29, 4  ;;  %s881_s27 = int_to_ptr.vmem [resolvable:$true] %s880_s27 }
  0xc9   : > { %s5266_s18 = scalar_lea.hbm %s6389_s9, %s5179_s28  ;;  %s4174_s16 = scalar_lea.hbm %s6389_s9, 32 }
  0xca   : > { %s4170_s30 = scalar_lea.hbm %s5266_s18, 16  ;;  %p4175_p0 = scmp.lt.u32.totalorder %s5266_s18, %s6389_s9 }
  0xcb   : > { %p4171_p2 = scmp.ne.s32.totalorder %s5266_s18, %s4170_s30  ;;  %p4176_p4 = scmp.lt.u32.totalorder %s4174_s16, %s4170_s30 }
  0xcc   : > { %p4178_p9 = scmp.lt.u32.totalorder %s4170_s30, %s5266_s18 }
  0xcd   : > { %p4172_p6 = pnand %p4171_p2, %p5110_p12  ;;  %p4177_p7 = por %p4176_p4, %p4175_p0 }
  0xcf   : > { %p4173_p11 = pneg %p4172_p6  ;;  %p4179_p3 = por %p4178_p9, %p4177_p7 }
  0xd1   : > { %p4180_p13 = pnand %p4179_p3, %p4173_p11 }
  0xd3   : > { %4183 = shalt.err (!%p4180_p13)
}
  0xd4   : > { %s4184_s26 = scalar_lea.vmem %s881_s27, 16  ;;  %s4850_s29 = smov [#allocation19]  }
  0xd5   : > { %p4185_p5 = scmp.ne.s32.totalorder %s881_s27, %s4184_s26  ;;  %s4188_s23 = sshll.u32 %s4850_s29, 4  ;;  %s4189_s23 = int_to_ptr.vmem [resolvable:$false] %s4188_s23 }
  0xd6   : > { %s4190_s25 = scalar_lea.vmem %s4189_s23, 32  ;;  %p4191_p1 = scmp.lt.s32.totalorder %s881_s27, %s4189_s23 }
  0xd7   : > { %p4186_p10 = pnand %p4185_p5, %p5110_p12  ;;  %p4192_p2 = scmp.lt.s32.totalorder %s4190_s25, %s4184_s26 }
  0xd9   : > { %p4187_p8 = pneg %p4186_p10  ;;  %p4193_p6 = por %p4192_p2, %p4191_p1 }
  0xdb   : > { %p4194_p0 = pnand %p4193_p6, %p4187_p8 }
  0xdd   : > { %4197 = shalt.err (!%p4194_p0)
}
  0xde   : > { %s6390_s30 = scalar_lea.sflag [#allocation20], %s5140_s3  ;;  %s6391_s11 = sld [smem:[#allocation80_spill]] }
  0xdf   : > { %3852 = dma.hbm_to_vmem [thread:$0]  (%p5110_p12), %s5266_s18, 16, %s881_s27, %s6390_s30  }
  0xe0   : > { %s911_s23 = scalar_lea.vmem [#allocation22], %s5152_s0 }
  0xe1   : > { %s918_s2 = sshll.u32 %s911_s23, 4  ;;  %s919_s2 = int_to_ptr.vmem [resolvable:$true] %s918_s2 }
  0xe4   : > { %s5293_s20 = scalar_lea.hbm %s6391_s11, %s5179_s28  ;;  %s4202_s27 = scalar_lea.hbm %s6391_s11, 32 }
  0xe5   : > { %s4198_s29 = scalar_lea.hbm %s5293_s20, 16  ;;  %p4203_p9 = scmp.lt.u32.totalorder %s5293_s20, %s6391_s11 }
  0xe6   : > { %p4199_p11 = scmp.ne.s32.totalorder %s5293_s20, %s4198_s29  ;;  %p4204_p3 = scmp.lt.u32.totalorder %s4202_s27, %s4198_s29 }
  0xe7   : > { %p4206_p5 = scmp.lt.u32.totalorder %s4198_s29, %s5293_s20 }
  0xe8   : > { %p4200_p4 = pnand %p4199_p11, %p5110_p12  ;;  %p4205_p13 = por %p4204_p3, %p4203_p9 }
  0xea   : > { %p4201_p7 = pneg %p4200_p4  ;;  %p4207_p10 = por %p4206_p5, %p4205_p13 }
  0xec   : > { %p4208_p8 = pnand %p4207_p10, %p4201_p7 }
  0xee   : > { %4211 = shalt.err (!%p4208_p8)
}
  0xef   : > { %s4212_s16 = scalar_lea.vmem %s919_s2, 16  ;;  %s4851_s23 = smov [#allocation22]  }
  0xf0   : > { %p4213_p1 = scmp.ne.s32.totalorder %s919_s2, %s4212_s16  ;;  %s4216_s26 = sshll.u32 %s4851_s23, 4  ;;  %s4217_s26 = int_to_ptr.vmem [resolvable:$false] %s4216_s26 }
  0xf1   : > { %s4218_s25 = scalar_lea.vmem %s4217_s26, 32  ;;  %p4219_p0 = scmp.lt.s32.totalorder %s919_s2, %s4217_s26 }
  0xf2   : > { %p4214_p2 = pnand %p4213_p1, %p5110_p12  ;;  %p4220_p11 = scmp.lt.s32.totalorder %s4218_s25, %s4212_s16 }
  0xf4   : > { %p4215_p6 = pneg %p4214_p2  ;;  %p4221_p4 = por %p4220_p11, %p4219_p0 }
  0xf6   : > { %p4222_p3 = pnand %p4221_p4, %p4215_p6 }
  0xf8   : > { %4225 = shalt.err (!%p4222_p3)
}
  0xf9   : > { %s6392_s29 = scalar_lea.sflag [#allocation23], %s5140_s3  ;;  %s6393_s13 = sld [smem:[#allocation82_spill]] }
  0xfa   : > { %3854 = dma.hbm_to_vmem [thread:$0]  (%p5110_p12), %s5293_s20, 16, %s919_s2, %s6392_s29  }
  0xfb   : > { %s949_s26 = scalar_lea.vmem [#allocation25], %s5152_s0 }
  0xfc   : > { %s956_s12 = sshll.u32 %s949_s26, 4  ;;  %s957_s12 = int_to_ptr.vmem [resolvable:$true] %s956_s12 }
  0xff   : > { %s5320_s30 = scalar_lea.hbm %s6393_s13, %s5179_s28  ;;  %s4230_s2 = scalar_lea.hbm %s6393_s13, 32 }
 0x100   : > { %s4226_s23 = scalar_lea.hbm %s5320_s30, 16  ;;  %p4231_p5 = scmp.lt.u32.totalorder %s5320_s30, %s6393_s13 }
 0x101   : > { %p4227_p7 = scmp.ne.s32.totalorder %s5320_s30, %s4226_s23  ;;  %p4232_p10 = scmp.lt.u32.totalorder %s4230_s2, %s4226_s23 }
 0x102   : > { %p4234_p1 = scmp.lt.u32.totalorder %s4226_s23, %s5320_s30 }
 0x103   : > { %p4228_p9 = pnand %p4227_p7, %p5110_p12  ;;  %p4233_p8 = por %p4232_p10, %p4231_p5 }
 0x105   : > { %p4229_p13 = pneg %p4228_p9  ;;  %p4235_p2 = por %p4234_p1, %p4233_p8 }
 0x107   : > { %p4236_p6 = pnand %p4235_p2, %p4229_p13 }
 0x109   : > { %4239 = shalt.err (!%p4236_p6)
}
 0x10a   : > { %s4240_s27 = scalar_lea.vmem %s957_s12, 16  ;;  %s4852_s26 = smov [#allocation25]  }
 0x10b   : > { %p4241_p0 = scmp.ne.s32.totalorder %s957_s12, %s4240_s27  ;;  %s4244_s16 = sshll.u32 %s4852_s26, 4  ;;  %s4245_s16 = int_to_ptr.vmem [resolvable:$false] %s4244_s16 }
 0x10c   : > { %s4246_s25 = scalar_lea.vmem %s4245_s16, 32  ;;  %p4247_p3 = scmp.lt.s32.totalorder %s957_s12, %s4245_s16 }
 0x10d   : > { %p4242_p11 = pnand %p4241_p0, %p5110_p12  ;;  %p4248_p7 = scmp.lt.s32.totalorder %s4246_s25, %s4240_s27 }
 0x10f   : > { %p4243_p4 = pneg %p4242_p11  ;;  %p4249_p9 = por %p4248_p7, %p4247_p3 }
 0x111   : > { %p4250_p5 = pnand %p4249_p9, %p4243_p4 }
 0x113   : > { %4253 = shalt.err (!%p4250_p5)
}
 0x114   : > { %s6394_s23 = scalar_lea.sflag [#allocation26], %s5140_s3  ;;  %s6395_s15 = sld [smem:[#allocation84_spill]] }
 0x115   : > { %3856 = dma.hbm_to_vmem [thread:$0]  (%p5110_p12), %s5320_s30, 16, %s957_s12, %s6394_s23  }
 0x116   : > { %s987_s16 = scalar_lea.vmem [#allocation28], %s5152_s0 }
 0x117   : > { %s994_s18 = sshll.u32 %s987_s16, 4  ;;  %s995_s18 = int_to_ptr.vmem [resolvable:$true] %s994_s18 }
 0x11a   : > { %s5347_s29 = scalar_lea.hbm %s6395_s15, %s5179_s28  ;;  %s4258_s12 = scalar_lea.hbm %s6395_s15, 32 }
 0x11b   : > { %s4254_s26 = scalar_lea.hbm %s5347_s29, 16  ;;  %p4259_p1 = scmp.lt.u32.totalorder %s5347_s29, %s6395_s15 }
 0x11c   : > { %p4255_p13 = scmp.ne.s32.totalorder %s5347_s29, %s4254_s26  ;;  %p4260_p2 = scmp.lt.u32.totalorder %s4258_s12, %s4254_s26 }
 0x11d   : > { %p4262_p0 = scmp.lt.u32.totalorder %s4254_s26, %s5347_s29 }
 0x11e   : > { %p4256_p10 = pnand %p4255_p13, %p5110_p12  ;;  %p4261_p6 = por %p4260_p2, %p4259_p1 }
 0x120   : > { %p4257_p8 = pneg %p4256_p10  ;;  %p4263_p11 = por %p4262_p0, %p4261_p6 }
 0x122   : > { %p4264_p4 = pnand %p4263_p11, %p4257_p8 }
 0x124   : > { %4267 = shalt.err (!%p4264_p4)
}
 0x125   : > { %s4268_s2 = scalar_lea.vmem %s995_s18, 16  ;;  %s4853_s16 = smov [#allocation28]  }
 0x126   : > { %p4269_p3 = scmp.ne.s32.totalorder %s995_s18, %s4268_s2  ;;  %s4272_s27 = sshll.u32 %s4853_s16, 4  ;;  %s4273_s27 = int_to_ptr.vmem [resolvable:$false] %s4272_s27 }
 0x127   : > { %s4274_s25 = scalar_lea.vmem %s4273_s27, 32  ;;  %p4275_p5 = scmp.lt.s32.totalorder %s995_s18, %s4273_s27 }
 0x128   : > { %p4270_p7 = pnand %p4269_p3, %p5110_p12  ;;  %p4276_p13 = scmp.lt.s32.totalorder %s4274_s25, %s4268_s2 }
 0x12a   : > { %p4271_p9 = pneg %p4270_p7  ;;  %p4277_p10 = por %p4276_p13, %p4275_p5 }
 0x12c   : > { %p4278_p1 = pnand %p4277_p10, %p4271_p9 }
 0x12e   : > { %4281 = shalt.err (!%p4278_p1)
}
 0x12f   : > { %s6396_s26 = scalar_lea.sflag [#allocation29], %s5140_s3  ;;  %s5374_s23 = scalar_lea.hbm %s6289_s17, %s5179_s28 }
 0x130   : > { %3858 = dma.hbm_to_vmem [thread:$0]  (%p5110_p12), %s5347_s29, 16, %s995_s18, %s6396_s26  }
 0x131   : > { %s1021_s27 = scalar_lea.vmem [#allocation31], %s5152_s0  ;;  %s4282_s16 = scalar_lea.hbm %s5374_s23, 16 }
 0x132   : > { %s1028_s20 = sshll.u32 %s1021_s27, 4  ;;  %p4283_p8 = scmp.ne.s32.totalorder %s5374_s23, %s4282_s16  ;;  %s1029_s20 = int_to_ptr.vmem [resolvable:$true] %s1028_s20 }
 0x133   : > { %s4286_s18 = scalar_lea.hbm %s6289_s17, 32  ;;  %p4287_p0 = scmp.lt.u32.totalorder %s5374_s23, %s6289_s17 }
 0x134   : > { %p4284_p2 = pnand %p4283_p8, %p5110_p12  ;;  %p4288_p11 = scmp.lt.u32.totalorder %s4286_s18, %s4282_s16 }
 0x135   : > { %p4290_p3 = scmp.lt.u32.totalorder %s4282_s16, %s5374_s23 }
 0x136   : > { %p4285_p6 = pneg %p4284_p2  ;;  %p4289_p4 = por %p4288_p11, %p4287_p0 }
 0x138   : > { %p4291_p7 = por %p4290_p3, %p4289_p4 }
 0x13a   : > { %p4292_p9 = pnand %p4291_p7, %p4285_p6 }
 0x13c   : > { %4295 = shalt.err (!%p4292_p9)
}
 0x13d   : > { %s4296_s12 = scalar_lea.vmem %s1029_s20, 16  ;;  %s4854_s27 = smov [#allocation31]  }
 0x13e   : > { %p4297_p5 = scmp.ne.s32.totalorder %s1029_s20, %s4296_s12  ;;  %s4300_s2 = sshll.u32 %s4854_s27, 4  ;;  %s4301_s2 = int_to_ptr.vmem [resolvable:$false] %s4300_s2 }
 0x13f   : > { %s4302_s25 = scalar_lea.vmem %s4301_s2, 32  ;;  %p4303_p1 = scmp.lt.s32.totalorder %s1029_s20, %s4301_s2 }
 0x140   : > { %p4298_p13 = pnand %p4297_p5, %p5110_p12  ;;  %p4304_p8 = scmp.lt.s32.totalorder %s4302_s25, %s4296_s12 }
 0x142   : > { %p4299_p10 = pneg %p4298_p13  ;;  %p4305_p2 = por %p4304_p8, %p4303_p1 }
 0x144   : > { %p4306_p0 = pnand %p4305_p2, %p4299_p10 }
 0x146   : > { %4309 = shalt.err (!%p4306_p0)
}
 0x147   : > { %s6397_s16 = scalar_lea.sflag [#allocation32], %s5140_s3  ;;  %s5401_s26 = scalar_lea.hbm %s6291_s19, %s5179_s28 }
 0x148   : > { %3860 = dma.hbm_to_vmem [thread:$0]  (%p5110_p12), %s5374_s23, 16, %s1029_s20, %s6397_s16  }
 0x149   : > { %s1055_s2 = scalar_lea.vmem [#allocation34], %s5152_s0  ;;  %s3503_s12 = sshll.u32 %s5137_s22, 3 }
 0x14a   : > { %s1062_s30 = sshll.u32 %s1055_s2, 4  ;;  %s6332_s27 = scalar_lea.sflag [#allocation35], %s5140_s3  ;;  %s5404_s30 = int_to_ptr.vmem [resolvable:$true] %s1062_s30 }
 0x14b   : > { %s4310_s25 = scalar_lea.hbm %s5401_s26, 16  ;;  %s4314_s16 = scalar_lea.hbm %s6291_s19, 32 }
 0x14c   : > { %p4311_p6 = scmp.ne.s32.totalorder %s5401_s26, %s4310_s25  ;;  %p4315_p3 = scmp.lt.u32.totalorder %s5401_s26, %s6291_s19 }
 0x14d   : > { %p4316_p7 = scmp.lt.u32.totalorder %s4314_s16, %s4310_s25  ;;  %p4318_p5 = scmp.lt.u32.totalorder %s4310_s25, %s5401_s26 }
 0x14e   : > { %p4312_p11 = pnand %p4311_p6, %p5110_p12 }
 0x14f   : > { %p4317_p9 = por %p4316_p7, %p4315_p3 }
 0x150   : > { %p4313_p4 = pneg %p4312_p11 }
 0x151   : > { %p4319_p13 = por %p4318_p5, %p4317_p9 }
 0x153   : > { %p4320_p10 = pnand %p4319_p13, %p4313_p4 }
 0x155   : > { %4323 = shalt.err (!%p4320_p10)
}
 0x156   : > { %s4324_s2 = scalar_lea.vmem %s5404_s30, 16  ;;  %s4855_s23 = smov [#allocation34]  }
 0x157   : > { %p4325_p1 = scmp.ne.s32.totalorder %s5404_s30, %s4324_s2  ;;  %s4328_s20 = sshll.u32 %s4855_s23, 4  ;;  %s4329_s20 = int_to_ptr.vmem [resolvable:$false] %s4328_s20 }
 0x158   : > { %s4330_s29 = scalar_lea.vmem %s4329_s20, 32  ;;  %p4331_p0 = scmp.lt.s32.totalorder %s5404_s30, %s4329_s20 }
 0x159   : > { %p4326_p8 = pnand %p4325_p1, %p5110_p12  ;;  %p4332_p6 = scmp.lt.s32.totalorder %s4330_s29, %s4324_s2 }
 0x15b   : > { %p4327_p2 = pneg %p4326_p8  ;;  %p4333_p11 = por %p4332_p6, %p4331_p0 }
 0x15d   : > { %p4334_p3 = pnand %p4333_p11, %p4327_p2 }
 0x15f   : > { %4337 = shalt.err (!%p4334_p3)
}
 0x160   : > { %3862 = dma.hbm_to_vmem [thread:$0]  (%p5110_p12), %s5401_s26, 16, %s5404_s30, %s6332_s27  }
 0x161   : > { %s3504_s25 = sshll.u32 %s4840_s24, 7  ;;  %s6398_s23 = sld [smem:[#allocation69_spill]] }
 0x162   : > { %s703_s29 = scalar_lea.vmem [#allocation4], %s3503_s12  ;;  %s5442_s9 = sshll.u32 %s5152_s0, 4 }
 0x163   : > { %s710_s7 = sshll.u32 %s703_s29, 4  ;;  %s700_s11 = scalar_lea.sflag [#allocation5], %s5137_s22  ;;  %s5439_s7 = int_to_ptr.vmem [resolvable:$true] %s710_s7 }
 0x164   : > { %p6400_p7 = scmp.ne.s32.totalorder %s6368_s1, 0 }
 0x167   : > { %s6399_s20 = smov %s6398_s23  ;;  %s5435_s2 = scalar_lea.hbm %s6398_s23, %s3504_s25 }
 0x168   : > { %s4338_s13 = scalar_lea.hbm %s5435_s2, 128  ;;  %s4342_s25 = scalar_lea.hbm %s6399_s20, 256 }
 0x169   : > { %p4339_p4 = scmp.ne.s32.totalorder %s5435_s2, %s4338_s13  ;;  %p4343_p13 = scmp.lt.u32.totalorder %s5435_s2, %s6399_s20 }
 0x16a   : > { %p4344_p10 = scmp.lt.u32.totalorder %s4342_s25, %s4338_s13  ;;  %p4346_p8 = scmp.lt.u32.totalorder %s4338_s13, %s5435_s2 }
 0x16b   : > { %p4340_p9 = pnand %p4339_p4, %p6400_p7 }
 0x16c   : > { %p4345_p1 = por %p4344_p10, %p4343_p13 }
 0x16d   : > { %p4341_p5 = pneg %p4340_p9 }
 0x16e   : > { %p4347_p2 = por %p4346_p8, %p4345_p1 }
 0x170   : > { %p4348_p0 = pnand %p4347_p2, %p4341_p5 }
 0x172   : > { %4351 = shalt.err (!%p4348_p0)
}
 0x173   : > { %s4352_s22 = scalar_lea.vmem %s5439_s7, 128  ;;  %s4856_s12 = smov [#allocation4]  }
 0x174   : > { %p4353_p6 = scmp.ne.s32.totalorder %s5439_s7, %s4352_s22  ;;  %s4356_s23 = sshll.u32 %s4856_s12, 4  ;;  %s4357_s23 = int_to_ptr.vmem [resolvable:$false] %s4356_s23 }
 0x175   : > { %s4358_s29 = scalar_lea.vmem %s4357_s23, 256  ;;  %p4359_p4 = scmp.lt.s32.totalorder %s5439_s7, %s4357_s23 }
 0x176   : > { %p4354_p11 = pnand %p4353_p6, %p6400_p7  ;;  %p4360_p9 = scmp.lt.s32.totalorder %s4358_s29, %s4352_s22 }
 0x178   : > { %p4355_p3 = pneg %p4354_p11  ;;  %p4361_p13 = por %p4360_p9, %p4359_p4 }
 0x17a   : > { %p4362_p10 = pnand %p4361_p13, %p4355_p3 }
 0x17c   : > { %4365 = shalt.err (!%p4362_p10)
}
 0x17d   : > { %3843 = dma.hbm_to_vmem [thread:$0]  (%p6400_p7), %s5435_s2, 128, %s5439_s7, %s700_s11  }
 0x17e   : > { %s5467_s13 = sshll.u32 %s4836_s5, 8  ;;  %s6401_s25 = sld [smem:[#allocation71_spill]] }
 0x17f   : > { %s739_s18 = scalar_lea.vmem [#allocation9], %s5442_s9 }
 0x180   : > { %s746_s1 = sshll.u32 %s739_s18, 4  ;;  %s5476_s1 = int_to_ptr.vmem [resolvable:$true] %s746_s1 }
 0x184   : > { %s5473_s16 = scalar_lea.hbm %s6401_s25, %s5467_s13  ;;  %s4370_s2 = scalar_lea.hbm %s6401_s25, 512 }
 0x185   : > { %s4366_s22 = scalar_lea.hbm %s5473_s16, 256  ;;  %p4371_p8 = scmp.lt.u32.totalorder %s5473_s16, %s6401_s25 }
 0x186   : > { %p4367_p5 = scmp.ne.s32.totalorder %s5473_s16, %s4366_s22  ;;  %p4372_p2 = scmp.lt.u32.totalorder %s4370_s2, %s4366_s22 }
 0x187   : > { %p4374_p6 = scmp.lt.u32.totalorder %s4366_s22, %s5473_s16 }
 0x188   : > { %p4368_p7 = pnand %p4367_p5, %p5110_p12  ;;  %p4373_p0 = por %p4372_p2, %p4371_p8 }
 0x18a   : > { %p4369_p1 = pneg %p4368_p7  ;;  %p4375_p11 = por %p4374_p6, %p4373_p0 }
 0x18c   : > { %p4376_p3 = pnand %p4375_p11, %p4369_p1 }
 0x18e   : > { %4379 = shalt.err (!%p4376_p3)
}
 0x18f   : > { %s4380_s29 = scalar_lea.vmem %s5476_s1, 256  ;;  %s4857_s26 = smov [#allocation9]  }
 0x190   : > { %p4381_p4 = scmp.ne.s32.totalorder %s5476_s1, %s4380_s29  ;;  %s4384_s30 = sshll.u32 %s4857_s26, 4  ;;  %s4385_s30 = int_to_ptr.vmem [resolvable:$false] %s4384_s30 }
 0x191   : > { %s4386_s18 = scalar_lea.vmem %s4385_s30, 512  ;;  %p4387_p10 = scmp.lt.s32.totalorder %s5476_s1, %s4385_s30 }
 0x192   : > { %p4382_p9 = pnand %p4381_p4, %p5110_p12  ;;  %p4388_p5 = scmp.lt.s32.totalorder %s4386_s18, %s4380_s29 }
 0x194   : > { %p4383_p13 = pneg %p4382_p9  ;;  %p4389_p7 = por %p4388_p5, %p4387_p10 }
 0x196   : > { %p4390_p8 = pnand %p4389_p7, %p4383_p13 }
 0x198   : > { %4393 = shalt.err (!%p4390_p8)
}
 0x199   : > { %s4858_s22 = smov 64   ;;  %s4859_s7 = smov 4  }
 0x19a   : > { %s6402_s11 = scalar_lea.sflag [#allocation8], %s5140_s3  ;;  %s6403_s23 = sld [smem:[#allocation73_spill]] }
 0x19b   : > { %3845 = dma.hbm_to_vmem [thread:$0]  (%p5110_p12), %s5473_s16, 256, %s5476_s1, %s6402_s11, %s4858_s22, %s4858_s22, %s4859_s7  }
 0x19c   : > { %s777_s30 = scalar_lea.vmem [#allocation12], %s5442_s9 }
 0x19d   : > { %s784_s18 = sshll.u32 %s777_s30, 4  ;;  %s5511_s18 = int_to_ptr.vmem [resolvable:$true] %s784_s18 }
 0x1a0   : > { %s6404_s26 = smov %s6403_s23  ;;  %s5508_s29 = scalar_lea.hbm %s6403_s23, %s5467_s13 }
 0x1a1   : > { %s4394_s27 = scalar_lea.hbm %s5508_s29, 256  ;;  %s4398_s1 = scalar_lea.hbm %s6404_s26, 512 }
 0x1a2   : > { %p4395_p1 = scmp.ne.s32.totalorder %s5508_s29, %s4394_s27  ;;  %p4399_p6 = scmp.lt.u32.totalorder %s5508_s29, %s6404_s26 }
 0x1a3   : > { %p4400_p11 = scmp.lt.u32.totalorder %s4398_s1, %s4394_s27  ;;  %p4402_p4 = scmp.lt.u32.totalorder %s4394_s27, %s5508_s29 }
 0x1a4   : > { %p4396_p2 = pnand %p4395_p1, %p5110_p12 }
 0x1a5   : > { %p4401_p3 = por %p4400_p11, %p4399_p6 }
 0x1a6   : > { %p4397_p0 = pneg %p4396_p2 }
 0x1a7   : > { %p4403_p9 = por %p4402_p4, %p4401_p3 }
 0x1a9   : > { %p4404_p13 = pnand %p4403_p9, %p4397_p0 }
 0x1ab   : > { %4407 = shalt.err (!%p4404_p13)
}
 0x1ac   : > { %s4408_s12 = scalar_lea.vmem %s5511_s18, 256  ;;  %s4860_s15 = smov [#allocation12]  }
 0x1ad   : > { %p4409_p10 = scmp.ne.s32.totalorder %s5511_s18, %s4408_s12  ;;  %s4412_s23 = sshll.u32 %s4860_s15, 4  ;;  %s4413_s23 = int_to_ptr.vmem [resolvable:$false] %s4412_s23 }
 0x1ae   : > { %s4414_s30 = scalar_lea.vmem %s4413_s23, 512  ;;  %p4415_p8 = scmp.lt.s32.totalorder %s5511_s18, %s4413_s23 }
 0x1af   : > { %p4410_p5 = pnand %p4409_p10, %p5110_p12  ;;  %p4416_p1 = scmp.lt.s32.totalorder %s4414_s30, %s4408_s12 }
 0x1b1   : > { %p4411_p7 = pneg %p4410_p5  ;;  %p4417_p2 = por %p4416_p1, %p4415_p8 }
 0x1b3   : > { %p4418_p6 = pnand %p4417_p2, %p4411_p7 }
 0x1b5   : > { %4421 = shalt.err (!%p4418_p6)
}
 0x1b6   : > { %s6405_s27 = scalar_lea.sflag [#allocation11], %s5140_s3  ;;  %s6406_s11 = sld [smem:[#allocation75_spill]] }
 0x1b7   : > { %3847 = dma.hbm_to_vmem [thread:$0]  (%p5110_p12), %s5508_s29, 256, %s5511_s18, %s6405_s27, %s4858_s22, %s4858_s22, %s4859_s7  }
 0x1b8   : > { %s815_s12 = scalar_lea.vmem [#allocation15], %s5442_s9 }
 0x1b9   : > { %s822_s15 = sshll.u32 %s815_s12, 4  ;;  %s5546_s15 = int_to_ptr.vmem [resolvable:$true] %s822_s15 }
 0x1bc   : > { %s5543_s2 = scalar_lea.hbm %s6406_s11, %s5467_s13  ;;  %s4426_s18 = scalar_lea.hbm %s6406_s11, 512 }
 0x1bd   : > { %s4422_s23 = scalar_lea.hbm %s5543_s2, 256  ;;  %p4427_p4 = scmp.lt.u32.totalorder %s5543_s2, %s6406_s11 }
 0x1be   : > { %p4423_p0 = scmp.ne.s32.totalorder %s5543_s2, %s4422_s23  ;;  %p4428_p9 = scmp.lt.u32.totalorder %s4426_s18, %s4422_s23 }
 0x1bf   : > { %p4430_p10 = scmp.lt.u32.totalorder %s4422_s23, %s5543_s2 }
 0x1c0   : > { %p4424_p11 = pnand %p4423_p0, %p5110_p12  ;;  %p4429_p13 = por %p4428_p9, %p4427_p4 }
 0x1c2   : > { %p4425_p3 = pneg %p4424_p11  ;;  %p4431_p5 = por %p4430_p10, %p4429_p13 }
 0x1c4   : > { %p4432_p7 = pnand %p4431_p5, %p4425_p3 }
 0x1c6   : > { %4435 = shalt.err (!%p4432_p7)
}
 0x1c7   : > { %s4436_s1 = scalar_lea.vmem %s5546_s15, 256  ;;  %s4861_s12 = smov [#allocation15]  }
 0x1c8   : > { %p4437_p8 = scmp.ne.s32.totalorder %s5546_s15, %s4436_s1  ;;  %s4440_s30 = sshll.u32 %s4861_s12, 4  ;;  %s4441_s30 = int_to_ptr.vmem [resolvable:$false] %s4440_s30 }
 0x1c9   : > { %s4442_s29 = scalar_lea.vmem %s4441_s30, 512  ;;  %p4443_p6 = scmp.lt.s32.totalorder %s5546_s15, %s4441_s30 }
 0x1ca   : > { %p4438_p1 = pnand %p4437_p8, %p5110_p12  ;;  %p4444_p0 = scmp.lt.s32.totalorder %s4442_s29, %s4436_s1 }
 0x1cc   : > { %p4439_p2 = pneg %p4438_p1  ;;  %p4445_p11 = por %p4444_p0, %p4443_p6 }
 0x1ce   : > { %p4446_p4 = pnand %p4445_p11, %p4439_p2 }
 0x1d0   : > { %4449 = shalt.err (!%p4446_p4)
}
 0x1d1   : > { %s6407_s23 = scalar_lea.sflag [#allocation14], %s5140_s3  ;;  %s6408_s8 = sld [smem:[#allocation77_spill]] }
 0x1d2   : > { %3849 = dma.hbm_to_vmem [thread:$0]  (%p5110_p12), %s5543_s2, 256, %s5546_s15, %s6407_s23, %s4858_s22, %s4858_s22, %s4859_s7  }
 0x1d3   : > { %s853_s1 = scalar_lea.vmem [#allocation18], %s5442_s9 }
 0x1d4   : > { %s860_s12 = sshll.u32 %s853_s1, 4  ;;  %s5581_s12 = int_to_ptr.vmem [resolvable:$true] %s860_s12 }
 0x1d7   : > { %s5578_s16 = scalar_lea.hbm %s6408_s8, %s5467_s13  ;;  %s4454_s15 = scalar_lea.hbm %s6408_s8, 512 }
 0x1d8   : > { %s4450_s30 = scalar_lea.hbm %s5578_s16, 256  ;;  %p4455_p10 = scmp.lt.u32.totalorder %s5578_s16, %s6408_s8 }
 0x1d9   : > { %p4451_p3 = scmp.ne.s32.totalorder %s5578_s16, %s4450_s30  ;;  %p4456_p5 = scmp.lt.u32.totalorder %s4454_s15, %s4450_s30 }
 0x1da   : > { %p4458_p8 = scmp.lt.u32.totalorder %s4450_s30, %s5578_s16 }
 0x1db   : > { %p4452_p9 = pnand %p4451_p3, %p5110_p12  ;;  %p4457_p7 = por %p4456_p5, %p4455_p10 }
 0x1dd   : > { %p4453_p13 = pneg %p4452_p9  ;;  %p4459_p1 = por %p4458_p8, %p4457_p7 }
 0x1df   : > { %p4460_p2 = pnand %p4459_p1, %p4453_p13 }
 0x1e1   : > { %4463 = shalt.err (!%p4460_p2)
}
 0x1e2   : > { %s4464_s27 = scalar_lea.vmem %s5581_s12, 256  ;;  %s4862_s1 = smov [#allocation18]  }
 0x1e3   : > { %p4465_p6 = scmp.ne.s32.totalorder %s5581_s12, %s4464_s27  ;;  %s4468_s29 = sshll.u32 %s4862_s1, 4  ;;  %s4469_s29 = int_to_ptr.vmem [resolvable:$false] %s4468_s29 }
 0x1e4   : > { %s4470_s2 = scalar_lea.vmem %s4469_s29, 512  ;;  %p4471_p4 = scmp.lt.s32.totalorder %s5581_s12, %s4469_s29 }
 0x1e5   : > { %p4466_p0 = pnand %p4465_p6, %p5110_p12  ;;  %p4472_p3 = scmp.lt.s32.totalorder %s4470_s2, %s4464_s27 }
 0x1e7   : > { %p4467_p11 = pneg %p4466_p0  ;;  %p4473_p9 = por %p4472_p3, %p4471_p4 }
 0x1e9   : > { %p4474_p10 = pnand %p4473_p9, %p4467_p11 }
 0x1eb   : > { %4477 = shalt.err (!%p4474_p10)
}
 0x1ec   : > { %s6409_s30 = scalar_lea.sflag [#allocation17], %s5140_s3  ;;  %s6410_s10 = sld [smem:[#allocation79_spill]] }
 0x1ed   : > { %3851 = dma.hbm_to_vmem [thread:$0]  (%p5110_p12), %s5578_s16, 256, %s5581_s12, %s6409_s30, %s4858_s22, %s4858_s22, %s4859_s7  }
 0x1ee   : > { %s891_s27 = scalar_lea.vmem [#allocation21], %s5442_s9 }
 0x1ef   : > { %s898_s1 = sshll.u32 %s891_s27, 4  ;;  %s5616_s1 = int_to_ptr.vmem [resolvable:$true] %s898_s1 }
 0x1f2   : > { %s5613_s18 = scalar_lea.hbm %s6410_s10, %s5467_s13  ;;  %s4482_s12 = scalar_lea.hbm %s6410_s10, 512 }
 0x1f3   : > { %s4478_s29 = scalar_lea.hbm %s5613_s18, 256  ;;  %p4483_p8 = scmp.lt.u32.totalorder %s5613_s18, %s6410_s10 }
 0x1f4   : > { %p4479_p13 = scmp.ne.s32.totalorder %s5613_s18, %s4478_s29  ;;  %p4484_p1 = scmp.lt.u32.totalorder %s4482_s12, %s4478_s29 }
 0x1f5   : > { %p4486_p6 = scmp.lt.u32.totalorder %s4478_s29, %s5613_s18 }
 0x1f6   : > { %p4480_p5 = pnand %p4479_p13, %p5110_p12  ;;  %p4485_p2 = por %p4484_p1, %p4483_p8 }
 0x1f8   : > { %p4481_p7 = pneg %p4480_p5  ;;  %p4487_p0 = por %p4486_p6, %p4485_p2 }
 0x1fa   : > { %p4488_p11 = pnand %p4487_p0, %p4481_p7 }
 0x1fc   : > { %4491 = shalt.err (!%p4488_p11)
}
 0x1fd   : > { %s4492_s23 = scalar_lea.vmem %s5616_s1, 256  ;;  %s4863_s27 = smov [#allocation21]  }
 0x1fe   : > { %p4493_p4 = scmp.ne.s32.totalorder %s5616_s1, %s4492_s23  ;;  %s4496_s2 = sshll.u32 %s4863_s27, 4  ;;  %s4497_s2 = int_to_ptr.vmem [resolvable:$false] %s4496_s2 }
 0x1ff   : > { %s4498_s16 = scalar_lea.vmem %s4497_s2, 512  ;;  %p4499_p10 = scmp.lt.s32.totalorder %s5616_s1, %s4497_s2 }
 0x200   : > { %p4494_p3 = pnand %p4493_p4, %p5110_p12  ;;  %p4500_p13 = scmp.lt.s32.totalorder %s4498_s16, %s4492_s23 }
 0x202   : > { %p4495_p9 = pneg %p4494_p3  ;;  %p4501_p5 = por %p4500_p13, %p4499_p10 }
 0x204   : > { %p4502_p8 = pnand %p4501_p5, %p4495_p9 }
 0x206   : > { %4505 = shalt.err (!%p4502_p8)
}
 0x207   : > { %s6411_s29 = scalar_lea.sflag [#allocation20], %s5140_s3  ;;  %s6412_s15 = sld [smem:[#allocation81_spill]] }
 0x208   : > { %3853 = dma.hbm_to_vmem [thread:$0]  (%p5110_p12), %s5613_s18, 256, %s5616_s1, %s6411_s29, %s4858_s22, %s4858_s22, %s4859_s7  }
 0x209   : > { %s929_s27 = scalar_lea.vmem [#allocation24], %s5442_s9  ;;  %s3531_s16 = sshll.u32 %s5152_s0, 6 }
 0x20a   : > { %s936_s2 = sshll.u32 %s929_s27, 4  ;;  %s5651_s2 = int_to_ptr.vmem [resolvable:$true] %s936_s2 }
 0x20d   : > { %s5648_s23 = scalar_lea.hbm %s6412_s15, %s5467_s13  ;;  %s4510_s29 = scalar_lea.hbm %s6412_s15, 512 }
 0x20e   : > { %s4506_s8 = scalar_lea.hbm %s5648_s23, 256  ;;  %p4511_p6 = scmp.lt.u32.totalorder %s5648_s23, %s6412_s15 }
 0x20f   : > { %p4507_p7 = scmp.ne.s32.totalorder %s5648_s23, %s4506_s8  ;;  %p4512_p0 = scmp.lt.u32.totalorder %s4510_s29, %s4506_s8 }
 0x210   : > { %p4514_p4 = scmp.lt.u32.totalorder %s4506_s8, %s5648_s23 }
 0x211   : > { %p4508_p1 = pnand %p4507_p7, %p5110_p12  ;;  %p4513_p11 = por %p4512_p0, %p4511_p6 }
 0x213   : > { %p4509_p2 = pneg %p4508_p1  ;;  %p4515_p3 = por %p4514_p4, %p4513_p11 }
 0x215   : > { %p4516_p9 = pnand %p4515_p3, %p4509_p2 }
 0x217   : > { %4519 = shalt.err (!%p4516_p9)
}
 0x218   : > { %s4520_s9 = scalar_lea.vmem %s5651_s2, 256  ;;  %s4864_s30 = smov [#allocation24]  }
 0x219   : > { %p4521_p10 = scmp.ne.s32.totalorder %s5651_s2, %s4520_s9  ;;  %s4524_s27 = sshll.u32 %s4864_s30, 4  ;;  %s4525_s27 = int_to_ptr.vmem [resolvable:$false] %s4524_s27 }
 0x21a   : > { %s4526_s18 = scalar_lea.vmem %s4525_s27, 512  ;;  %p4527_p8 = scmp.lt.s32.totalorder %s5651_s2, %s4525_s27 }
 0x21b   : > { %p4522_p13 = pnand %p4521_p10, %p5110_p12  ;;  %p4528_p7 = scmp.lt.s32.totalorder %s4526_s18, %s4520_s9 }
 0x21d   : > { %p4523_p5 = pneg %p4522_p13  ;;  %p4529_p1 = por %p4528_p7, %p4527_p8 }
 0x21f   : > { %p4530_p6 = pnand %p4529_p1, %p4523_p5 }
 0x221   : > { %4533 = shalt.err (!%p4530_p6)
}
 0x222   : > { %s6413_s8 = scalar_lea.sflag [#allocation23], %s5140_s3  ;;  %s3619_s1 = sshll.u32 %s4836_s5, 10 }
 0x223   : > { %3855 = dma.hbm_to_vmem [thread:$0]  (%p5110_p12), %s5648_s23, 256, %s5651_s2, %s6413_s8, %s4858_s22, %s4858_s22, %s4859_s7  }
 0x224   : > { %s6414_s12 = sld [smem:[#allocation83_spill]]  ;;  %s967_s30 = scalar_lea.vmem [#allocation27], %s3531_s16 }
 0x225   : > { %s974_s27 = sshll.u32 %s967_s30, 4  ;;  %s5688_s27 = int_to_ptr.vmem [resolvable:$true] %s974_s27 }
 0x22a   : > { %s5684_s9 = scalar_lea.hbm %s6414_s12, %s3619_s1  ;;  %s4538_s8 = scalar_lea.hbm %s6414_s12, 2048 }
 0x22b   : > { %s4534_s18 = scalar_lea.hbm %s5684_s9, 1024  ;;  %p4539_p4 = scmp.lt.u32.totalorder %s5684_s9, %s6414_s12 }
 0x22c   : > { %p4535_p2 = scmp.ne.s32.totalorder %s5684_s9, %s4534_s18  ;;  %p4540_p3 = scmp.lt.u32.totalorder %s4538_s8, %s4534_s18 }
 0x22d   : > { %p4542_p10 = scmp.lt.u32.totalorder %s4534_s18, %s5684_s9 }
 0x22e   : > { %p4536_p0 = pnand %p4535_p2, %p5110_p12  ;;  %p4541_p9 = por %p4540_p3, %p4539_p4 }
 0x230   : > { %p4537_p11 = pneg %p4536_p0  ;;  %p4543_p13 = por %p4542_p10, %p4541_p9 }
 0x232   : > { %p4544_p5 = pnand %p4543_p13, %p4537_p11 }
 0x234   : > { %4547 = shalt.err (!%p4544_p5)
}
 0x235   : > { %s4548_s16 = scalar_lea.vmem %s5688_s27, 1024  ;;  %s4865_s13 = smov [#allocation27]  }
 0x236   : > { %p4549_p8 = scmp.ne.s32.totalorder %s5688_s27, %s4548_s16  ;;  %s4552_s30 = sshll.u32 %s4865_s13, 4  ;;  %s4553_s30 = int_to_ptr.vmem [resolvable:$false] %s4552_s30 }
 0x237   : > { %s4554_s23 = scalar_lea.vmem %s4553_s30, 2048  ;;  %p4555_p6 = scmp.lt.s32.totalorder %s5688_s27, %s4553_s30 }
 0x238   : > { %p4550_p7 = pnand %p4549_p8, %p5110_p12  ;;  %p4556_p2 = scmp.lt.s32.totalorder %s4554_s23, %s4548_s16 }
 0x23a   : > { %p4551_p1 = pneg %p4550_p7  ;;  %p4557_p0 = por %p4556_p2, %p4555_p6 }
 0x23c   : > { %p4558_p4 = pnand %p4557_p0, %p4551_p1 }
 0x23e   : > { %4561 = shalt.err (!%p4558_p4)
}
 0x23f   : > { %s6415_s18 = scalar_lea.sflag [#allocation26], %s5140_s3  ;;  %s6416_s1 = sld [smem:[#allocation85_spill]] }
 0x240   : > { %3857 = dma.hbm_to_vmem [thread:$0]  (%p5110_p12), %s5684_s9, 1024, %s5688_s27, %s6415_s18, %s4858_s22, %s4858_s22, %s4859_s7  }
 0x241   : > { %s1004_s16 = scalar_lea.vmem [#allocation30], %s5152_s0 }
 0x242   : > { %s1011_s30 = sshll.u32 %s1004_s16, 4  ;;  %s1012_s30 = int_to_ptr.vmem [resolvable:$true] %s1011_s30 }
 0x245   : > { %s6417_s13 = smov %s6416_s1  ;;  %s5720_s29 = scalar_lea.hbm %s6416_s1, %s5179_s28 }
 0x246   : > { %s4562_s23 = scalar_lea.hbm %s5720_s29, 16  ;;  %s4566_s22 = scalar_lea.hbm %s6417_s13, 32 }
 0x247   : > { %p4563_p11 = scmp.ne.s32.totalorder %s5720_s29, %s4562_s23  ;;  %p4567_p10 = scmp.lt.u32.totalorder %s5720_s29, %s6417_s13 }
 0x248   : > { %p4568_p13 = scmp.lt.u32.totalorder %s4566_s22, %s4562_s23  ;;  %p4570_p8 = scmp.lt.u32.totalorder %s4562_s23, %s5720_s29 }
 0x249   : > { %p4564_p3 = pnand %p4563_p11, %p5110_p12 }
 0x24a   : > { %p4569_p5 = por %p4568_p13, %p4567_p10 }
 0x24b   : > { %p4565_p9 = pneg %p4564_p3 }
 0x24c   : > { %p4571_p7 = por %p4570_p8, %p4569_p5 }
 0x24e   : > { %p4572_p1 = pnand %p4571_p7, %p4565_p9 }
 0x250   : > { %4575 = shalt.err (!%p4572_p1)
}
 0x251   : > { %s4576_s27 = scalar_lea.vmem %s1012_s30, 16  ;;  %s4866_s18 = smov [#allocation30]  }
 0x252   : > { %p4577_p6 = scmp.ne.s32.totalorder %s1012_s30, %s4576_s27  ;;  %s4580_s2 = sshll.u32 %s4866_s18, 4  ;;  %s4581_s2 = int_to_ptr.vmem [resolvable:$false] %s4580_s2 }
 0x253   : > { %s4582_s10 = scalar_lea.vmem %s4581_s2, 32  ;;  %p4583_p4 = scmp.lt.s32.totalorder %s1012_s30, %s4581_s2 }
 0x254   : > { %p4578_p2 = pnand %p4577_p6, %p5110_p12  ;;  %p4584_p11 = scmp.lt.s32.totalorder %s4582_s10, %s4576_s27 }
 0x256   : > { %p4579_p0 = pneg %p4578_p2  ;;  %p4585_p3 = por %p4584_p11, %p4583_p4 }
 0x258   : > { %p4586_p10 = pnand %p4585_p3, %p4579_p0 }
 0x25a   : > { %4589 = shalt.err (!%p4586_p10)
}
 0x25b   : > { %s6418_s11 = scalar_lea.sflag [#allocation29], %s5140_s3  ;;  %s6419_s16 = sld [smem:[#allocation86_spill]] }
 0x25c   : > { %3859 = dma.hbm_to_vmem [thread:$0]  (%p5110_p12), %s5720_s29, 16, %s1012_s30, %s6418_s11  }
 0x25d   : > { %s1038_s22 = scalar_lea.vmem [#allocation33], %s5152_s0 }
 0x25e   : > { %s1045_s7 = sshll.u32 %s1038_s22, 4  ;;  %s1046_s7 = int_to_ptr.vmem [resolvable:$true] %s1045_s7 }
 0x261   : > { %s5746_s23 = scalar_lea.hbm %s6419_s16, %s5179_s28  ;;  %s4594_s29 = scalar_lea.hbm %s6419_s16, 32 }
 0x262   : > { %s4590_s9 = scalar_lea.hbm %s5746_s23, 16  ;;  %p4595_p8 = scmp.lt.u32.totalorder %s5746_s23, %s6419_s16 }
 0x263   : > { %p4591_p9 = scmp.ne.s32.totalorder %s5746_s23, %s4590_s9  ;;  %p4596_p7 = scmp.lt.u32.totalorder %s4594_s29, %s4590_s9 }
 0x264   : > { %p4598_p6 = scmp.lt.u32.totalorder %s4590_s9, %s5746_s23 }
 0x265   : > { %p4592_p13 = pnand %p4591_p9, %p5110_p12  ;;  %p4597_p1 = por %p4596_p7, %p4595_p8 }
 0x267   : > { %p4593_p5 = pneg %p4592_p13  ;;  %p4599_p2 = por %p4598_p6, %p4597_p1 }
 0x269   : > { %p4600_p0 = pnand %p4599_p2, %p4593_p5 }
 0x26b   : > { %4603 = shalt.err (!%p4600_p0)
}
 0x26c   : > { %s4604_s10 = scalar_lea.vmem %s1046_s7, 16  ;;  %s4867_s11 = smov [#allocation33]  }
 0x26d   : > { %p4605_p4 = scmp.ne.s32.totalorder %s1046_s7, %s4604_s10  ;;  %s4608_s8 = sshll.u32 %s4867_s11, 4  ;;  %s4609_s8 = int_to_ptr.vmem [resolvable:$false] %s4608_s8 }
 0x26e   : > { %s4610_s1 = scalar_lea.vmem %s4609_s8, 32  ;;  %p4611_p10 = scmp.lt.s32.totalorder %s1046_s7, %s4609_s8 }
 0x26f   : > { %p4606_p11 = pnand %p4605_p4, %p5110_p12  ;;  %p4612_p9 = scmp.lt.s32.totalorder %s4610_s1, %s4604_s10 }
 0x271   : > { %p4607_p3 = pneg %p4606_p11  ;;  %p4613_p13 = por %p4612_p9, %p4611_p10 }
 0x273   : > { %p4614_p7 = pnand %p4613_p13, %p4607_p3 }
 0x275   : > { %4617 = shalt.err (!%p4614_p7)
}
 0x276   : > { %s6420_s22 = scalar_lea.sflag [#allocation32], %s5140_s3  ;;  %s6421_s18 = sld [smem:[#allocation87_spill]] }
 0x277   : > { %3861 = dma.hbm_to_vmem [thread:$0]  (%p5110_p12), %s5746_s23, 16, %s1046_s7, %s6420_s22  }
 0x278   : > { %s1072_s30 = scalar_lea.vmem [#allocation36], %s5152_s0 }
 0x279   : > { %s1079_s2 = sshll.u32 %s1072_s30, 4  ;;  %s1080_s2 = int_to_ptr.vmem [resolvable:$true] %s1079_s2 }
 0x27c   : > { %s5772_s29 = scalar_lea.hbm %s6421_s18, %s5179_s28  ;;  %s4622_s23 = scalar_lea.hbm %s6421_s18, 32 }
 0x27d   : > { %s4618_s10 = scalar_lea.hbm %s5772_s29, 16  ;;  %p4623_p6 = scmp.lt.u32.totalorder %s5772_s29, %s6421_s18 }
 0x27e   : > { %p4619_p5 = scmp.ne.s32.totalorder %s5772_s29, %s4618_s10  ;;  %p4624_p2 = scmp.lt.u32.totalorder %s4622_s23, %s4618_s10 }
 0x27f   : > { %p4626_p4 = scmp.lt.u32.totalorder %s4618_s10, %s5772_s29 }
 0x280   : > { %p4620_p8 = pnand %p4619_p5, %p5110_p12  ;;  %p4625_p0 = por %p4624_p2, %p4623_p6 }
 0x282   : > { %p4621_p1 = pneg %p4620_p8  ;;  %p4627_p11 = por %p4626_p4, %p4625_p0 }
 0x284   : > { %p4628_p3 = pnand %p4627_p11, %p4621_p1 }
 0x286   : > { %4631 = shalt.err (!%p4628_p3)
}
 0x287   : > { %s4632_s22 = scalar_lea.vmem %s1080_s2, 16  ;;  %s4868_s9 = smov [#allocation36]  }
 0x288   : > { %p4633_p10 = scmp.ne.s32.totalorder %s1080_s2, %s4632_s22  ;;  %s4636_s27 = sshll.u32 %s4868_s9, 4  ;;  %s4637_s27 = int_to_ptr.vmem [resolvable:$false] %s4636_s27 }
 0x289   : > { %s4638_s30 = scalar_lea.vmem %s4637_s27, 32  ;;  %p4639_p7 = scmp.lt.s32.totalorder %s1080_s2, %s4637_s27 }
 0x28a   : > { %p4634_p9 = pnand %p4633_p10, %p5110_p12  ;;  %p4640_p5 = scmp.lt.s32.totalorder %s4638_s30, %s4632_s22 }
 0x28c   : > { %p4635_p13 = pneg %p4634_p9  ;;  %p4641_p8 = por %p4640_p5, %p4639_p7 }
 0x28e   : > { %p4642_p2 = pnand %p4641_p8, %p4635_p13 }
 0x290   : > { %4645 = shalt.err (!%p4642_p2)
}
 0x291   : > { %s6422_s10 = scalar_lea.sflag [#allocation35], %s5140_s3  ;;  %s6423_s23 = sld [smem:[#allocation88_spill]] }
 0x292   : > { %3863 = dma.hbm_to_vmem [thread:$0]  (%p5110_p12), %s5772_s29, 16, %s1080_s2, %s6422_s10  }
 0x293   : > { %s1089_s22 = scalar_lea.vmem [#allocation37], %s5152_s0  ;;  %s1087_s27 = scalar_lea.sflag [#allocation38], %s5152_s0 }
 0x294   : > { %s1096_s9 = sshll.u32 %s1089_s22, 4  ;;  %s1097_s9 = int_to_ptr.vmem [resolvable:$true] %s1096_s9 }
 0x297   : > { %s6424_s7 = smov %s6423_s23  ;;  %s5798_s1 = scalar_lea.hbm %s6423_s23, %s5179_s28 }
 0x298   : > { %s4646_s3 = scalar_lea.hbm %s5798_s1, 16  ;;  %s4650_s2 = scalar_lea.hbm %s6424_s7, 32 }
 0x299   : > { %p4647_p1 = scmp.ne.s32.totalorder %s5798_s1, %s4646_s3  ;;  %p4651_p4 = scmp.lt.u32.totalorder %s5798_s1, %s6424_s7 }
 0x29a   : > { %p4652_p11 = scmp.lt.u32.totalorder %s4650_s2, %s4646_s3  ;;  %p4654_p10 = scmp.lt.u32.totalorder %s4646_s3, %s5798_s1 }
 0x29b   : > { %p4648_p6 = pnand %p4647_p1, %p5110_p12 }
 0x29c   : > { %p4653_p3 = por %p4652_p11, %p4651_p4 }
 0x29d   : > { %p4649_p0 = pneg %p4648_p6 }
 0x29e   : > { %p4655_p9 = por %p4654_p10, %p4653_p3 }
 0x2a0   : > { %p4656_p13 = pnand %p4655_p9, %p4649_p0 }
 0x2a2   : > { %4659 = shalt.err (!%p4656_p13)
}
 0x2a3   : > { %s4660_s0 = scalar_lea.vmem %s1097_s9, 16  ;;  %s4869_s11 = smov [#allocation37]  }
 0x2a4   : > { %p4661_p7 = scmp.ne.s32.totalorder %s1097_s9, %s4660_s0  ;;  %s4664_s8 = sshll.u32 %s4869_s11, 4  ;;  %s4665_s8 = int_to_ptr.vmem [resolvable:$false] %s4664_s8 }
 0x2a5   : > { %s4666_s23 = scalar_lea.vmem %s4665_s8, 32  ;;  %p4667_p2 = scmp.lt.s32.totalorder %s1097_s9, %s4665_s8 }
 0x2a6   : > { %p4662_p5 = pnand %p4661_p7, %p5110_p12  ;;  %p4668_p1 = scmp.lt.s32.totalorder %s4666_s23, %s4660_s0 }
 0x2a8   : > { %p4663_p8 = pneg %p4662_p5  ;;  %p4669_p6 = por %p4668_p1, %p4667_p2 }
 0x2aa   : > { %p4670_p4 = pnand %p4669_p6, %p4663_p8 }
 0x2ac   : > { %4673 = shalt.err (!%p4670_p4)
}
 0x2ad   : > { %3864 = dma.hbm_to_vmem [thread:$0]  (%p5110_p12), %s5798_s1, 16, %s1097_s9, %s1087_s27  }
 0x2ae PF: > { %p3541_p0 = scmp.ge.s32.totalorder %s4844_s6, 1  ;;  %p1101_p11 = scmp.lt.s32.totalorder %s4844_s6, 5 }
 0x2b0   : > { %p1102_p3 = pnand %p3541_p0, %p1101_p11 }
 0x2b1   : > { %s6425_s22 = sld [smem:[#allocation63_spill]] (!%p1102_p3)  ;;  %s5822_s3 = sand.u32 (!%p1102_p3), 1, %s4820_s4  }
 0x2b2   : > { %1105 = sbr.rel (%p1102_p3) target bundleno = 5624 (0x15f8), region = 108  ;;  %s6334_s30 = sshll.u32 (!%p1102_p3), %s5822_s3, 3 }
 0x2b3   : > { %s1108_s29 = scalar_lea.sflag (!%p1102_p3), [#allocation5], %s5822_s3  ;;  %s5828_s14 = scalar_lea.vmem (!%p1102_p3), [#allocation4], %s6334_s30 }
 0x2b7   : > { %p6426_p12 = scmp.ne.s32.totalorder (!%p1102_p3), %s6425_s22, 0 }
 0x2b9   : > { %4747 = dma.done.wait (%p6426_p12), %s1108_s29, 128  }
 0x2ba   : > { %4749 = vsyncadd (%p6426_p12), %s1108_s29, 4294967168  ;;  %s6427_s1 = sld [smem:[#allocation60_spill]]  ;;  %s3543_s27 = sshll.u32 %s5822_s3, 2 }
 0x2bb   : > { %s5839_s10 = scalar_lea.vmem [#allocation7], %s3543_s27 }
 0x2c0   : > { %s5835_s9 = sand.u32 1, %s6427_s1  }
 0x2c1   : > { %s1117_s2 = scalar_lea.sflag [#allocation8], %s5835_s9 }
 0x2c2   : > { %4751 = dma.done.wait (%p6426_p12), %s1117_s2, 64  }
 0x2c3   : > { %4753 = vsyncadd (%p6426_p12), %s1117_s2, 4294967232  ;;  %s6428_s28 = sld [smem:[#allocation54_spill]]  ;;  %s6429_s0 = sld [smem:[#allocation66_spill]] }
 0x2c9   : > { %s5846_s11 = sand.u32 1, %s6428_s28   ;;  %p6430_p10 = scmp.ne.s32.totalorder %s6429_s0, 0 }
 0x2ca   : > { %s5849_s8 = sshll.u32 %s5846_s11, 4 }
 0x2cb   : > { %4755 = dma.done.wait (%p6430_p10), %s1117_s2, 256  }
 0x2cc   : > { %4757 = vsyncadd (%p6430_p10), %s1117_s2, 4294967040  ;;  %s1135_s29 = scalar_lea.sflag [#allocation11], %s5835_s9 }
 0x2cd   : > { %4759 = dma.done.wait (%p6430_p10), %s1135_s29, 272  }
 0x2ce   : > { %4761 = vsyncadd (%p6430_p10), %s1135_s29, 4294967024  ;;  %s1152_s27 = scalar_lea.sflag [#allocation14], %s5835_s9 }
 0x2cf   : > { %4763 = dma.done.wait (%p6430_p10), %s1152_s27, 272  }
 0x2d0   : > { %4765 = vsyncadd (%p6430_p10), %s1152_s27, 4294967024  ;;  %s1169_s22 = scalar_lea.sflag [#allocation17], %s5835_s9 }
 0x2d1   : > { %4767 = dma.done.wait (%p6430_p10), %s1169_s22, 272  }
 0x2d2   : > { %4769 = vsyncadd (%p6430_p10), %s1169_s22, 4294967024  ;;  %s1186_s28 = scalar_lea.sflag [#allocation20], %s5835_s9 }
 0x2d3   : > { %4771 = dma.done.wait (%p6430_p10), %s1186_s28, 272  }
 0x2d4   : > { %4773 = vsyncadd (%p6430_p10), %s1186_s28, 4294967024  ;;  %s1203_s23 = scalar_lea.sflag [#allocation23], %s5835_s9 }
 0x2d5   : > { %4775 = dma.done.wait (%p6430_p10), %s1203_s23, 272  }
 0x2d6   : > { %4777 = vsyncadd (%p6430_p10), %s1203_s23, 4294967024  ;;  %s1220_s1 = scalar_lea.sflag [#allocation26], %s5835_s9 }
 0x2d7   : > { %4779 = dma.done.wait (%p6430_p10), %s1220_s1, 1040  }
 0x2d8   : > { %4781 = vsyncadd (%p6430_p10), %s1220_s1, 4294966256  ;;  %s3550_s28 = sshll.u32 %s5846_s11, 6  ;;  %s1237_s23 = scalar_lea.sflag [#allocation29], %s5835_s9 }
 0x2d9   : > { %s5898_s2 = scalar_lea.vmem [#allocation27], %s3550_s28 }
 0x2da   : > { %4783 = dma.done.wait (%p6430_p10), %s1237_s23, 32  }
 0x2db   : > { %4785 = vsyncadd (%p6430_p10), %s1237_s23, 4294967264  ;;  %s1253_s1 = scalar_lea.sflag [#allocation32], %s5835_s9 }
 0x2dc   : > { %4787 = dma.done.wait (%p6430_p10), %s1253_s1, 32  }
 0x2dd   : > { %4789 = vsyncadd (%p6430_p10), %s1253_s1, 4294967264  ;;  %s1269_s27 = scalar_lea.sflag [#allocation35], %s5835_s9 }
 0x2de   : > { %4791 = dma.done.wait (%p6430_p10), %s1269_s27, 32  }
 0x2df   : > { %4793 = vsyncadd (%p6430_p10), %s1269_s27, 4294967264  ;;  %s1285_s22 = scalar_lea.sflag [#allocation38], %s5846_s11 }
 0x2e0   : > { %4795 = dma.done.wait (%p6430_p10), %s1285_s22, 16  }
 0x2e1   : > { %4797 = vsyncadd (%p6430_p10), %s1285_s22, 4294967280  ;;  %s6431_s9 = sshll.u32 %s5822_s3, 3  ;;  %s6432_s30 = sld [smem:[#allocation58_spill]] }
 0x2e2   : > { %s5929_s1 = scalar_lea.vmem [#allocation39], %s6431_s9 }
 0x2e7   : > { %p3552_p9 = scmp.ne.s32.totalorder %s6432_s30, 0 }
 0x2e8   : > { %v1445_v0 = vld [vmem:[%s5828_s14] sm:$0xff] (!%p3552_p9)  ;;  %vm1446_vm0 = vcmask (!%p3552_p9), 261120  }
 0x2e9   : > { %1444 = sbr.rel (%p3552_p9) target bundleno = 752 (0x2f0), region = 200  ;;  %1447 = vst.msk [vmem:[#allocation2] sm:$0xff] (!%p3552_p9), %vm1446_vm0, %v1445_v0 }
 0x2f0 PF: > { %s6433_s27 = scalar_lea.vmem [#allocation9], %s5849_s8  ;;  %v4870_v2 = vmov 0.0   ;;  %vm4871_vm1 = vmmov 0   ;;  %v5941_v4 = vld [vmem:[#allocation2] sm:$0xff]  ;;  %vm1481_vm2 = vcmask 261120   ;;  %s6435_s30 = scalar_lea.vmem [#allocation10], %s5846_s11  ;;  %v1451_v17 = vlaneseq }
 0x2f1   : > { %v4000_v1 = vld [vmem:[%s6433_s27] sm:$0xff]   ;;  %3679 = vmatprep.subr.bf16.mxu1 %v4870_v2  ;;  %3705 = vmatprep.subr.bf16.mxu0 %v4870_v2  ;;  %s6434_s0 = smov %s6433_s27  ;;  %v1457_v5 = vpack.c.bf16 %v5941_v4, %v5941_v4  ;;  %v3553_v6 = vld [vmem:[%s6435_s30] ss:$0 sm:$0xff]  ;;  %s4872_s14 = smov 64   ;;  %vm1529_vm3 = vcmask 64512   ;;  %vm1593_vm4 = vcmask 1043456  }
 0x2f2   : > { %3680 = vmatpush3.bf16.msra.mxu1 %v4000_v1  ;;  %v4001_v3 = vld [vmem:[%s6434_s0 + $0x8] sm:$0xff]   ;;  %3683 = vmatprep.mubr.msk.bf16.mxu1 %vm4871_vm1, %v4870_v2  ;;  %s4873_s22 = smov 96   ;;  %s6335_s9 = smov 88   ;;  %v1452_v18 = vshrl.u32 %v1451_v17, 7  ;;  %v1454_v19 = vand.u32 127, %v1451_v17  ;;  %vm1752_vm6 = vcmask 130112  }
 0x2f3   : > { %3681 = vmatprep.subr.bf16.mxu1 %v4870_v2  ;;  %3707 = vmatprep.mubr.msk.bf16.mxu0 %vm4871_vm1, %v4870_v2  ;;  %s6336_s27 = smov 72   ;;  %s4876_s0 = smov 120   ;;  %vm1868_vm7 = vcmask 195712   ;;  %vm1984_vm8 = vcmask 261312   ;;  %vm2266_vm9 = vcmask 31744   ;;  %vm2285_vm10 = vcmask 1041408  }
 0x2f4   : > { %vm1455_vm5 = vcmp.gt.s32.totalorder %v1454_v19, %v1452_v18  ;;  %s4877_s30 = smov 80   ;;  %s4879_s29 = smov 104  }
 0x2f5   : > { %v5970_v20 = vsel %vm1455_vm5, -1e+30, %v4870_v2  ;;  %s4880_s23 = smov 56   ;;  %s4881_s28 = smov 48  }
 0x2f6   : > { %3682 = vmatpush3.bf16.msra.mxu1 %v4001_v3 }
 0x2f7   : > { %3687 = vmatprep.subr.bf16.mxu1 %v4870_v2 }
 0x2f9   : > { %3684 = vmatmul.mubr.msk.bf16.vlgmr.msra.gmra.mrb[0].mxu1 %vm1481_vm2, %v1457_v5 }
 0x2fa   : > { %3689 = vmatprep.mubr.msk.bf16.mxu1 %vm4871_vm1, %v4870_v2 }
 0x3cc   : > { %v1519_v7 = vpop.f32.mrb[0].mxu1 }
 0x3cd   : > { %v1520_v8 = vadd.f32 %v3553_v6, %v1519_v7  ;;  %v3685_v9 = vpop.f32.mrb[1].mxu1 }
 0x3ce   : > { %v1522_v10 = vpop.f32.mrb[2].mxu1 }
 0x3cf   : > { %v5954_v11 = vpack.c.bf16 %v1520_v8, %v1520_v8  ;;  %v3686_v12 = vpop.f32.mrb[3].mxu1 }
 0x3d1   : > { %1588 = vrot.lane.b32.xlu1 %v5954_v11, %s4872_s14  ;;  %1527 = vrot.lane.b32.xlu0 %v5954_v11, %s4873_s22  ;;  %s4878_s14 = smov 112  }
 0x3d5   : > { %1640 = vrot.lane.b32.xlu1 %v5954_v11, %s6335_s9  ;;  %s4882_s9 = smov 40  }
 0x443   : > { %v1528_v13 = vpop.permute.xlu0 %1527  ;;  %v1589_v15 = vpop.permute.xlu1 %1588 }
 0x444   : > { %v1534_v14 = vsel %vm1529_vm3, %v1528_v13, 0  ;;  %v1595_v16 = vsel %vm1593_vm4, %v1589_v15, 0 }
 0x445   : > { %3688 = vmatpush3.bf16.xpose.msra.mxu1 %v1534_v14 }
 0x446   : > { %3693 = vmatprep.subr.bf16.mxu1 %v4870_v2 }
 0x447   : > { %v1641_v32 = vpop.permute.xlu1 %1640 }
 0x448   : > { %v1646_v38 = vsel %vm1529_vm3, %v1641_v32, 0 }
 0x44c   : > { %3690 = vmatmul.mubr.msk.bf16.vlgmr.msra.gmra.mrb[4].mxu1 %vm1529_vm3, %v5954_v11 }
 0x44d   : > { %3694 = vmatpush3.bf16.msra.mxu1 %v1595_v16  ;;  %3695 = vmatprep.mubr.msk.bf16.mxu1 %vm4871_vm1, %v4870_v2 }
 0x44e   : > { %3699 = vmatprep.subr.bf16.mxu1 %v4870_v2 }
 0x51f   : > { %v1570_v21 = vpop.f32.mrb[4].mxu1 }
 0x520   : > { %v1571_v22 = vadd.f32 %v1570_v21, %v5970_v20  ;;  %v3691_v23 = vpop.f32.mrb[5].mxu1 }
 0x521   : > { %v1573_v24 = vpop.f32.mrb[6].mxu1 }
 0x522   : > { %v3692_v25 = vpop.f32.mrb[7].mxu1  ;;  %v1576_v26 = vsel %vm1529_vm3, %v1571_v22, -inf }
 0x523   : > { %1577 = vmax.xlane.f32.xlu0 %v1576_v26 }
 0x539   : > { %1872 = vrot.lane.b32.xlu0 %v5954_v11, %s6336_s27  ;;  %s4884_s27 = smov 16  }
 0x5b0   : > { %v1578_v27 = vpop.xlane.xlu0 %1577 }
 0x5b1   : > { %v1579_v28 = vsub.f32 %v1571_v22, %v1578_v27 }
 0x5b3   : > { %v1580_v29 = vmul.f32 1.442695, %v1579_v28 }
 0x5b4   : > { %v1873_v41 = vpop.permute.xlu0 %1872 }
 0x5b5   : > { %4020 = vpow2.f32 %v1580_v29  ;;  %v1878_v43 = vsel %vm1529_vm3, %v1873_v41, 0 }
 0x5bf   : > { %v4021_v30 = vpop.eup %4020 }
 0x5c0   : > { %v1582_v31 = vsel %vm1529_vm3, %v4021_v30, 0.0 }
 0x5c1   : > { %1583 = vadd.xlane.f32.xlu1 %v1582_v31 }
 0x5d2   : > { %1638 = vrot.lane.b32.xlu1 %v5954_v11, %s4876_s0 }
 0x5d6   : > { %1756 = vrot.lane.b32.xlu1 %v5954_v11, %s4877_s30 }
 0x5da   : > { %1754 = vrot.lane.b32.xlu1 %v5954_v11, %s4878_s14 }
 0x5de   : > { %1870 = vrot.lane.b32.xlu1 %v5954_v11, %s4879_s29 }
 0x64e   : > { %v1584_v33 = vpop.xlane.xlu1 %1583 }
 0x64f   : > { %4022 = vrcp.f32 %v1584_v33 }
 0x652   : > { %v1639_v37 = vpop.permute.xlu1 %1638 }
 0x656   : > { %v1757_v39 = vpop.permute.xlu1 %1756 }
 0x657   : > { %v1762_v40 = vsel %vm1529_vm3, %v1757_v39, 0 }
 0x659   : > { %v4023_v34 = vpop.eup %4022 }
 0x65a   : > { %v1586_v35 = vmul.f32 %v4023_v34, %v4021_v30  ;;  %v1755_v42 = vpop.permute.xlu1 %1754 }
 0x65c   : > { %v1587_v36 = vpack.c.bf16 %v1586_v35, %v1586_v35 }
 0x65e   : > { %3696 = vmatmul.mubr.msk.bf16.vlgmr.msra.gmra.mrb[8].mxu1 %vm1529_vm3, %v1587_v36  ;;  %v1871_v44 = vpop.permute.xlu1 %1870 }
 0x65f   : > { %3700 = vmatpush3.bf16.xpose.msra.mxu1 %v1646_v38  ;;  %3701 = vmatprep.mubr.msk.bf16.mxu1 %vm4871_vm1, %v4870_v2 }
 0x660   : > { %3711 = vmatprep.subr.bf16.mxu1 %v4870_v2 }
 0x666   : > { %3702 = vmatmul.mubr.msk.bf16.vlgmr.msra.gmra.mrb[12].mxu1 %vm1529_vm3, %v1639_v37 }
 0x667   : > { %3712 = vmatpush3.bf16.xpose.msra.mxu1 %v1762_v40  ;;  %3713 = vmatprep.mubr.msk.bf16.mxu1 %vm4871_vm1, %v4870_v2 }
 0x668   : > { %3723 = vmatprep.subr.bf16.mxu1 %v4870_v2 }
 0x66e   : > { %3714 = vmatmul.mubr.msk.bf16.vlgmr.msra.gmra.mrb[16].mxu1 %vm1529_vm3, %v1755_v42 }
 0x66f   : > { %3724 = vmatpush3.bf16.xpose.msra.mxu1 %v1878_v43  ;;  %3725 = vmatprep.mubr.msk.bf16.mxu1 %vm4871_vm1, %v4870_v2 }
 0x670   : > { %3735 = vmatprep.subr.bf16.mxu1 %v4870_v2 }
 0x676   : > { %3726 = vmatmul.mubr.msk.bf16.vlgmr.msra.gmra.mrb[20].mxu1 %vm1529_vm3, %v1871_v44 }
 0x677   : > { %3739 = vmatprep.mubr.msk.bf16.mxu1 %vm4871_vm1, %v4870_v2 }
 0x731   : > { %v1631_v45 = vpop.f32.mrb[8].mxu1 }
 0x732   : > { %1637 = vst.msk [vmem:[#allocation3] sm:$0xff] %vm1529_vm3, %v1631_v45  ;;  %v3697_v46 = vpop.f32.mrb[9].mxu1 }
 0x733   : > { %v1634_v47 = vpop.f32.mrb[10].mxu1 }
 0x734   : > { %v3698_v48 = vpop.f32.mrb[11].mxu1 }
 0x739   : > { %v1682_v49 = vpop.f32.mrb[12].mxu1 }
 0x73a   : > { %v1683_v50 = vadd.f32 %v1682_v49, %v5970_v20  ;;  %v3703_v51 = vpop.f32.mrb[13].mxu1 }
 0x73b   : > { %v1685_v52 = vpop.f32.mrb[14].mxu1 }
 0x73c   : > { %v3704_v53 = vpop.f32.mrb[15].mxu1  ;;  %v1688_v54 = vsel %vm1529_vm3, %v1683_v50, -inf }
 0x73d   : > { %1689 = vmax.xlane.f32.xlu1 %v1688_v54 }
 0x741   : > { %v1798_v55 = vpop.f32.mrb[16].mxu1 }
 0x742   : > { %v1799_v56 = vadd.f32 %v1798_v55, %v5970_v20  ;;  %v3715_v57 = vpop.f32.mrb[17].mxu1 }
 0x743   : > { %v1801_v58 = vpop.f32.mrb[18].mxu1 }
 0x744   : > { %v3716_v59 = vpop.f32.mrb[19].mxu1  ;;  %v1804_v60 = vsel %vm1529_vm3, %v1799_v56, -inf }
 0x745   : > { %1805 = vmax.xlane.f32.xlu0 %v1804_v60 }
 0x749   : > { %v1914_v61 = vpop.f32.mrb[20].mxu1 }
 0x74a   : > { %v1915_v62 = vadd.f32 %v1914_v61, %v5970_v20  ;;  %v3727_v63 = vpop.f32.mrb[21].mxu1 }
 0x74b   : > { %v1917_v0 = vpop.f32.mrb[22].mxu1 }
 0x74c   : > { %v3728_v1 = vpop.f32.mrb[23].mxu1  ;;  %v1920_v3 = vsel %vm1529_vm3, %v1915_v62, -inf }
 0x74d   : > { %1921 = vmax.xlane.f32.xlu1 %v1920_v3 }
 0x7ca   : > { %v1690_v5 = vpop.xlane.xlu1 %1689 }
 0x7cb   : > { %v1691_v6 = vsub.f32 %v1683_v50, %v1690_v5 }
 0x7cd   : > { %v1692_v7 = vmul.f32 1.442695, %v1691_v6 }
 0x7cf   : > { %4024 = vpow2.f32 %v1692_v7 }
 0x7d2   : > { %v1806_v16 = vpop.xlane.xlu0 %1805 }
 0x7d3   : > { %v1807_v17 = vsub.f32 %v1799_v56, %v1806_v16 }
 0x7d5   : > { %v1808_v18 = vmul.f32 1.442695, %v1807_v17 }
 0x7d9   : > { %v4025_v8 = vpop.eup %4024 }
 0x7da   : > { %v1922_v9 = vpop.xlane.xlu1 %1921  ;;  %v1694_v10 = vsel %vm1529_vm3, %v4025_v8, 0.0 }
 0x7db   : > { %v1923_v12 = vsub.f32 %v1915_v62, %v1922_v9  ;;  %1695 = vadd.xlane.f32.xlu1 %v1694_v10 }
 0x7dd   : > { %v1924_v13 = vmul.f32 1.442695, %v1923_v12 }
 0x7df   : > { %4026 = vpow2.f32 %v1924_v13 }
 0x7e0   : > { %4028 = vpow2.f32 %v1808_v18 }
 0x7e9   : > { %v4027_v14 = vpop.eup %4026 }
 0x7ea   : > { %v1926_v15 = vsel %vm1529_vm3, %v4027_v14, 0.0  ;;  %v4029_v19 = vpop.eup %4028 }
 0x7eb   : > { %1927 = vadd.xlane.f32.xlu0 %v1926_v15  ;;  %v1810_v20 = vsel %vm1529_vm3, %v4029_v19, 0.0 }
 0x7ec   : > { %1700 = vrot.lane.b32.xlu1 %v5954_v11, %s4880_s23  ;;  %s6436_s23 = scalar_lea.vmem [#allocation12], %s5849_s8 }
 0x7ed   : > { %v4002_v42 = vld [vmem:[%s6436_s23] sm:$0xff]  }
 0x7ee   : > { %3736 = vmatpush3.bf16.msra.mxu1 %v4002_v42 }
 0x7ef   : > { %3737 = vmatprep.subr.bf16.mxu1 %v4870_v2 }
 0x801   : > { %1816 = vrot.lane.b32.xlu0 %v5954_v11, %s4881_s28  ;;  %s6337_s28 = smov 8  }
 0x810   : > { %1811 = vadd.xlane.f32.xlu1 %v1810_v20 }
 0x821   : > { %1932 = vrot.lane.b32.xlu1 %v5954_v11, %s4882_s9  ;;  %s6437_s9 = smov %s6436_s23  ;;  %s6438_s23 = scalar_lea.vmem [#allocation13], %s5846_s11 }
 0x822   : > { %v4003_v43 = vld [vmem:[%s6437_s9 + $0x8] sm:$0xff]   ;;  %v3565_v57 = vld [vmem:[%s6438_s23] ss:$0 sm:$0xff]  ;;  %s6439_s9 = scalar_lea.vmem [#allocation18], %s5849_s8 }
 0x823   : > { %3738 = vmatpush3.bf16.msra.mxu1 %v4003_v43  ;;  %s6440_s23 = smov %s6439_s9 }
 0x824   : > { %3751 = vmatprep.subr.bf16.mxu1 %v4870_v2  ;;  %v4005_v9 = vld [vmem:[%s6440_s23 + $0x8] sm:$0xff]   ;;  %s6444_s23 = scalar_lea.vmem [#allocation31], %s5846_s11 }
 0x825   : > { %v3570_v20 = vld [vmem:[%s6444_s23] ss:$0 sm:$0xff]  ;;  %s6454_s23 = scalar_lea.vmem [#allocation24], %s5849_s8 }
 0x868   : > { %v1696_v21 = vpop.xlane.xlu1 %1695 }
 0x869   : > { %4030 = vrcp.f32 %v1696_v21 }
 0x86c   : > { %v1701_v22 = vpop.permute.xlu1 %1700 }
 0x86d   : > { %v1706_v23 = vsel %vm1593_vm4, %v1701_v22, 0 }
 0x86e   : > { %3706 = vmatpush3.bf16.msra.mxu0 %v1706_v23 }
 0x86f   : > { %3717 = vmatprep.subr.bf16.mxu0 %v4870_v2 }
 0x873   : > { %v4031_v24 = vpop.eup %4030 }
 0x874   : > { %v1698_v25 = vmul.f32 %v4031_v24, %v4025_v8  ;;  %v4004_v8 = vld [vmem:[%s6439_s9] sm:$0xff]  }
 0x876   : > { %v1699_v26 = vpack.c.bf16 %v1698_v25, %v1698_v25 }
 0x878   : > { %v1928_v27 = vpop.xlane.xlu0 %1927  ;;  %3708 = vmatmul.mubr.msk.bf16.vlgmr.msra.gmra.mrb[0].mxu0 %vm1529_vm3, %v1699_v26 }
 0x879   : > { %3719 = vmatprep.mubr.msk.bf16.mxu0 %vm4871_vm1, %v4870_v2 }
 0x87c   : > { %v1817_v28 = vpop.permute.xlu0 %1816 }
 0x87d   : > { %v1822_v11 = vsel %vm1593_vm4, %v1817_v28, 0 }
 0x87e   : > { %3718 = vmatpush3.bf16.msra.mxu0 %v1822_v11 }
 0x87f   : > { %3729 = vmatprep.subr.bf16.mxu0 %v4870_v2 }
 0x89d   : > { %v1812_v29 = vpop.xlane.xlu1 %1811 }
 0x89e   : > { %4032 = vrcp.f32 %v1812_v29 }
 0x89f   : > { %4034 = vrcp.f32 %v1928_v27 }
 0x8a1   : > { %v1933_v32 = vpop.permute.xlu1 %1932 }
 0x8a2   : > { %v1938_v35 = vsel %vm1593_vm4, %v1933_v32, 0 }
 0x8a8   : > { %v4033_v30 = vpop.eup %4032 }
 0x8a9   : > { %v1814_v31 = vmul.f32 %v4033_v30, %v4029_v19  ;;  %v4035_v34 = vpop.eup %4034 }
 0x8aa   : > { %v1930_v36 = vmul.f32 %v4035_v34, %v4027_v14 }
 0x8ab   : > { %v1815_v33 = vpack.c.bf16 %v1814_v31, %v1814_v31 }
 0x8ac   : > { %v1931_v37 = vpack.c.bf16 %v1930_v36, %v1930_v36 }
 0x8ad   : > { %3720 = vmatmul.mubr.msk.bf16.vlgmr.msra.gmra.mrb[4].mxu0 %vm1529_vm3, %v1815_v33 }
 0x8ae   : > { %3730 = vmatpush3.bf16.msra.mxu0 %v1938_v35  ;;  %3731 = vmatprep.mubr.msk.bf16.mxu0 %vm4871_vm1, %v4870_v2 }
 0x8af   : > { %3743 = vmatprep.subr.bf16.mxu0 %v4870_v2 }
 0x8b5   : > { %3732 = vmatmul.mubr.msk.bf16.vlgmr.msra.gmra.mrb[8].mxu0 %vm1529_vm3, %v1931_v37 }
 0x8b6   : > { %3747 = vmatprep.mubr.msk.bf16.mxu0 %vm4871_vm1, %v4870_v2 }
 0x94b   : > { %v1742_v38 = vpop.f32.mrb[0].mxu0 }
 0x94c   : > { %1749 = vrot.lane.b32.xlu1 %v1742_v38, %s6337_s28  ;;  %v3709_v39 = vpop.f32.mrb[1].mxu0  ;;  %s6338_s28 = smov 24  }
 0x94d   : > { %v1745_v40 = vpop.f32.mrb[2].mxu0 }
 0x94e   : > { %v3710_v41 = vpop.f32.mrb[3].mxu0 }
 0x980   : > { %v1858_v44 = vpop.f32.mrb[4].mxu0 }
 0x981   : > { %1865 = vrot.lane.b32.xlu0 %v1858_v44, %s4884_s27  ;;  %v3721_v45 = vpop.f32.mrb[5].mxu0 }
 0x982   : > { %v1861_v46 = vpop.f32.mrb[6].mxu0 }
 0x983   : > { %v3722_v47 = vpop.f32.mrb[7].mxu0 }
 0x988   : > { %v1974_v48 = vpop.f32.mrb[8].mxu0 }
 0x989   : > { %1981 = vrot.lane.b32.xlu1 %v1974_v48, %s6338_s28  ;;  %v3733_v49 = vpop.f32.mrb[9].mxu0  ;;  %s6441_s28 = scalar_lea.vmem [#allocation15], %s5849_s8 }
 0x98a   : > { %v1977_v50 = vpop.f32.mrb[10].mxu0  ;;  %v4006_v12 = vld [vmem:[%s6441_s28] sm:$0xff]   ;;  %s6442_s9 = smov %s6441_s28  ;;  %s6445_s28 = scalar_lea.vmem [#allocation19], %s5846_s11 }
 0x98b   : > { %v3734_v51 = vpop.f32.mrb[11].mxu0  ;;  %3744 = vmatpush3.bf16.msra.mxu0 %v4006_v12  ;;  %v4007_v13 = vld [vmem:[%s6442_s9 + $0x8] sm:$0xff]   ;;  %v3575_v24 = vld [vmem:[%s6445_s28] ss:$0 sm:$0xff]  ;;  %s6446_s9 = scalar_lea.vmem [#allocation16], %s5846_s11  ;;  %s6455_s28 = smov %s6454_s23 }
 0x98c   : > { %3745 = vmatprep.subr.bf16.mxu0 %v4870_v2  ;;  %v3571_v31 = vld [vmem:[%s6446_s9] ss:$0 sm:$0xff]  ;;  %s6457_s9 = scalar_lea.vmem [#allocation34], %s5846_s11 }
 0x98f   : > { %3746 = vmatpush3.bf16.msra.mxu0 %v4007_v13 }
 0x990   : > { %3759 = vmatprep.subr.bf16.mxu0 %v4870_v2 }
 0x9be   : > { %v1750_v52 = vpop.permute.xlu1 %1749 }
 0x9bf   : > { %1753 = vst.msk [vmem:[#allocation3] sm:$0xff] %vm1752_vm6, %v1750_v52 }
 0x9f3   : > { %v1866_v53 = vpop.permute.xlu0 %1865 }
 0x9f4   : > { %1869 = vst.msk [vmem:[#allocation3] sm:$0xff] %vm1868_vm7, %v1866_v53 }
 0x9fb   : > { %v1982_v54 = vpop.permute.xlu1 %1981 }
 0x9fc   : > { %1985 = vst.msk [vmem:[#allocation3] sm:$0xff] %vm1984_vm8, %v1982_v54 }
 0xa03   : > { %v1986_v55 = vld [vmem:[#allocation3] sm:$0xff] }
 0xa04   : > { %v1987_v56 = vpack.c.bf16 %v1986_v55, %v1986_v55 }
 0xa06   : > { %3740 = vmatmul.mubr.msk.bf16.vlgmr.msra.gmra.mrb[24].mxu1 %vm1481_vm2, %v1987_v56 }
 0xa07   : > { %3755 = vmatprep.mubr.msk.bf16.mxu1 %vm4871_vm1, %v4870_v2  ;;  %3752 = vmatpush3.bf16.msra.mxu1 %v4004_v8 }
 0xa08   : > { %3753 = vmatprep.subr.bf16.mxu1 %v4870_v2 }
 0xa0b   : > { %3754 = vmatpush3.bf16.msra.mxu1 %v4005_v9 }
 0xa0c   : > { %3765 = vmatprep.subr.bf16.mxu1 %v4870_v2 }
 0xad9   : > { %v2048_v58 = vpop.f32.mrb[24].mxu1 }
 0xada   : > { %v2049_v59 = vadd.f32 %v3565_v57, %v2048_v58  ;;  %v3741_v60 = vpop.f32.mrb[25].mxu1 }
 0xadb   : > { %v2051_v61 = vpop.f32.mrb[26].mxu1 }
 0xadc   : > { %v3742_v62 = vpop.f32.mrb[27].mxu1  ;;  %v2054_v63 = vadd.f32 %v2049_v59, %v5941_v4  ;;  %v1449_v4 = vld [vmem:[%s5839_s10] sm:$0xf]  ;;  %s6443_s10 = scalar_lea.vmem [#allocation30], %s5846_s11 }
 0xadd   : > { %v1450_v10 = vpack.c.bf16 %v1449_v4, %v1449_v4  ;;  %v3569_v18 = vld [vmem:[%s6443_s10] ss:$0 sm:$0xff]  ;;  %s6452_s10 = smov 24  }
 0xade   : > { %v2057_v0 = vsel %vm1481_vm2, %v2054_v63, 0.0 }
 0xadf   : > { %2058 = vadd.xlane.f32.xlu0 %v2057_v0  ;;  %3756 = vmatmul.mubr.msk.bf16.vlgmr.msra.gmra.mrb[28].mxu1 %vm1481_vm2, %v1450_v10 }
 0xae0   : > { %3767 = vmatprep.mubr.msk.bf16.mxu1 %vm4871_vm1, %v4870_v2 }
 0xb6c   : > { %v2059_v1 = vpop.xlane.xlu0 %2058 }
 0xb6d   : > { %v2061_v3 = vmul.f32 0.03125, %v2059_v1 }
 0xb6f   : > { %v2062_v5 = vsub.f32 %v2054_v63, %v2061_v3 }
 0xb71   : > { %v2063_v6 = vmul.f32 %v2062_v5, %v2062_v5 }
 0xb73   : > { %v2064_v7 = vsel %vm1481_vm2, %v2063_v6, 0.0 }
 0xb74   : > { %2065 = vadd.xlane.f32.xlu1 %v2064_v7 }
 0xbb2   : > { %v2212_v25 = vpop.f32.mrb[28].mxu1 }
 0xbb3   : > { %v2213_v26 = vadd.f32 %v3575_v24, %v2212_v25  ;;  %v3757_v27 = vpop.f32.mrb[29].mxu1 }
 0xbb4   : > { %v2215_v28 = vpop.f32.mrb[30].mxu1 }
 0xbb5   : > { %v6080_v11 = vpack.c.bf16 %v2213_v26, %v2213_v26  ;;  %v3758_v29 = vpop.f32.mrb[31].mxu1 }
 0xbb7   : > { %2333 = vrot.lane.b32.xlu0 %v6080_v11, %s4876_s0  ;;  %v2224_v30 = vsel %vm1529_vm3, %v6080_v11, 0 }
 0xbbb   : > { %2448 = vrot.lane.b32.xlu0 %v6080_v11, %s4878_s14 }
 0xbbf   : > { %2563 = vrot.lane.b32.xlu0 %v6080_v11, %s4879_s29 }
 0xc01   : > { %v2066_v14 = vpop.xlane.xlu1 %2065 }
 0xc02   : > { %v2067_v15 = vmul.f32 0.03125, %v2066_v14 }
 0xc04   : > { %v2068_v16 = vadd.f32 1e-05, %v2067_v15 }
 0xc06   : > { %4036 = vrsqrt.f32 %v2068_v16 }
 0xc10   : > { %v4037_v17 = vpop.eup %4036 }
 0xc11   : > { %v2070_v19 = vmul.f32 %v4037_v17, %v2062_v5 }
 0xc13   : > { %v2077_v21 = vmul.f32 %v3569_v18, %v2070_v19 }
 0xc15   : > { %v6071_v22 = vadd.f32 %v3570_v20, %v2077_v21 }
 0xc17   : > { %v2085_v23 = vpack.c.bf16 %v6071_v22, %v6071_v22 }
 0xc19   : > { %3748 = vmatmul.mubr.msk.bf16.vlgmr.msra.gmra.mrb[12].mxu0 %vm1481_vm2, %v2085_v23 }
 0xc1a   : > { %3761 = vmatprep.mubr.msk.bf16.mxu0 %vm4871_vm1, %v4870_v2  ;;  %3760 = vmatpush3.bf16.xpose.msra.mxu0 %v2224_v30 }
 0xc1b   : > { %3771 = vmatprep.subr.bf16.mxu0 %v4870_v2 }
 0xc29   : > { %v2334_v36 = vpop.permute.xlu0 %2333 }
 0xc2a   : > { %v2339_v39 = vsel %vm1529_vm3, %v2334_v36, 0 }
 0xc2d   : > { %v2449_v40 = vpop.permute.xlu0 %2448 }
 0xc2e   : > { %v2454_v42 = vsel %vm1529_vm3, %v2449_v40, 0 }
 0xc31   : > { %v2564_v43 = vpop.permute.xlu0 %2563 }
 0xc32   : > { %v2569_v45 = vsel %vm1529_vm3, %v2564_v43, 0 }
 0xcec   : > { %v2146_v32 = vpop.f32.mrb[12].mxu0 }
 0xced   : > { %v2147_v33 = vadd.f32 %v3571_v31, %v2146_v32  ;;  %v3749_v34 = vpop.f32.mrb[13].mxu0 }
 0xcee   : > { %v2149_v35 = vpop.f32.mrb[14].mxu0 }
 0xcef   : > { %v2218_v37 = vpack.c.bf16 %v2147_v33, %v2147_v33  ;;  %v3750_v38 = vpop.f32.mrb[15].mxu0 }
 0xcf1   : > { %2331 = vrot.lane.b32.xlu1 %v2218_v37, %s4876_s0  ;;  %3762 = vmatmul.mubr.msk.bf16.vlgmr.msra.gmra.mrb[16].mxu0 %vm1529_vm3, %v2218_v37  ;;  %s6449_s0 = smov 8  }
 0xcf2   : > { %3772 = vmatpush3.bf16.xpose.msra.mxu0 %v2339_v39  ;;  %3773 = vmatprep.mubr.msk.bf16.mxu0 %vm4871_vm1, %v4870_v2 }
 0xcf3   : > { %3783 = vmatprep.subr.bf16.mxu0 %v4870_v2 }
 0xcf5   : > { %2446 = vrot.lane.b32.xlu1 %v2218_v37, %s4878_s14 }
 0xcf9   : > { %2561 = vrot.lane.b32.xlu1 %v2218_v37, %s4879_s29  ;;  %s6447_s29 = smov 72  }
 0xd63   : > { %v2332_v41 = vpop.permute.xlu1 %2331 }
 0xd64   : > { %3774 = vmatmul.mubr.msk.bf16.vlgmr.msra.gmra.mrb[20].mxu0 %vm1529_vm3, %v2332_v41 }
 0xd65   : > { %3784 = vmatpush3.bf16.xpose.msra.mxu0 %v2454_v42  ;;  %3785 = vmatprep.mubr.msk.bf16.mxu0 %vm4871_vm1, %v4870_v2 }
 0xd66   : > { %3795 = vmatprep.subr.bf16.mxu0 %v4870_v2 }
 0xd67   : > { %v2447_v44 = vpop.permute.xlu1 %2446 }
 0xd6b   : > { %v2562_v46 = vpop.permute.xlu1 %2561 }
 0xd6c   : > { %3786 = vmatmul.mubr.msk.bf16.vlgmr.msra.gmra.mrb[24].mxu0 %vm1529_vm3, %v2447_v44 }
 0xd6d   : > { %3796 = vmatpush3.bf16.xpose.msra.mxu0 %v2569_v45  ;;  %3797 = vmatprep.mubr.msk.bf16.mxu0 %vm4871_vm1, %v4870_v2 }
 0xd6e   : > { %3807 = vmatprep.subr.bf16.mxu0 %v4870_v2 }
 0xd74   : > { %3798 = vmatmul.mubr.msk.bf16.vlgmr.msra.gmra.mrb[28].mxu0 %vm1529_vm3, %v2562_v46 }
 0xd75   : > { %3811 = vmatprep.mubr.msk.bf16.mxu0 %vm4871_vm1, %v4870_v2 }
 0xdc4   : > { %v2260_v47 = vpop.f32.mrb[16].mxu0 }
 0xdc5   : > { %v3763_v48 = vpop.f32.mrb[17].mxu0  ;;  %v2267_v49 = vsel %vm2266_vm9, %v2260_v47, -inf }
 0xdc6   : > { %2268 = vmax.xlane.f32.xlu0 %v2267_v49  ;;  %v2263_v50 = vpop.f32.mrb[18].mxu0 }
 0xdc7   : > { %v3764_v51 = vpop.f32.mrb[19].mxu0 }
 0xe37   : > { %v2375_v52 = vpop.f32.mrb[20].mxu0 }
 0xe38   : > { %v3775_v53 = vpop.f32.mrb[21].mxu0  ;;  %v2381_v54 = vsel %vm2266_vm9, %v2375_v52, -inf }
 0xe39   : > { %2382 = vmax.xlane.f32.xlu1 %v2381_v54  ;;  %v2378_v55 = vpop.f32.mrb[22].mxu0 }
 0xe3a   : > { %v3776_v56 = vpop.f32.mrb[23].mxu0 }
 0xe3f   : > { %v2490_v57 = vpop.f32.mrb[24].mxu0 }
 0xe40   : > { %v3787_v58 = vpop.f32.mrb[25].mxu0  ;;  %v2496_v59 = vsel %vm2266_vm9, %v2490_v57, -inf }
 0xe41   : > { %2497 = vmax.xlane.f32.xlu0 %v2496_v59  ;;  %v2493_v60 = vpop.f32.mrb[26].mxu0 }
 0xe42   : > { %v3788_v61 = vpop.f32.mrb[27].mxu0 }
 0xe47   : > { %v2605_v62 = vpop.f32.mrb[28].mxu0 }
 0xe48   : > { %v3799_v63 = vpop.f32.mrb[29].mxu0  ;;  %v2611_v0 = vsel %vm2266_vm9, %v2605_v62, -inf }
 0xe49   : > { %2612 = vmax.xlane.f32.xlu0 %v2611_v0  ;;  %v2608_v1 = vpop.f32.mrb[30].mxu0 }
 0xe4a   : > { %v3800_v3 = vpop.f32.mrb[31].mxu0 }
 0xe53   : > { %v2269_v5 = vpop.xlane.xlu0 %2268 }
 0xe54   : > { %v2270_v6 = vsub.f32 %v2260_v47, %v2269_v5 }
 0xe56   : > { %v2271_v7 = vmul.f32 1.442695, %v2270_v6 }
 0xe58   : > { %4038 = vpow2.f32 %v2271_v7 }
 0xe62   : > { %v4039_v8 = vpop.eup %4038 }
 0xe63   : > { %v2273_v9 = vsel %vm2266_vm9, %v4039_v8, 0.0 }
 0xe64   : > { %2274 = vadd.xlane.f32.xlu1 %v2273_v9 }
 0xe75   : > { %2280 = vrot.lane.b32.xlu1 %v6080_v11, %s4873_s22  ;;  %s6448_s22 = smov 88  }
 0xec6   : > { %v2383_v4 = vpop.xlane.xlu1 %2382 }
 0xec7   : > { %v2384_v10 = vsub.f32 %v2375_v52, %v2383_v4 }
 0xec9   : > { %v2385_v12 = vmul.f32 1.442695, %v2384_v10 }
 0xecb   : > { %4040 = vpow2.f32 %v2385_v12 }
 0xece   : > { %v2498_v13 = vpop.xlane.xlu0 %2497 }
 0xecf   : > { %v2499_v14 = vsub.f32 %v2490_v57, %v2498_v13 }
 0xed1   : > { %v2500_v15 = vmul.f32 1.442695, %v2499_v14 }
 0xed3   : > { %4042 = vpow2.f32 %v2500_v15 }
 0xed5   : > { %v4041_v16 = vpop.eup %4040 }
 0xed6   : > { %v2613_v17 = vpop.xlane.xlu0 %2612  ;;  %v2387_v18 = vsel %vm2266_vm9, %v4041_v16, 0.0 }
 0xed7   : > { %v2614_v19 = vsub.f32 %v2605_v62, %v2613_v17  ;;  %2388 = vadd.xlane.f32.xlu0 %v2387_v18 }
 0xed9   : > { %v2615_v20 = vmul.f32 1.442695, %v2614_v19 }
 0xedb   : > { %4044 = vpow2.f32 %v2615_v20 }
 0xedd   : > { %v4043_v21 = vpop.eup %4042 }
 0xede   : > { %v2502_v23 = vsel %vm2266_vm9, %v4043_v21, 0.0 }
 0xedf   : > { %2503 = vadd.xlane.f32.xlu1 %v2502_v23 }
 0xee5   : > { %v4045_v24 = vpop.eup %4044 }
 0xee6   : > { %v2617_v25 = vsel %vm2266_vm9, %v4045_v24, 0.0 }
 0xee7   : > { %2618 = vadd.xlane.f32.xlu0 %v2617_v25  ;;  %v4011_v25 = vld [vmem:[%s6455_s28 + $0x8] sm:$0xff]  }
 0xef0   : > { %2508 = vrot.lane.b32.xlu1 %v6080_v11, %s4877_s30  ;;  %s6450_s30 = scalar_lea.vmem [#allocation21], %s5849_s8  ;;  %s6456_s8 = scalar_lea.vmem [#allocation33], %s5846_s11 }
 0xef1   : > { %v2275_v26 = vpop.xlane.xlu1 %2274  ;;  %v4008_v57 = vld [vmem:[%s6450_s30] sm:$0xff]   ;;  %s6451_s14 = smov %s6450_s30  ;;  %s6462_s30 = sld [smem:[#allocation58_spill]] }
 0xef2   : > { %4046 = vrcp.f32 %v2275_v26  ;;  %3808 = vmatpush3.bf16.msra.mxu0 %v4008_v57  ;;  %v4009_v58 = vld [vmem:[%s6451_s14 + $0x8] sm:$0xff]   ;;  %v4013_v26 = vld [vmem:[%s5898_s2 + $0x8] sm:$0xff]  }
 0xef3   : > { %3809 = vmatprep.subr.bf16.mxu0 %v4870_v2 }
 0xef4   : > { %2623 = vrot.lane.b32.xlu1 %v6080_v11, %s6447_s29  ;;  %s6458_s29 = scalar_lea.vmem [#allocation25], %s5846_s11 }
 0xef5   : > { %v2281_v27 = vpop.permute.xlu1 %2280 }
 0xef6   : > { %v2287_v28 = vsel %vm2285_vm10, %v2281_v27, 0  ;;  %3810 = vmatpush3.bf16.msra.mxu0 %v4009_v58  ;;  %v4014_v27 = vld [vmem:[%s5898_s2 + $0x10] sm:$0xff]  }
 0xef7   : > { %3766 = vmatpush3.bf16.msra.mxu1 %v2287_v28  ;;  %3823 = vmatprep.subr.bf16.mxu0 %v4870_v2  ;;  %v4015_v28 = vld [vmem:[%s5898_s2 + $0x18] sm:$0xff]   ;;  %p3608_p13 = scmp.ne.s32.totalorder %s6462_s30, 1 }
 0xef8   : > { %3777 = vmatprep.subr.bf16.mxu1 %v4870_v2 }
 0xefc   : > { %v4047_v29 = vpop.eup %4046 }
 0xefd   : > { %v2277_v30 = vmul.f32 %v4047_v29, %v4039_v8  ;;  %2393 = vrot.lane.b32.xlu0 %v6080_v11, %s6448_s22  ;;  %v4016_v29 = vld [vmem:[%s5898_s2 + $0x20] sm:$0xff]   ;;  %s6459_s22 = scalar_lea.vmem [#allocation28], %s5846_s11 }
 0xeff   : > { %v2278_v31 = vpack.c.bf16 %v2277_v30, %v2277_v30  ;;  %v4017_v30 = vld [vmem:[%s5898_s2 + $0x28] sm:$0xff]  }
 0xf01   : > { %3768 = vmatmul.mubr.msk.bf16.vlgmr.msra.gmra.mrb[32].mxu1 %vm2266_vm9, %v2278_v31 }
 0xf02   : > { %3779 = vmatprep.mubr.msk.bf16.mxu1 %vm4871_vm1, %v4870_v2 }
 0xf64   : > { %v2389_v32 = vpop.xlane.xlu0 %2388 }
 0xf65   : > { %4048 = vrcp.f32 %v2389_v32 }
 0xf6c   : > { %v2504_v33 = vpop.xlane.xlu1 %2503 }
 0xf6d   : > { %4050 = vrcp.f32 %v2504_v33 }
 0xf6f   : > { %v4049_v34 = vpop.eup %4048 }
 0xf70   : > { %v2391_v36 = vmul.f32 %v4049_v34, %v4041_v16  ;;  %v2509_v39 = vpop.permute.xlu1 %2508 }
 0xf71   : > { %v2514_v41 = vsel %vm2285_vm10, %v2509_v39, 0 }
 0xf72   : > { %v2392_v11 = vpack.c.bf16 %v2391_v36, %v2391_v36 }
 0xf74   : > { %v2619_v35 = vpop.xlane.xlu0 %2618  ;;  %v2624_v43 = vpop.permute.xlu1 %2623 }
 0xf75   : > { %4052 = vrcp.f32 %v2619_v35  ;;  %v2629_v46 = vsel %vm2285_vm10, %v2624_v43, 0  ;;  %v3591_v35 = vld [vmem:[%s6456_s8] ss:$0 sm:$0xff] }
 0xf77   : > { %v4051_v40 = vpop.eup %4050 }
 0xf78   : > { %v2394_v37 = vpop.permute.xlu0 %2393  ;;  %v2506_v42 = vmul.f32 %v4051_v40, %v4043_v21  ;;  %v4018_v40 = vld [vmem:[%s5898_s2 + $0x30] sm:$0xff]  }
 0xf79   : > { %v2399_v38 = vsel %vm2285_vm10, %v2394_v37, 0  ;;  %v3592_v37 = vld [vmem:[%s6457_s9] ss:$0 sm:$0xff] }
 0xf7a   : > { %3778 = vmatpush3.bf16.msra.mxu1 %v2399_v38  ;;  %v2507_v44 = vpack.c.bf16 %v2506_v42, %v2506_v42  ;;  %v3593_v42 = vld [vmem:[%s6458_s29] ss:$0 sm:$0xff] }
 0xf7b   : > { %3789 = vmatprep.subr.bf16.mxu1 %v4870_v2 }
 0xf7d   : > { %3780 = vmatmul.mubr.msk.bf16.vlgmr.msra.gmra.mrb[36].mxu1 %vm2266_vm9, %v2392_v11 }
 0xf7e   : > { %3790 = vmatpush3.bf16.msra.mxu1 %v2514_v41  ;;  %3791 = vmatprep.mubr.msk.bf16.mxu1 %vm4871_vm1, %v4870_v2  ;;  %v4019_v41 = vld [vmem:[%s5898_s2 + $0x38] sm:$0xff]  }
 0xf7f   : > { %3801 = vmatprep.subr.bf16.mxu1 %v4870_v2  ;;  %v4053_v45 = vpop.eup %4052 }
 0xf80   : > { %v2621_v47 = vmul.f32 %v4053_v45, %v4045_v24  ;;  %v4010_v24 = vld [vmem:[%s6454_s23] sm:$0xff]  }
 0xf82   : > { %v2622_v48 = vpack.c.bf16 %v2621_v47, %v2621_v47 }
 0xf85   : > { %3792 = vmatmul.mubr.msk.bf16.vlgmr.msra.gmra.mrb[40].mxu1 %vm2266_vm9, %v2507_v44 }
 0xf86   : > { %3802 = vmatpush3.bf16.msra.mxu1 %v2629_v46  ;;  %3803 = vmatprep.mubr.msk.bf16.mxu1 %vm4871_vm1, %v4870_v2 }
 0xf87   : > { %3815 = vmatprep.subr.bf16.mxu1 %v4870_v2 }
 0xf8d   : > { %3804 = vmatmul.mubr.msk.bf16.vlgmr.msra.gmra.mrb[44].mxu1 %vm2266_vm9, %v2622_v48 }
 0xf8e   : > { %3819 = vmatprep.mubr.msk.bf16.mxu1 %vm4871_vm1, %v4870_v2  ;;  %3816 = vmatpush3.bf16.msra.mxu1 %v4010_v24 }
 0xf8f   : > { %3817 = vmatprep.subr.bf16.mxu1 %v4870_v2 }
 0xf92   : > { %3818 = vmatpush3.bf16.msra.mxu1 %v4011_v25 }
 0xfd4   : > { %v2323_v49 = vpop.f32.mrb[32].mxu1 }
 0xfd5   : > { %2329 = vst.msk [vmem:[#allocation3] sm:$0xff] %vm1529_vm3, %v2323_v49  ;;  %v3769_v50 = vpop.f32.mrb[33].mxu1 }
 0xfd6   : > { %v2326_v51 = vpop.f32.mrb[34].mxu1  ;;  %v3597_v50 = vld [vmem:[%s6459_s22] ss:$0 sm:$0xff] }
 0xfd7   : > { %v3770_v52 = vpop.f32.mrb[35].mxu1 }
0x1050   : > { %v2435_v53 = vpop.f32.mrb[36].mxu1 }
0x1051   : > { %2442 = vrot.lane.b32.xlu0 %v2435_v53, %s6449_s0  ;;  %v3781_v54 = vpop.f32.mrb[37].mxu1  ;;  %s6461_s0 = scalar_lea.vmem [#allocation37], %s5846_s11 }
0x1052   : > { %v2438_v55 = vpop.f32.mrb[38].mxu1 }
0x1053   : > { %v3782_v56 = vpop.f32.mrb[39].mxu1 }
0x1058   : > { %v2550_v59 = vpop.f32.mrb[40].mxu1 }
0x1059   : > { %2557 = vrot.lane.b32.xlu1 %v2550_v59, %s4884_s27  ;;  %v3793_v60 = vpop.f32.mrb[41].mxu1  ;;  %s6453_s27 = scalar_lea.vmem [#allocation22], %s5846_s11 }
0x105a   : > { %v2553_v61 = vpop.f32.mrb[42].mxu1  ;;  %v3587_v4 = vld [vmem:[%s6453_s27] ss:$0 sm:$0xff] }
0x105b   : > { %v3794_v62 = vpop.f32.mrb[43].mxu1 }
0x1060   : > { %v2665_v63 = vpop.f32.mrb[44].mxu1 }
0x1061   : > { %2672 = vrot.lane.b32.xlu0 %v2665_v63, %s6452_s10  ;;  %v3805_v0 = vpop.f32.mrb[45].mxu1 }
0x1062   : > { %v2668_v1 = vpop.f32.mrb[46].mxu1 }
0x1063   : > { %v3806_v3 = vpop.f32.mrb[47].mxu1 }
0x10c3   : > { %v2443_v5 = vpop.permute.xlu0 %2442 }
0x10c4   : > { %2445 = vst.msk [vmem:[#allocation3] sm:$0xff] %vm1752_vm6, %v2443_v5 }
0x10cb   : > { %v2558_v6 = vpop.permute.xlu1 %2557 }
0x10cc   : > { %2560 = vst.msk [vmem:[#allocation3] sm:$0xff] %vm1868_vm7, %v2558_v6  ;;  %v3607_v6 = vld [vmem:[%s6461_s0] ss:$0 sm:$0xff] }
0x10d3   : > { %v2673_v7 = vpop.permute.xlu0 %2672 }
0x10d4   : > { %2675 = vst.msk [vmem:[#allocation3] sm:$0xff] %vm1984_vm8, %v2673_v7 }
0x10db   : > { %v2676_v8 = vld [vmem:[#allocation3] sm:$0xff] }
0x10dc   : > { %v2677_v9 = vpack.c.bf16 %v2676_v8, %v2676_v8 }
0x10de   : > { %3812 = vmatmul.mubr.msk.bf16.vlgmr.msra.gmra.mrb[32].mxu0 %vm1481_vm2, %v2677_v9 }
0x10df   : > { %3839 = vmatprep.mubr.msk.bf16.mxu0 %vm4871_vm1, %v4870_v2 }
0x11b1   : > { %v2738_v10 = vpop.f32.mrb[32].mxu0 }
0x11b2   : > { %v2739_v12 = vadd.f32 %v3587_v4, %v2738_v10  ;;  %v3813_v13 = vpop.f32.mrb[33].mxu0 }
0x11b3   : > { %v2741_v14 = vpop.f32.mrb[34].mxu0 }
0x11b4   : > { %v3814_v15 = vpop.f32.mrb[35].mxu0  ;;  %v2744_v16 = vadd.f32 %v2739_v12, %v6071_v22  ;;  %v4012_v22 = vld [vmem:[%s5898_s2] sm:$0xff]   ;;  %s6460_s2 = scalar_lea.vmem [#allocation36], %s5846_s11 }
0x11b5   : > { %3824 = vmatpush3.bf16.msra.mxu0 %v4012_v22  ;;  %v3606_v3 = vld [vmem:[%s6460_s2] ss:$0 sm:$0xff] }
0x11b6   : > { %v2747_v17 = vsel %vm1481_vm2, %v2744_v16, 0.0  ;;  %3825 = vmatprep.subr.bf16.mxu0 %v4870_v2 }
0x11b7   : > { %2748 = vadd.xlane.f32.xlu1 %v2747_v17 }
0x11b9   : > { %3826 = vmatpush3.bf16.msra.mxu0 %v4013_v26 }
0x11ba   : > { %3827 = vmatprep.subr.bf16.mxu0 %v4870_v2 }
0x11bd   : > { %3828 = vmatpush3.bf16.msra.mxu0 %v4014_v27 }
0x11be   : > { %3829 = vmatprep.subr.bf16.mxu0 %v4870_v2 }
0x11c1   : > { %3830 = vmatpush3.bf16.msra.mxu0 %v4015_v28 }
0x11c2   : > { %3831 = vmatprep.subr.bf16.mxu0 %v4870_v2 }
0x11c5   : > { %3832 = vmatpush3.bf16.msra.mxu0 %v4016_v29 }
0x11c6   : > { %3833 = vmatprep.subr.bf16.mxu0 %v4870_v2 }
0x11c9   : > { %3834 = vmatpush3.bf16.msra.mxu0 %v4017_v30 }
0x11ca   : > { %3835 = vmatprep.subr.bf16.mxu0 %v4870_v2 }
0x11cd   : > { %3836 = vmatpush3.bf16.msra.mxu0 %v4018_v40 }
0x11ce   : > { %3837 = vmatprep.subr.bf16.mxu0 %v4870_v2 }
0x11d1   : > { %3838 = vmatpush3.bf16.msra.mxu0 %v4019_v41 }
0x1244   : > { %v2749_v18 = vpop.xlane.xlu1 %2748 }
0x1245   : > { %v2750_v19 = vmul.f32 0.03125, %v2749_v18 }
0x1247   : > { %v2751_v20 = vsub.f32 %v2744_v16, %v2750_v19 }
0x1249   : > { %v2752_v21 = vmul.f32 %v2751_v20, %v2751_v20 }
0x124b   : > { %v2753_v23 = vsel %vm1481_vm2, %v2752_v21, 0.0 }
0x124c   : > { %2754 = vadd.xlane.f32.xlu0 %v2753_v23 }
0x12d9   : > { %v2755_v31 = vpop.xlane.xlu0 %2754 }
0x12da   : > { %v2756_v32 = vmul.f32 0.03125, %v2755_v31 }
0x12dc   : > { %v2757_v33 = vadd.f32 1e-05, %v2756_v32 }
0x12de   : > { %4054 = vrsqrt.f32 %v2757_v33 }
0x12e8   : > { %v4055_v34 = vpop.eup %4054 }
0x12e9   : > { %v2759_v36 = vmul.f32 %v4055_v34, %v2751_v20 }
0x12eb   : > { %v2766_v38 = vmul.f32 %v3591_v35, %v2759_v36 }
0x12ed   : > { %v2773_v39 = vadd.f32 %v3592_v37, %v2766_v38 }
0x12ef   : > { %v2774_v11 = vpack.c.bf16 %v2773_v39, %v2773_v39 }
0x12f1   : > { %3820 = vmatmul.mubr.msk.bf16.vlgmr.msra.gmra.mrb[48].mxu1 %vm1481_vm2, %v2774_v11 }
0x13c4   : > { %v2835_v43 = vpop.f32.mrb[48].mxu1 }
0x13c5   : > { %v2836_v44 = vadd.f32 %v3593_v42, %v2835_v43  ;;  %v3821_v45 = vpop.f32.mrb[49].mxu1 }
0x13c6   : > { %v2838_v46 = vpop.f32.mrb[50].mxu1 }
0x13c7   : > { %v2841_v47 = vmax.f32 %v2836_v44, 0.0  ;;  %v3822_v48 = vpop.f32.mrb[51].mxu1 }
0x13c9   : > { %v2842_v49 = vpack.c.bf16 %v2841_v47, %v2841_v47 }
0x13cb   : > { %3840 = vmatmul.mubr.bf16.vlgmr.msra.gmra.mrb[36].mxu0 %v2842_v49 }
0x149e   : > { %v2948_v51 = vpop.f32.mrb[36].mxu0 }
0x149f   : > { %v2949_v52 = vadd.f32 %v3597_v50, %v2948_v51  ;;  %v3841_v53 = vpop.f32.mrb[37].mxu0 }
0x14a0   : > { %v2951_v54 = vpop.f32.mrb[38].mxu0 }
0x14a1   : > { %v3842_v2 = vpop.f32.mrb[39].mxu0  ;;  %v2954_v55 = vadd.f32 %v2949_v52, %v2773_v39 }
0x14a3   : > { %v2957_v56 = vsel %vm1481_vm2, %v2954_v55, 0.0 }
0x14a4   : > { %2958 = vadd.xlane.f32.xlu0 %v2957_v56 }
0x1531   : > { %v2959_v57 = vpop.xlane.xlu0 %2958 }
0x1532   : > { %v2960_v58 = vmul.f32 0.03125, %v2959_v57 }
0x1534   : > { %v2961_v59 = vsub.f32 %v2954_v55, %v2960_v58 }
0x1536   : > { %v2962_v60 = vmul.f32 %v2961_v59, %v2961_v59 }
0x1538   : > { %v2963_v61 = vsel %vm1481_vm2, %v2962_v60, 0.0 }
0x1539   : > { %2964 = vadd.xlane.f32.xlu1 %v2963_v61 }
0x15c6   : > { %v2965_v62 = vpop.xlane.xlu1 %2964 }
0x15c7   : > { %v2966_v63 = vmul.f32 0.03125, %v2965_v62 }
0x15c9   : > { %v2967_v0 = vadd.f32 1e-05, %v2966_v63 }
0x15cb   : > { %4056 = vrsqrt.f32 %v2967_v0 }
0x15d5   : > { %v4057_v1 = vpop.eup %4056 }
0x15d6   : > { %v2969_v5 = vmul.f32 %v4057_v1, %v2961_v59  ;;  %2988 = sbr.rel (%p3608_p13) target bundleno = 5597 (0x15dd), region = 204 }
0x15d8   : > { %v2976_v7 = vmul.f32 %v3606_v3, %v2969_v5 }
0x15da   : > { %v2983_v8 = vadd.f32 %v3607_v6, %v2976_v7 }
0x15dc   : > { %2984 = vst.msk [vmem:[#allocation2] sm:$0xff] %vm1481_vm2, %v2983_v8  ;;  %2989 = vst.msk [vmem:[%s5929_s1] sm:$0xff] (!%p3608_p13), %vm1481_vm2, %v2983_v8 }
0x15dd PF: > { %s6463_s14 = sld [smem:[#allocation59_spill]]  ;;  %s6464_s10 = sld [smem:[#allocation67_spill]] }
0x15de   : > { %s6465_s11 = sld [smem:[#allocation89_spill]]  ;;  %s3004_s9 = sshll.u32 %s5929_s1, 4  ;;  %s3005_s9 = int_to_ptr.vmem [resolvable:$true] %s3004_s9 }
0x15df   : > { %s2991_s29 = scalar_lea.sflag [#allocation6], %s5822_s3  ;;  %s4674_s22 = scalar_lea.vmem %s3005_s9, 128 }
0x15e0   : > { %p4675_p7 = scmp.ne.s32.totalorder %s3005_s9, %s4674_s22  ;;  %s4886_s2 = smov [#allocation39]  }
0x15e1   : > { %s4678_s0 = sshll.u32 %s4886_s2, 4  ;;  %s4679_s0 = int_to_ptr.vmem [resolvable:$false] %s4678_s0 }
0x15e2   : > { %s4680_s30 = scalar_lea.vmem %s4679_s0, 256  ;;  %p4681_p1 = scmp.lt.s32.totalorder %s3005_s9, %s4679_s0 }
0x15e3   : > { %s3610_s27 = sshll.u32 %s6463_s14, 7  ;;  %p6466_p5 = scmp.ne.s32.totalorder %s6464_s10, 0 }
0x15e4   : > { %s6214_s8 = scalar_lea.hbm %s6465_s11, %s3610_s27  ;;  %p4682_p6 = scmp.lt.s32.totalorder %s4680_s30, %s4674_s22 }
0x15e5   : > { %p4676_p8 = pnand %p4675_p7, %p6466_p5 }
0x15e6   : > { %p4683_p4 = por %p4682_p6, %p4681_p1 }
0x15e7   : > { %p4677_p2 = pneg %p4676_p8 }
0x15e9   : > { %p4684_p0 = pnand %p4683_p4, %p4677_p2 }
0x15eb   : > { %4687 = shalt.err (!%p4684_p0)
}
0x15ec   : > { %s4688_s3 = scalar_lea.hbm %s6214_s8, 128  ;;  %s4692_s27 = scalar_lea.hbm %s6465_s11, 256 }
0x15ed   : > { %p4689_p11 = scmp.ne.s32.totalorder %s6214_s8, %s4688_s3  ;;  %p4693_p10 = scmp.lt.u32.totalorder %s6214_s8, %s6465_s11 }
0x15ee   : > { %p4694_p9 = scmp.lt.u32.totalorder %s4692_s27, %s4688_s3  ;;  %p4696_p7 = scmp.lt.u32.totalorder %s4688_s3, %s6214_s8 }
0x15ef   : > { %p4690_p3 = pnand %p4689_p11, %p6466_p5 }
0x15f0   : > { %p4695_p13 = por %p4694_p9, %p4693_p10 }
0x15f1   : > { %p4691_p12 = pneg %p4690_p3 }
0x15f2   : > { %p4697_p8 = por %p4696_p7, %p4695_p13 }
0x15f4   : > { %p4698_p2 = pnand %p4697_p8, %p4691_p12 }
0x15f6   : > { %4701 = shalt.err (!%p4698_p2)
}
0x15f7   : > { %3887 = dma.vmem_to_hbm [thread:$0]  (%p6466_p5), %s3005_s9, 128, %s6214_s8, %s2991_s29  }
0x15f8 PF: > { %s6467_s22 = sld [smem:[#allocation56_spill]]  ;;  %s6468_s2 = sld [smem:[#allocation68_spill]] }
0x15f9   : > { %p3893_p1 = scmp.ge.s32.totalorder %s4844_s6, 2 }
0x15fe   : > { %s3016_s0 = sand.u32 1, %s6467_s22   ;;  %p6469_p6 = scmp.ne.s32.totalorder %s6468_s2, 0 }
0x15ff   : > { %s3017_s30 = scalar_lea.sflag [#allocation6], %s3016_s0 }
0x1600   : > { %p3890_p4 = pnand %p3893_p1, %p6469_p6 }
0x1602   : > { %4799 = dma.done.wait (!%p3890_p4), %s3017_s30, 128  }
0x1603   : > { %4801 = vsyncadd (!%p3890_p4), %s3017_s30, 4294967168  ;;  %s71_s6 = sadd.s32 1, %s4844_s6   ;;  %s6470_s3 = sld [smem:[#allocation54_spill]] }
0x1604   : > { %p68_p0 = scmp.ge.s32.totalorder %s71_s6, 6   ;;  %s6471_s28 = sld [smem:[#allocation55_spill]] }
0x1605   : > { %s6472_s29 = sld [smem:[#allocation64_spill]]  ;;  %s6473_s10 = sld [smem:[#allocation57_spill]] }
0x1606   : > { %s6474_s0 = sld [smem:[#allocation65_spill]]  ;;  %s6475_s8 = sld [smem:[#allocation61_spill]] }
0x1607   : > { %s6476_s9 = sld [smem:[#allocation62_spill]]  ;;  %s6477_s30 = smov %s4820_s4 }
0x1608   : > { %s6479_s23 = smov %s4836_s5  ;;  %s6480_s1 = smov %s4840_s24 }
0x1609   :  { %70 = sbr.rel (!%p68_p0) target bundleno = 53 (0x35), region = 414 }
0x160b   : > { %s6478_s4 = smov %s6473_s10 }
0x160c   : > { %s6481_s5 = smov %s6475_s8 }
0x160d   : > { %s6482_s24 = smov %s6476_s9 }
0x1610   :  { %3022 = vsyncpa [#allocation5], 1 }
0x1611   :  { %3024 = vsyncpa [#allocation5 + $0x1], 1 }
0x1612   :  { %3025 = vsyncpa [#allocation8], 1 }
0x1613   :  { %3027 = vsyncpa [#allocation8 + $0x1], 1 }
0x1614   :  { %3028 = vsyncpa [#allocation11], 1 }
0x1615   :  { %3030 = vsyncpa [#allocation11 + $0x1], 1 }
0x1616   :  { %3031 = vsyncpa [#allocation14], 1 }
0x1617   :  { %3033 = vsyncpa [#allocation14 + $0x1], 1 }
0x1618   :  { %3034 = vsyncpa [#allocation17], 1 }
0x1619   :  { %3036 = vsyncpa [#allocation17 + $0x1], 1 }
0x161a   :  { %3037 = vsyncpa [#allocation20], 1 }
0x161b   :  { %3039 = vsyncpa [#allocation20 + $0x1], 1 }
0x161c   :  { %3040 = vsyncpa [#allocation23], 1 }
0x161d   :  { %3042 = vsyncpa [#allocation23 + $0x1], 1 }
0x161e   :  { %3043 = vsyncpa [#allocation26], 1 }
0x161f   :  { %3045 = vsyncpa [#allocation26 + $0x1], 1 }
0x1620   :  { %3046 = vsyncpa [#allocation29], 1 }
0x1621   :  { %3048 = vsyncpa [#allocation29 + $0x1], 1 }
0x1622   :  { %3049 = vsyncpa [#allocation32], 1 }
0x1623   :  { %3051 = vsyncpa [#allocation32 + $0x1], 1 }
0x1624   :  { %3052 = vsyncpa [#allocation35], 1 }
0x1625   :  { %3054 = vsyncpa [#allocation35 + $0x1], 1 }
0x1626   :  { %3055 = vsyncpa [#allocation38], 1 }
0x1627   :  { %3057 = vsyncpa [#allocation38 + $0x1], 1 }
0x1628   :  { %3058 = vsyncpa [#allocation6], 1 }
0x1629   :  { %3060 = vsyncpa [#allocation6 + $0x1], 1 }

</bundles_post_ra>
